<compile_context>
chip_gen: v7x
topology: tpu7x:2x2x1
jax: 0.10.0
libtpu: 0.0.40
codegen_flags: <defaults>
</compile_context>

<pallas_src>
import math

import numpy as np
import jax
import jax.numpy as jnp
from jax.experimental import pallas as pl
from jax.experimental.pallas import tpu as pltpu


def _make_angspec_kernel(block_batch, n):
    """Fused propagation kernel for `block_batch` images of size n x n.

    Chain (per grid step, all images row-stacked as (Bt*N, N) planes):
      rmul(A) -> per-image T -> rmul(A) -> Hadamard Q2s -> rmul(B)
              -> per-image T -> rmul(B)
    where rmul is ONE augmented real matmul (Bt*N, 2N) @ (2N, 2N).
    """
    Bt, N = block_batch, n

    def angspec_kernel(gr_ref, gi_ref, ra_ref, rb_ref, qr_ref, qi_ref,
                       or_ref, oi_ref):
        gr = gr_ref[...].reshape(Bt * N, N)
        gi = gi_ref[...].reshape(Bt * N, N)
        ra = ra_ref[...]          # (2N, 2N) = [[Ar, Ai], [-Ai, Ar]]
        rb = rb_ref[...]          # (2N, 2N) = [[Br, Bi], [-Bi, Br]]
        qr = qr_ref[...]          # (N, N)
        qi = qi_ref[...]

        def rmul(xr, xi, m):
            # complex right-multiply (Xr + iXi) @ (Mr + iMi) as one MXU matmul
            # with K = 2N; the re/im subtract/add folds into the accumulation.
            y = jnp.dot(jnp.concatenate([xr, xi], axis=1), m,
                        preferred_element_type=jnp.float32)
            return y[:, :N], y[:, N:]

        def per_image_T(x):
            # transpose each image's (N, N) plane; XLU work, overlaps with MXU.
            return jnp.concatenate(
                [x[b * N:(b + 1) * N, :].T for b in range(Bt)], axis=0)

        # stage 1:  W = g @ A
        wr, wi = rmul(gr, gi, ra)
        # stage 2:  U^T = W^T @ A   ( == (A @ W)^T since A is symmetric )
        utr, uti = rmul(per_image_T(wr), per_image_T(wi), ra)
        # Hadamard: V^T = Q2s * U^T  (Q2s symmetric; per-image, pure VPU)
        vtr_parts, vti_parts = [], []
        for b in range(Bt):
            ur = utr[b * N:(b + 1) * N, :]
            ui = uti[b * N:(b + 1) * N, :]
            vtr_parts.append(qr * ur - qi * ui)
            vti_parts.append(qr * ui + qi * ur)
        vtr = jnp.concatenate(vtr_parts, axis=0)
        vti = jnp.concatenate(vti_parts, axis=0)
        # stage 3:  (B @ V)^T = V^T @ B   (B symmetric)
        tr, ti = rmul(vtr, vti, rb)
        # stage 4:  Uout = (B @ V) @ B
        outr, outi = rmul(per_image_T(tr), per_image_T(ti), rb)

        or_ref[...] = outr.reshape(Bt, N, N)
        oi_ref[...] = outi.reshape(Bt, N, N)

    return angspec_kernel


class AngSpecProp:
    """JAX/Pallas port of the PyTorch AngSpecProp forward pass."""

    def __init__(self, whole_dim, pixel_size, focal_length, wave_lambda,
                 phase_error=None):
        N = int(whole_dim)
        k = 2 * math.pi / wave_lambda
        df1 = 1.0 / (N * pixel_size)

        # Q2 exactly as in the PyTorch module (float64 host precompute).
        f = np.arange(-np.ceil((N - 1) / 2), np.floor((N - 1) / 2) + 0.5) * df1
        fxx, fyy = np.meshgrid(f, f)
        fsq = fxx ** 2 + fyy ** 2                     # symmetric
        Q2 = np.exp(-1j * math.pi ** 2 * 2 * focal_length / k * fsq)
        # Fold ft2's pixel_size**2 and ift2's (N*df1)**2 scales into Q2
        # (mathematically their product is 1 for df1 = 1/(N*px), but keep the
        # fold so the kernel stays faithful for any parameters).
        Q2 = Q2 * (pixel_size ** 2) * ((N * df1) ** 2)

        # Shifted DFT operator matrices: A v = fftshift(fft(ifftshift(v))),
        #                                B v = ifftshift(ifft(fftshift(v))).
        # Both are symmetric, so  ft2(g)  = px^2      * A @ g @ A
        #                         ift2(G) = (N*df1)^2 * B @ G @ B.
        eye = np.eye(N, dtype=np.complex128)
        A = np.fft.fftshift(np.fft.fft(np.fft.ifftshift(eye, axes=0), axis=0), axes=0)
        B = np.fft.ifftshift(np.fft.ifft(np.fft.fftshift(eye, axes=0), axis=0), axes=0)

        def aug(M):
            Mr = M.real.astype(np.float32)
            Mi = M.imag.astype(np.float32)
            # Right-multiply form: [Xr | Xi] @ [[Mr, Mi], [-Mi, Mr]] = [Re | Im].
            return jnp.asarray(np.block([[Mr, Mi], [-Mi, Mr]]))

        self.N = N
        self.pixel_size = float(pixel_size)
        self.df1 = float(df1)
        self.RA = aug(A)                      # (2N, 2N)
        self.RB = aug(B)                      # (2N, 2N)
        self.Qr = jnp.asarray(Q2.real, jnp.float32)
        self.Qi = jnp.asarray(Q2.imag, jnp.float32)
        # TODO(synk): phase_error is only used by physical_forward (not the
        # forward pass translated here); it is accepted but ignored.
        self.phase_error = phase_error

    # ------------------------------------------------------------------ utils
    def _pick_block_batch(self, Bsz):
        N = self.N
        # Keep the per-step working set inside the default scoped-VMEM budget:
        # constants (double-buffered) + ~18 live f32 planes per image.
        const_bytes = (2 * (2 * N) ** 2 + 2 * N * N) * 4 * 2
        per_image_bytes = 18 * N * N * 4
        budget = 24 * 1024 * 1024
        cap = max(1, min(8, (budget - const_bytes) // per_image_bytes))
        divisors = [d for d in range(1, Bsz + 1) if Bsz % d == 0 and d <= cap]
        # Prefer keeping grid length >= 2 so both v7x TensorCores stay busy.
        preferred = [d for d in divisors if Bsz // d >= 2]
        return max(preferred) if preferred else max(divisors)

    # ------------------------------------------------------------------ fwd
    def forward_planar(self, field_re, field_im):
        """Planar (separate re/im) forward. Use this when chaining optical
        layers to avoid complex<->planar interleave passes at every layer."""
        N = self.N
        gr = jnp.asarray(field_re, jnp.float32)
        gi = jnp.asarray(field_im, jnp.float32)
        assert gr.shape == gi.shape
        assert gr.shape[-2:] == (N, N), "last two dims must be (whole_dim, whole_dim)"
        orig_shape = gr.shape
        gr = gr.reshape((-1, N, N))
        gi = gi.reshape((-1, N, N))
        Bsz = gr.shape[0]

        Bt = self._pick_block_batch(Bsz)
        grid = (Bsz // Bt,)

        batch_spec = pl.BlockSpec((Bt, N, N), lambda b: (b, 0, 0))
        aug_spec = pl.BlockSpec((2 * N, 2 * N), lambda b: (0, 0))
        q_spec = pl.BlockSpec((N, N), lambda b: (0, 0))

        # 4 augmented matmuls of (Bt*N, 2N) @ (2N, 2N) per grid step.
        flops = int(4 * 2 * Bsz * N * (2 * N) * (2 * N) + 10 * Bsz * N * N)
        bytes_accessed = int(4 * (4 * Bsz * N * N + 2 * (2 * N) ** 2 + 2 * N * N))

        const_bytes = (2 * (2 * N) ** 2 + 2 * N * N) * 4 * 2
        est_vmem = const_bytes + (4 * 2 + 14) * Bt * N * N * 4
        vmem_limit = (int(min(est_vmem * 1.25, 100 * 1024 * 1024))
                      if est_vmem > 30 * 1024 * 1024 else None)

        out_re, out_im = pl.pallas_call(
            _make_angspec_kernel(Bt, N),
            out_shape=(
                jax.ShapeDtypeStruct((Bsz, N, N), jnp.float32),
                jax.ShapeDtypeStruct((Bsz, N, N), jnp.float32),
            ),
            grid_spec=pl.GridSpec(
                grid=grid,
                in_specs=[batch_spec, batch_spec,
                          aug_spec, aug_spec,
                          q_spec, q_spec],
                out_specs=(batch_spec, batch_spec),
            ),
            compiler_params=pltpu.CompilerParams(
                dimension_semantics=("parallel",),
                vmem_limit_bytes=vmem_limit,
            ),
            cost_estimate=pl.CostEstimate(
                flops=flops, transcendentals=0, bytes_accessed=bytes_accessed),
        )(gr, gi, self.RA, self.RB, self.Qr, self.Qi)

        return out_re.reshape(orig_shape), out_im.reshape(orig_shape)

    def forward(self, input_field):
        x = jnp.asarray(input_field, jnp.complex64)
        # NOTE: the real/imag split and the lax.complex combine are each a full
        # extra HBM pass; prefer forward_planar() when chaining layers.
        out_re, out_im = self.forward_planar(jnp.real(x), jnp.imag(x))
        return jax.lax.complex(out_re, out_im)

    def __call__(self, input_field):
        return self.forward(input_field)


def _reference(x, Q2, pixel_size, df1):
    """Pure-JAX replica of the torch forward (FFT path) for verification."""
    ax = (-2, -1)

    def ft2(g, delta):
        return jnp.fft.fftshift(
            jnp.fft.fft2(jnp.fft.ifftshift(g, axes=ax), axes=ax), axes=ax) * delta ** 2

    def ift2(G, delta_f):
        n = G.shape[-1]
        return jnp.fft.ifftshift(
            jnp.fft.ifft2(jnp.fft.fftshift(G, axes=ax), axes=ax), axes=ax) * (n * delta_f) ** 2

    return ift2(Q2 * ft2(x, pixel_size), df1)


if __name__ == "__main__":
    whole_dim = 128          # lane-dense, MXU-friendly
    pixel_size = 8e-6
    focal_length = 0.1
    wave_lambda = 5.32e-7
    batch = 4                # -> block_batch 2, grid 2 (batched AND both TCs busy)

    prop = AngSpecProp(whole_dim, pixel_size, focal_length, wave_lambda)

    key = jax.random.PRNGKey(0)
    kr, ki = jax.random.split(key)
    shape = (batch, whole_dim, whole_dim)
    x = jax.lax.complex(
        jax.random.normal(kr, shape, dtype=jnp.float32),
        jax.random.normal(ki, shape, dtype=jnp.float32),
    )

    out = jax.block_until_ready(prop(x))

    # Reference check against an FFT-based replica of the PyTorch forward.
    k = 2 * math.pi / wave_lambda
    df1 = 1.0 / (whole_dim * pixel_size)
    f = np.arange(-np.ceil((whole_dim - 1) / 2),
                  np.floor((whole_dim - 1) / 2) + 0.5) * df1
    fxx, fyy = np.meshgrid(f, f)
    Q2 = jnp.asarray(
        np.exp(-1j * math.pi ** 2 * 2 * focal_length / k * (fxx ** 2 + fyy ** 2)),
        jnp.complex64)
    ref = _reference(x, Q2, pixel_size, df1)

    assert out.shape == x.shape
    assert out.dtype == jnp.complex64
    rel_err = jnp.linalg.norm(out - ref) / jnp.linalg.norm(ref)
    assert float(rel_err) < 2e-3, f"relative error too large: {float(rel_err)}"

    print("KERNEL_OK")
</pallas_src>

<mosaic_0001>
module attributes {stable_mosaic.version = 11 : i64} {
  func.func @angspec_kernel(%arg0: i32, %arg1: memref<2x128x128xf32, #tpu.memory_space<vmem>>, %arg2: memref<2x128x128xf32, #tpu.memory_space<vmem>>, %arg3: memref<256x256xf32, #tpu.memory_space<vmem>>, %arg4: memref<256x256xf32, #tpu.memory_space<vmem>>, %arg5: memref<128x128xf32, #tpu.memory_space<vmem>>, %arg6: memref<128x128xf32, #tpu.memory_space<vmem>>, %arg7: memref<2x128x128xf32, #tpu.memory_space<vmem>>, %arg8: memref<2x128x128xf32, #tpu.memory_space<vmem>>) attributes {dimension_semantics = [#tpu.dimension_semantics<parallel>], iteration_bounds = array<i64: 2>, scalar_prefetch = 0 : i64, scratch_operands = 0 : i64, tpu.core_type = #tpu.core_type<tc>, window_params = [{transform_indices = @transform_0, window_bounds = array<i64: 2, 128, 128>}, {transform_indices = @transform_1, window_bounds = array<i64: 2, 128, 128>}, {pipeline_mode = #tpu.pipeline_mode<synchronous>, transform_indices = @transform_2, window_bounds = array<i64: 256, 256>}, {pipeline_mode = #tpu.pipeline_mode<synchronous>, transform_indices = @transform_3, window_bounds = array<i64: 256, 256>}, {pipeline_mode = #tpu.pipeline_mode<synchronous>, transform_indices = @transform_4, window_bounds = array<i64: 128, 128>}, {pipeline_mode = #tpu.pipeline_mode<synchronous>, transform_indices = @transform_5, window_bounds = array<i64: 128, 128>}, {transform_indices = @transform_6, window_bounds = array<i64: 2, 128, 128>}, {transform_indices = @transform_7, window_bounds = array<i64: 2, 128, 128>}]} {
    %c0 = arith.constant 0 : index
    %c0_0 = arith.constant 0 : index
    %c0_1 = arith.constant 0 : index
    %0 = vector.load %arg1[%c0, %c0_0, %c0_1] : memref<2x128x128xf32, #tpu.memory_space<vmem>>, vector<2x128x128xf32>
    %1 = vector.shape_cast %0 : vector<2x128x128xf32> to vector<256x128xf32>
    %c0_2 = arith.constant 0 : index
    %c0_3 = arith.constant 0 : index
    %c0_4 = arith.constant 0 : index
    %2 = vector.load %arg2[%c0_2, %c0_3, %c0_4] : memref<2x128x128xf32, #tpu.memory_space<vmem>>, vector<2x128x128xf32>
    %3 = vector.shape_cast %2 : vector<2x128x128xf32> to vector<256x128xf32>
    %c0_5 = arith.constant 0 : index
    %c0_6 = arith.constant 0 : index
    %4 = vector.load %arg3[%c0_5, %c0_6] : memref<256x256xf32, #tpu.memory_space<vmem>>, vector<256x256xf32>
    %c0_7 = arith.constant 0 : index
    %c0_8 = arith.constant 0 : index
    %5 = vector.load %arg4[%c0_7, %c0_8] : memref<256x256xf32, #tpu.memory_space<vmem>>, vector<256x256xf32>
    %c0_9 = arith.constant 0 : index
    %c0_10 = arith.constant 0 : index
    %6 = vector.load %arg5[%c0_9, %c0_10] : memref<128x128xf32, #tpu.memory_space<vmem>>, vector<128x128xf32>
    %c0_11 = arith.constant 0 : index
    %c0_12 = arith.constant 0 : index
    %7 = vector.load %arg6[%c0_11, %c0_12] : memref<128x128xf32, #tpu.memory_space<vmem>>, vector<128x128xf32>
    %8 = tpu.concatenate %1, %3 in 1 : vector<256x128xf32>, vector<256x128xf32> -> vector<256x256xf32>
    %cst = arith.constant dense<0.000000e+00> : vector<256x256xf32>
    %9 = tpu.matmul %8, %4, %cst {dimension_numbers = #tpu.dot_dimension_numbers<[1], [0], [0], [1], [0, 0, 1, 1], [], []>} : vector<256x256xf32>, vector<256x256xf32>, vector<256x256xf32> -> vector<256x256xf32>
    %10 = vector.extract_strided_slice %9 {offsets = [0, 0], sizes = [256, 128], strides = [1, 1]} : vector<256x256xf32> to vector<256x128xf32>
    %11 = vector.extract_strided_slice %9 {offsets = [0, 128], sizes = [256, 128], strides = [1, 1]} : vector<256x256xf32> to vector<256x128xf32>
    %12 = vector.extract_strided_slice %10 {offsets = [0, 0], sizes = [128, 128], strides = [1, 1]} : vector<256x128xf32> to vector<128x128xf32>
    %13 = tpu.transpose %12, [1, 0] : vector<128x128xf32> -> vector<128x128xf32>
    %14 = vector.extract_strided_slice %10 {offsets = [128, 0], sizes = [128, 128], strides = [1, 1]} : vector<256x128xf32> to vector<128x128xf32>
    %15 = tpu.transpose %14, [1, 0] : vector<128x128xf32> -> vector<128x128xf32>
    %16 = tpu.concatenate %13, %15 in 0 : vector<128x128xf32>, vector<128x128xf32> -> vector<256x128xf32>
    %17 = vector.extract_strided_slice %11 {offsets = [0, 0], sizes = [128, 128], strides = [1, 1]} : vector<256x128xf32> to vector<128x128xf32>
    %18 = tpu.transpose %17, [1, 0] : vector<128x128xf32> -> vector<128x128xf32>
    %19 = vector.extract_strided_slice %11 {offsets = [128, 0], sizes = [128, 128], strides = [1, 1]} : vector<256x128xf32> to vector<128x128xf32>
    %20 = tpu.transpose %19, [1, 0] : vector<128x128xf32> -> vector<128x128xf32>
    %21 = tpu.concatenate %18, %20 in 0 : vector<128x128xf32>, vector<128x128xf32> -> vector<256x128xf32>
    %22 = tpu.concatenate %16, %21 in 1 : vector<256x128xf32>, vector<256x128xf32> -> vector<256x256xf32>
    %cst_13 = arith.constant dense<0.000000e+00> : vector<256x256xf32>
    %23 = tpu.matmul %22, %4, %cst_13 {dimension_numbers = #tpu.dot_dimension_numbers<[1], [0], [0], [1], [0, 0, 1, 1], [], []>} : vector<256x256xf32>, vector<256x256xf32>, vector<256x256xf32> -> vector<256x256xf32>
    %24 = vector.extract_strided_slice %23 {offsets = [0, 0], sizes = [256, 128], strides = [1, 1]} : vector<256x256xf32> to vector<256x128xf32>
    %25 = vector.extract_strided_slice %23 {offsets = [0, 128], sizes = [256, 128], strides = [1, 1]} : vector<256x256xf32> to vector<256x128xf32>
    %26 = vector.extract_strided_slice %24 {offsets = [0, 0], sizes = [128, 128], strides = [1, 1]} : vector<256x128xf32> to vector<128x128xf32>
    %27 = vector.extract_strided_slice %25 {offsets = [0, 0], sizes = [128, 128], strides = [1, 1]} : vector<256x128xf32> to vector<128x128xf32>
    %28 = arith.mulf %6, %26 : vector<128x128xf32>
    %29 = arith.mulf %7, %27 : vector<128x128xf32>
    %30 = arith.subf %28, %29 : vector<128x128xf32>
    %31 = arith.mulf %6, %27 : vector<128x128xf32>
    %32 = arith.mulf %7, %26 : vector<128x128xf32>
    %33 = arith.addf %31, %32 : vector<128x128xf32>
    %34 = vector.extract_strided_slice %24 {offsets = [128, 0], sizes = [128, 128], strides = [1, 1]} : vector<256x128xf32> to vector<128x128xf32>
    %35 = vector.extract_strided_slice %25 {offsets = [128, 0], sizes = [128, 128], strides = [1, 1]} : vector<256x128xf32> to vector<128x128xf32>
    %36 = arith.mulf %6, %34 : vector<128x128xf32>
    %37 = arith.mulf %7, %35 : vector<128x128xf32>
    %38 = arith.subf %36, %37 : vector<128x128xf32>
    %39 = arith.mulf %6, %35 : vector<128x128xf32>
    %40 = arith.mulf %7, %34 : vector<128x128xf32>
    %41 = arith.addf %39, %40 : vector<128x128xf32>
    %42 = tpu.concatenate %30, %38 in 0 : vector<128x128xf32>, vector<128x128xf32> -> vector<256x128xf32>
    %43 = tpu.concatenate %33, %41 in 0 : vector<128x128xf32>, vector<128x128xf32> -> vector<256x128xf32>
    %44 = tpu.concatenate %42, %43 in 1 : vector<256x128xf32>, vector<256x128xf32> -> vector<256x256xf32>
    %cst_14 = arith.constant dense<0.000000e+00> : vector<256x256xf32>
    %45 = tpu.matmul %44, %5, %cst_14 {dimension_numbers = #tpu.dot_dimension_numbers<[1], [0], [0], [1], [0, 0, 1, 1], [], []>} : vector<256x256xf32>, vector<256x256xf32>, vector<256x256xf32> -> vector<256x256xf32>
    %46 = vector.extract_strided_slice %45 {offsets = [0, 0], sizes = [256, 128], strides = [1, 1]} : vector<256x256xf32> to vector<256x128xf32>
    %47 = vector.extract_strided_slice %45 {offsets = [0, 128], sizes = [256, 128], strides = [1, 1]} : vector<256x256xf32> to vector<256x128xf32>
    %48 = vector.extract_strided_slice %46 {offsets = [0, 0], sizes = [128, 128], strides = [1, 1]} : vector<256x128xf32> to vector<128x128xf32>
    %49 = tpu.transpose %48, [1, 0] : vector<128x128xf32> -> vector<128x128xf32>
    %50 = vector.extract_strided_slice %46 {offsets = [128, 0], sizes = [128, 128], strides = [1, 1]} : vector<256x128xf32> to vector<128x128xf32>
    %51 = tpu.transpose %50, [1, 0] : vector<128x128xf32> -> vector<128x128xf32>
    %52 = tpu.concatenate %49, %51 in 0 : vector<128x128xf32>, vector<128x128xf32> -> vector<256x128xf32>
    %53 = vector.extract_strided_slice %47 {offsets = [0, 0], sizes = [128, 128], strides = [1, 1]} : vector<256x128xf32> to vector<128x128xf32>
    %54 = tpu.transpose %53, [1, 0] : vector<128x128xf32> -> vector<128x128xf32>
    %55 = vector.extract_strided_slice %47 {offsets = [128, 0], sizes = [128, 128], strides = [1, 1]} : vector<256x128xf32> to vector<128x128xf32>
    %56 = tpu.transpose %55, [1, 0] : vector<128x128xf32> -> vector<128x128xf32>
    %57 = tpu.concatenate %54, %56 in 0 : vector<128x128xf32>, vector<128x128xf32> -> vector<256x128xf32>
    %58 = tpu.concatenate %52, %57 in 1 : vector<256x128xf32>, vector<256x128xf32> -> vector<256x256xf32>
    %cst_15 = arith.constant dense<0.000000e+00> : vector<256x256xf32>
    %59 = tpu.matmul %58, %5, %cst_15 {dimension_numbers = #tpu.dot_dimension_numbers<[1], [0], [0], [1], [0, 0, 1, 1], [], []>} : vector<256x256xf32>, vector<256x256xf32>, vector<256x256xf32> -> vector<256x256xf32>
    %60 = vector.extract_strided_slice %59 {offsets = [0, 0], sizes = [256, 128], strides = [1, 1]} : vector<256x256xf32> to vector<256x128xf32>
    %61 = vector.extract_strided_slice %59 {offsets = [0, 128], sizes = [256, 128], strides = [1, 1]} : vector<256x256xf32> to vector<256x128xf32>
    %62 = vector.shape_cast %60 : vector<256x128xf32> to vector<2x128x128xf32>
    %c0_16 = arith.constant 0 : index
    %c0_17 = arith.constant 0 : index
    %c0_18 = arith.constant 0 : index
    %63 = vector.load %arg7[%c0_16, %c0_17, %c0_18] : memref<2x128x128xf32, #tpu.memory_space<vmem>>, vector<2x128x128xf32>
    tpu.vector_store %arg7[%c0_16, %c0_17, %c0_18], %62 {strides = array<i32>} : memref<2x128x128xf32, #tpu.memory_space<vmem>>, vector<2x128x128xf32>,
    %64 = vector.shape_cast %61 : vector<256x128xf32> to vector<2x128x128xf32>
    %c0_19 = arith.constant 0 : index
    %c0_20 = arith.constant 0 : index
    %c0_21 = arith.constant 0 : index
    %65 = vector.load %arg8[%c0_19, %c0_20, %c0_21] : memref<2x128x128xf32, #tpu.memory_space<vmem>>, vector<2x128x128xf32>
    tpu.vector_store %arg8[%c0_19, %c0_20, %c0_21], %64 {strides = array<i32>} : memref<2x128x128xf32, #tpu.memory_space<vmem>>, vector<2x128x128xf32>,
    return
  }
  func.func @transform_0(%arg0: i32) -> (i32, i32, i32) {
    %c0_i32 = arith.constant 0 : i32
    %c0_i32_0 = arith.constant 0 : i32
    %c0_i32_1 = arith.constant 0 : i32
    return %arg0, %c0_i32, %c0_i32_0 : i32, i32, i32
  }
  func.func @transform_1(%arg0: i32) -> (i32, i32, i32) {
    %c0_i32 = arith.constant 0 : i32
    %c0_i32_0 = arith.constant 0 : i32
    %c0_i32_1 = arith.constant 0 : i32
    return %arg0, %c0_i32, %c0_i32_0 : i32, i32, i32
  }
  func.func @transform_2(%arg0: i32) -> (i32, i32) {
    %c0_i32 = arith.constant 0 : i32
    %c0_i32_0 = arith.constant 0 : i32
    %c0_i32_1 = arith.constant 0 : i32
    return %c0_i32, %c0_i32_0 : i32, i32
  }
  func.func @transform_3(%arg0: i32) -> (i32, i32) {
    %c0_i32 = arith.constant 0 : i32
    %c0_i32_0 = arith.constant 0 : i32
    %c0_i32_1 = arith.constant 0 : i32
    return %c0_i32, %c0_i32_0 : i32, i32
  }
  func.func @transform_4(%arg0: i32) -> (i32, i32) {
    %c0_i32 = arith.constant 0 : i32
    %c0_i32_0 = arith.constant 0 : i32
    %c0_i32_1 = arith.constant 0 : i32
    return %c0_i32, %c0_i32_0 : i32, i32
  }
  func.func @transform_5(%arg0: i32) -> (i32, i32) {
    %c0_i32 = arith.constant 0 : i32
    %c0_i32_0 = arith.constant 0 : i32
    %c0_i32_1 = arith.constant 0 : i32
    return %c0_i32, %c0_i32_0 : i32, i32
  }
  func.func @transform_6(%arg0: i32) -> (i32, i32, i32) {
    %c0_i32 = arith.constant 0 : i32
    %c0_i32_0 = arith.constant 0 : i32
    %c0_i32_1 = arith.constant 0 : i32
    return %arg0, %c0_i32, %c0_i32_0 : i32, i32, i32
  }
  func.func @transform_7(%arg0: i32) -> (i32, i32, i32) {
    %c0_i32 = arith.constant 0 : i32
    %c0_i32_0 = arith.constant 0 : i32
    %c0_i32_1 = arith.constant 0 : i32
    return %arg0, %c0_i32, %c0_i32_0 : i32, i32, i32
  }
}

</mosaic_0001>

<bundles_post_ra>
// kernel: tpu_custom_call.1
= control target key start
LH: loop header
LB: loop body
LE: loop exit
PB: predicated region body
PF: predicated region fallthrough
CT: control target
= control target key end

     0   :  { %s4378_s0 = inlined_call_operand.hbm [shape: f32[4,128,128], index: 0, kind: input, shape index: {}]   ;;  %s4379_s1 = inlined_call_operand.hbm [shape: f32[4,128,128], index: 1, kind: input, shape index: {}]   ;;  %s4380_s2 = inlined_call_operand.hbm [shape: f32[256,256], index: 2, kind: input, shape index: {}]   ;;  %s4381_s3 = inlined_call_operand.hbm [shape: f32[256,256], index: 3, kind: input, shape index: {}]   ;;  %s4382_s4 = inlined_call_operand.hbm [shape: f32[128,128], index: 4, kind: input, shape index: {}]   ;;  %s4383_s5 = inlined_call_operand.hbm [shape: f32[128,128], index: 5, kind: input, shape index: {}]   ;;  %s4384_s6 = inlined_call_operand.hbm [shape: f32[4,128,128], index: 6, kind: output, shape index: {0}]   ;;  %s4385_s7 = inlined_call_operand.hbm [shape: f32[4,128,128], index: 7, kind: output, shape index: {1}]  }
   0x1   :  { %4394 = sst [smem:[#allocation24_spill]] %s4378_s0 }
   0x2   :  { %4395 = sst [smem:[#allocation25_spill]] %s4380_s2 }
   0x3   :  { %4396 = sst [smem:[#allocation26_spill]] %s4381_s3 }
   0x4   :  { %13 = vsyncpa [#allocation3], 0 }
   0x5   :  { %15 = vsyncpa [#allocation3 + $0x1], 0 }
   0x6   :  { %16 = vsyncpa [#allocation6], 0 }
   0x7   :  { %18 = vsyncpa [#allocation6 + $0x1], 0 }
   0x8   :  { %19 = vsyncpa [#allocation9], 0 }
   0x9   :  { %20 = vsyncpa [#allocation12], 0 }
   0xa   :  { %21 = vsyncpa [#allocation4], 0 }
   0xb   :  { %23 = vsyncpa [#allocation4 + $0x1], 0 }
   0xc   :  { %24 = vsyncpa [#allocation15], 0 }
   0xd   :  { %26 = vsyncpa [#allocation15 + $0x1], 0  ;;  %s3570_s24 = smov 0   ;;  %s3572_s25 = smov 0  }
   0xe   :  { %s3574_s26 = smov 0   ;;  %s3576_s27 = smov 0  }
   0xf LB: > { %s3591_s28 = sadd.s32 4294967295, %s3514_s27   ;;  %s2379_s29 = sadd.s32 4294967294, %s3514_s27   ;;  %s3514_s27 = sphi %s3576_s27, %s4425_s27   ;;  %s3510_s26 = sphi %s3574_s26, %s4424_s26   ;;  %s3506_s25 = sphi %s3572_s25, %s4423_s25   ;;  %s3502_s24 = sphi %s3570_s24, %s4422_s24  }
  0x10   : > { %p52_p0 = scmp.ne.s32.totalorder %s3506_s25, %s3502_s24  ;;  %p4386_p1 = scmp.eq.s32.totalorder %s3591_s28, 0 }
  0x11   : > { %p192_p3 = scmp.eq.s32.totalorder %s2379_s29, 1  ;;  %p2380_p5 = scmp.ge.s32.totalorder %s3514_s27, 1 }
  0x12   : > { %p3600_p4 = por %p4386_p1, %p52_p0  ;;  %p225_p7 = scmp.lt.s32.totalorder %s3514_s27, 3 }
  0x13   : > { %p3605_p6 = por %p192_p3, %p52_p0  ;;  %s3516_s10 = smov [#allocation7]  }
  0x14   : > { %s4397_s30 = scalar_select %p3600_p4, 1, 0 }
  0x15   : > { %s4398_s8 = scalar_select %p3605_p6, 1, 0 }
  0x16   : > { %p3610_p8 = pnand %p2380_p5, %p225_p7  ;;  %s237_s11 = sshll.u32 %s3516_s10, 4  ;;  %s3614_s11 = int_to_ptr.vmem [resolvable:$true] %s237_s11 }
  0x17   : > { %4399 = sst [smem:[#allocation23_spill]] %s4398_s8  ;;  %s3517_s13 = smov [#allocation8]  }
  0x18   : > { %s4400_s9 = scalar_select %p3610_p8, 1, 0 }
  0x19   : > { %p2701_p9 = pneg %p3610_p8  ;;  %s250_s14 = sshll.u32 %s3517_s13, 4  ;;  %s3625_s14 = int_to_ptr.vmem [resolvable:$true] %s250_s14 }
  0x1a   : > { %s3518_s15 = smov [#allocation10]   ;;  %s4402_s2 = sld [smem:[#allocation25_spill]] }
  0x1b   : > { %p3621_p11 = pnand %p2701_p9, %p4386_p1  ;;  %s3627_s16 = sshll.u32 %s3518_s15, 4  ;;  %s264_s16 = int_to_ptr.vmem [resolvable:$true] %s3627_s16 }
  0x1d   : > { %p3637_p13 = pneg %p3621_p11 }
  0x20   : > { %s3228_s19 = scalar_lea.hbm %s4402_s2, 8192 }
  0x21   : > { %p3229_p12 = scmp.ne.s32.totalorder %s4402_s2, %s3228_s19  ;;  %p3235_p5 = scmp.lt.u32.totalorder %s3228_s19, %s4402_s2 }
  0x23   : > { %p3231_p0 = pnand %p3637_p13, %p3229_p12 }
  0x25   : > { %p3232_p3 = pneg %p3231_p0 }
  0x27   : > { %p3237_p7 = pnand %p3235_p5, %p3232_p3 }
  0x29   : > { %3240 = shalt.err (!%p3237_p7)
}
  0x2a   : > { %s3241_s10 = scalar_lea.vmem %s3614_s11, 8192  ;;  %p3249_p2 = scmp.lt.s32.totalorder %s3614_s11, %s3614_s11 }
  0x2b   : > { %p3242_p9 = scmp.ne.s32.totalorder %s3614_s11, %s3241_s10  ;;  %p3250_p6 = scmp.lt.s32.totalorder %s3241_s10, %s3241_s10 }
  0x2d   : > { %p3244_p10 = pnand %p3242_p9, %p3637_p13  ;;  %p3251_p12 = por %p3250_p6, %p3249_p2 }
  0x2f   : > { %p3245_p1 = pneg %p3244_p10 }
  0x31   : > { %p3252_p0 = pnand %p3251_p12, %p3245_p1 }
  0x33   : > { %3255 = shalt.err (!%p3252_p0)
}
  0x34   : > { %s3519_s13 = smov 256   ;;  %s3520_s15 = smov 16  }
  0x35   : > { %2704 = dma.hbm_to_vmem [thread:$0]  (!%p3621_p11), %s4402_s2, 8192, %s3614_s11, [#allocation6], %s3519_s13, %s3519_s13, %s3520_s15  }
  0x36   : > { %s4404_s3 = sld [smem:[#allocation26_spill]] }
  0x3c   : > { %s3256_s21 = scalar_lea.hbm %s4404_s3, 8192 }
  0x3d   : > { %p3257_p2 = scmp.ne.s32.totalorder %s4404_s3, %s3256_s21  ;;  %p3263_p10 = scmp.lt.u32.totalorder %s3256_s21, %s4404_s3 }
  0x3f   : > { %p3259_p1 = pnand %p3257_p2, %p3637_p13 }
  0x41   : > { %p3260_p6 = pneg %p3259_p1 }
  0x43   : > { %p3265_p3 = pnand %p3263_p10, %p3260_p6 }
  0x45   : > { %3268 = shalt.err (!%p3265_p3)
}
  0x46   : > { %s3269_s11 = scalar_lea.vmem %s3625_s14, 8192  ;;  %p3277_p12 = scmp.lt.s32.totalorder %s3625_s14, %s3625_s14 }
  0x47   : > { %p3270_p5 = scmp.ne.s32.totalorder %s3625_s14, %s3269_s11  ;;  %p3278_p0 = scmp.lt.s32.totalorder %s3269_s11, %s3269_s11 }
  0x49   : > { %p3272_p7 = pnand %p3270_p5, %p3637_p13  ;;  %p3279_p2 = por %p3278_p0, %p3277_p12 }
  0x4b   : > { %p3273_p9 = pneg %p3272_p7 }
  0x4d   : > { %p3280_p1 = pnand %p3279_p2, %p3273_p9 }
  0x4f   : > { %3283 = shalt.err (!%p3280_p1)
}
  0x50   : > { %2707 = dma.hbm_to_vmem [thread:$0]  (!%p3621_p11), %s4404_s3, 8192, %s3625_s14, [#allocation9], %s3519_s13, %s3519_s13, %s3520_s15  }
  0x51   : > { %s3284_s20 = scalar_lea.hbm %s4382_s4, 2048 }
  0x52   : > { %p3285_p6 = scmp.ne.s32.totalorder %s4382_s4, %s3284_s20  ;;  %p3291_p5 = scmp.lt.u32.totalorder %s3284_s20, %s4382_s4 }
  0x54   : > { %p3287_p10 = pnand %p3285_p6, %p3637_p13 }
  0x56   : > { %p3288_p3 = pneg %p3287_p10 }
  0x58   : > { %p3293_p7 = pnand %p3291_p5, %p3288_p3 }
  0x5a   : > { %3296 = shalt.err (!%p3293_p7)
}
  0x5b   : > { %s3297_s11 = scalar_lea.vmem %s264_s16, 2048  ;;  %p3305_p2 = scmp.lt.s32.totalorder %s264_s16, %s264_s16 }
  0x5c   : > { %p3298_p9 = scmp.ne.s32.totalorder %s264_s16, %s3297_s11  ;;  %p3306_p1 = scmp.lt.s32.totalorder %s3297_s11, %s3297_s11 }
  0x5e   : > { %p3300_p12 = pnand %p3298_p9, %p3637_p13  ;;  %p3307_p4 = por %p3306_p1, %p3305_p2 }
  0x60   : > { %p3301_p0 = pneg %p3300_p12 }
  0x62   : > { %p3308_p8 = pnand %p3307_p4, %p3301_p0 }
  0x64   : > { %3311 = shalt.err (!%p3308_p8)
}
  0x65   : > { %s4390_s14 = smov 128   ;;  %s4392_s13 = smov 8  }
  0x66   : > { %2710 = dma.hbm_to_vmem [thread:$0]  (!%p3621_p11), %s4382_s4, 2048, %s264_s16, [#allocation9], %s4390_s14, %s4390_s14, %s4392_s13  }
  0x67   : > { %s3523_s17 = smov [#allocation11]   ;;  %s3312_s21 = scalar_lea.hbm %s4383_s5, 2048 }
  0x68   : > { %s276_s18 = sshll.u32 %s3523_s17, 4  ;;  %p3313_p4 = scmp.ne.s32.totalorder %s4383_s5, %s3312_s21  ;;  %s277_s18 = int_to_ptr.vmem [resolvable:$true] %s276_s18 }
  0x69   : > { %p3319_p10 = scmp.lt.u32.totalorder %s3312_s21, %s4383_s5 }
  0x6a   : > { %p3315_p8 = pnand %p3313_p4, %p3637_p13 }
  0x6c   : > { %p3316_p6 = pneg %p3315_p8 }
  0x6e   : > { %p3321_p3 = pnand %p3319_p10, %p3316_p6 }
  0x70   : > { %3324 = shalt.err (!%p3321_p3)
}
  0x71   : > { %s3325_s16 = scalar_lea.vmem %s277_s18, 2048  ;;  %p3333_p12 = scmp.lt.s32.totalorder %s277_s18, %s277_s18 }
  0x72   : > { %p3326_p5 = scmp.ne.s32.totalorder %s277_s18, %s3325_s16  ;;  %p3334_p0 = scmp.lt.s32.totalorder %s3325_s16, %s3325_s16 }
  0x74   : > { %p3328_p7 = pnand %p3326_p5, %p3637_p13  ;;  %p3335_p2 = por %p3334_p0, %p3333_p12 }
  0x76   : > { %p3329_p9 = pneg %p3328_p7 }
  0x78   : > { %p3336_p1 = pnand %p3335_p2, %p3329_p9 }
  0x7a   : > { %3339 = shalt.err (!%p3336_p1)
}
  0x7b   : > { %2713 = dma.hbm_to_vmem [thread:$0]  (!%p3621_p11), %s4383_s5, 2048, %s277_s18, [#allocation12], %s4390_s14, %s4390_s14, %s4392_s13  }
  0x7c   : > { %s3725_s22 = sadd.s32 1, %s3514_s27   ;;  %s39_s12 = sadd.s32 1, %s3510_s26 }
  0x7d   : > { %s36_s17 = ssub.s32 %s3514_s27, %s3725_s22  ;;  %p46_p13 = scmp.ne.s32.totalorder %s3510_s26, %s3506_s25 }
  0x7e   : > { %p37_p4 = scmp.eq.s32.totalorder %s36_s17, 0  ;;  %p47_p8 = scmp.eq.s32.totalorder %s3514_s27, 0 }
  0x7f   : > { %p4405_p6 = scmp.eq.s32.totalorder %s3591_s28, 1  ;;  %p2732_p3 = scmp.lt.s32.totalorder %s3514_s27, 2 }
  0x80   : > { %s3741_s20 = scalar_select %p37_p4, %s3510_s26, %s39_s12  }
  0x81   : > { %p3735_p10 = por %p4405_p6, %p46_p13  ;;  %p48_p5 = por %p47_p8, %p46_p13 }
  0x82   : > { %s290_s21 = sand.u32 1, %s3510_s26   ;;  %s2414_s18 = sshll.u32 %s3514_s27, 12 }
  0x83   : > { %s2386_s23 = sshll.u32 %s290_s21, 8  ;;  %s4407_s0 = sld [smem:[#allocation24_spill]] }
  0x84   : > { %s294_s16 = scalar_lea.vmem [#allocation2], %s2386_s23  ;;  %p3752_p11 = pnand %p2732_p3, %p48_p5 }
  0x85   : > { %s302_s15 = sshll.u32 %s294_s16, 4  ;;  %s3759_s29 = scalar_lea.hbm %s4379_s1, %s2414_s18  ;;  %s3750_s15 = int_to_ptr.vmem [resolvable:$true] %s302_s15 }
  0x86   : > { %s316_s10 = scalar_lea.vmem [#allocation5], %s2386_s23  ;;  %s3763_s13 = scalar_lea.sflag [#allocation3], %s290_s21 }
  0x87   : > { %s3761_s14 = sshll.u32 %s316_s10, 4  ;;  %p3342_p9 = pneg %p3752_p11  ;;  %s3795_s14 = int_to_ptr.vmem [resolvable:$true] %s3761_s14 }
  0x89   : > { %s3748_s11 = scalar_lea.hbm %s4407_s0, %s2414_s18  ;;  %s3345_s12 = scalar_lea.hbm %s4407_s0, 8192 }
  0x8a   : > { %s3340_s16 = scalar_lea.hbm %s3748_s11, 4096  ;;  %p3346_p2 = scmp.lt.u32.totalorder %s3748_s11, %s4407_s0 }
  0x8b   : > { %p3341_p7 = scmp.ne.s32.totalorder %s3748_s11, %s3340_s16  ;;  %p3347_p1 = scmp.lt.u32.totalorder %s3345_s12, %s3340_s16 }
  0x8c   : > { %p3349_p4 = scmp.lt.u32.totalorder %s3340_s16, %s3748_s11 }
  0x8d   : > { %p3343_p12 = pnand %p3342_p9, %p3341_p7  ;;  %p3348_p13 = por %p3347_p1, %p3346_p2 }
  0x8f   : > { %p3344_p0 = pneg %p3343_p12  ;;  %p3350_p8 = por %p3349_p4, %p3348_p13 }
  0x91   : > { %p3351_p6 = pnand %p3350_p8, %p3344_p0 }
  0x93   : > { %3354 = shalt.err (!%p3351_p6)
}
  0x94   : > { %s3355_s21 = scalar_lea.vmem %s3750_s15, 4096  ;;  %s3524_s2 = smov [#allocation2]  }
  0x95   : > { %p3356_p3 = scmp.ne.s32.totalorder %s3750_s15, %s3355_s21  ;;  %s3360_s3 = sshll.u32 %s3524_s2, 4  ;;  %s3361_s3 = int_to_ptr.vmem [resolvable:$false] %s3360_s3 }
  0x96   : > { %s3362_s23 = scalar_lea.vmem %s3361_s3, 8192  ;;  %p3363_p12 = scmp.lt.s32.totalorder %s3750_s15, %s3361_s3 }
  0x97   : > { %p3358_p5 = pnand %p3356_p3, %p3342_p9  ;;  %p3364_p2 = scmp.lt.s32.totalorder %s3362_s23, %s3355_s21 }
  0x99   : > { %p3359_p7 = pneg %p3358_p5  ;;  %p3365_p1 = por %p3364_p2, %p3363_p12 }
  0x9b   : > { %p3366_p13 = pnand %p3365_p1, %p3359_p7 }
  0x9d   : > { %3369 = shalt.err (!%p3366_p13)
}
  0x9e   : > { %s4409_s10 = smov 8   ;;  %s4410_s16 = smov 128  }
  0x9f   : > { %2717 = dma.hbm_to_vmem [thread:$0]  (!%p3752_p11), %s3748_s11, 4096, %s3750_s15, %s3763_s13, %s4410_s16, %s4410_s16, %s4409_s10  }
  0xa0   : > { %s312_s12 = sand.u32 1, %s3514_s27   ;;  %s3370_s18 = scalar_lea.hbm %s3759_s29, 4096 }
  0xa1   : > { %s3798_s17 = scalar_lea.sflag [#allocation6], %s312_s12  ;;  %p3371_p0 = scmp.ne.s32.totalorder %s3759_s29, %s3370_s18 }
  0xa2   : > { %s3375_s3 = scalar_lea.hbm %s4379_s1, 8192  ;;  %p3376_p6 = scmp.lt.u32.totalorder %s3759_s29, %s4379_s1 }
  0xa3   : > { %p3373_p4 = pnand %p3371_p0, %p3342_p9  ;;  %p3377_p3 = scmp.lt.u32.totalorder %s3375_s3, %s3370_s18 }
  0xa4   : > { %p3379_p7 = scmp.lt.u32.totalorder %s3370_s18, %s3759_s29 }
  0xa5   : > { %p3374_p8 = pneg %p3373_p4  ;;  %p3378_p5 = por %p3377_p3, %p3376_p6 }
  0xa7   : > { %p3380_p12 = por %p3379_p7, %p3378_p5 }
  0xa9   : > { %p3381_p2 = pnand %p3380_p12, %p3374_p8 }
  0xab   : > { %3384 = shalt.err (!%p3381_p2)
}
  0xac   : > { %s3385_s13 = scalar_lea.vmem %s3795_s14, 4096  ;;  %s3525_s11 = smov [#allocation5]  }
  0xad   : > { %p3386_p1 = scmp.ne.s32.totalorder %s3795_s14, %s3385_s13  ;;  %s3390_s15 = sshll.u32 %s3525_s11, 4  ;;  %s3391_s15 = int_to_ptr.vmem [resolvable:$false] %s3390_s15 }
  0xae   : > { %s3392_s0 = scalar_lea.vmem %s3391_s15, 8192  ;;  %p3393_p4 = scmp.lt.s32.totalorder %s3795_s14, %s3391_s15 }
  0xaf   : > { %p3388_p13 = pnand %p3386_p1, %p3342_p9  ;;  %p3394_p6 = scmp.lt.s32.totalorder %s3392_s0, %s3385_s13 }
  0xb1   : > { %p3389_p0 = pneg %p3388_p13  ;;  %p3395_p3 = por %p3394_p6, %p3393_p4 }
  0xb3   : > { %p3396_p5 = pnand %p3395_p3, %p3389_p0 }
  0xb5   : > { %3399 = shalt.err (!%p3396_p5)
}
  0xb6   : > { %2720 = dma.hbm_to_vmem [thread:$0]  (!%p3752_p11), %s3759_s29, 4096, %s3795_s14, %s3798_s17, %s4410_s16, %s4410_s16, %s4409_s10  }
  0xb7   : > { %p4411_p9 = scmp.ne.s32.totalorder %s4400_s9, 0 }
  0xb8   : > { %s3830_s12 = sand.u32 (!%p4411_p9), 1, %s3506_s25   ;;  %p4412_p8 = scmp.ne.s32.totalorder (!%p4411_p9), %s4397_s30, 0 }
  0xb9   : > { %336 = sbr.rel (%p4411_p9) target bundleno = 1560 (0x618), region = 44  ;;  %s3833_s18 = sshll.u32 (!%p4411_p9), %s3830_s12, 8 }
  0xba   : > { %s339_s8 = scalar_lea.sflag (!%p4411_p9), [#allocation3], %s3830_s12  ;;  %s3837_s21 = scalar_lea.vmem (!%p4411_p9), [#allocation2], %s3833_s18 }
  0xc0   : > { %3473 = dma.done.wait (%p4412_p8), %s339_s8, 4096  }
  0xc1   : > { %3475 = vsyncadd (%p4412_p8), %s339_s8, 4294963200  ;;  %s347_s9 = sand.u32 1, %s3591_s28   ;;  %s3845_s29 = scalar_lea.vmem [#allocation5], %s3833_s18 }
  0xc2   : > { %s348_s14 = scalar_lea.sflag [#allocation6], %s347_s9 }
  0xc3   : > { %3477 = dma.done.wait (%p4412_p8), %s348_s14, 4096  }
  0xc4   : > { %3479 = vsyncadd (%p4412_p8), %s348_s14, 4294963200  ;;  %p4413_p11 = scmp.eq.s32.totalorder %s3591_s28, 0 }
  0xc6   : > { %3481 = dma.done.wait (%p4413_p11), [#allocation6], 8192   ;;  %p4414_p7 = pmov %p4413_p11 }
  0xc8   : > { %3483 = vsyncadd (%p4414_p7), [#allocation6], 4294959104  ;;  %p4415_p12 = pmov %p4414_p7 }
  0xc9   : > { %p4416_p2 = pmov %p4414_p7 }
  0xca   : > { %3485 = dma.done.wait (%p4415_p12), [#allocation9], 10240  }
  0xcb   : > { %3487 = vsyncadd (%p4416_p2), [#allocation9], 4294957056  ;;  %p4417_p1 = pmov %p4416_p2 }
  0xcd   : > { %3489 = dma.done.wait (%p4417_p1), [#allocation12], 2048   ;;  %p4418_p13 = pmov %p4417_p1 }
  0xce   : > { %v477_v0 = vld [vmem:[#allocation7 + $0x8] sm:$0xff]  ;;  %v479_v1 = vld [vmem:[#allocation7 + $0x18] sm:$0xff]  ;;  %v476_v2 = vld [vmem:[#allocation7] sm:$0xff]  ;;  %s4220_s30 = scalar_lea.vmem [#allocation13], %s3833_s18  ;;  %s4224_s10 = scalar_lea.vmem [#allocation14], %s3833_s18 }
  0xcf   : > { %3491 = vsyncadd (%p4418_p13), [#allocation12], 4294965248  ;;  %v2421_v3 = vpack.c.bf16 %v479_v1, %v477_v0  ;;  %v478_v4 = vld [vmem:[#allocation7 + $0x10] sm:$0xff]  ;;  %v481_v5 = vld [vmem:[#allocation7 + $0x28] sm:$0xff]  ;;  %s2418_s16 = sshll.u32 %s3591_s28, 12  ;;  %s2196_s17 = sshll.u32 %s4220_s30, 4  ;;  %s4295_s17 = int_to_ptr.vmem [resolvable:$true] %s2196_s17 }
  0xd0   : > { %v483_v6 = vld [vmem:[#allocation7 + $0x38] sm:$0xff]  ;;  %v2423_v7 = vpack.c.bf16 %v478_v4, %v476_v2  ;;  %v480_v9 = vld [vmem:[#allocation7 + $0x20] sm:$0xff]  ;;  %v482_v10 = vld [vmem:[#allocation7 + $0x30] sm:$0xff]  ;;  %s4291_s23 = scalar_lea.hbm %s4384_s6, %s2418_s16  ;;  %s2213_s13 = sshll.u32 %s4224_s10, 4  ;;  %s4302_s13 = int_to_ptr.vmem [resolvable:$true] %s2213_s13 }
  0xd1   : > { %v2425_v8 = vpack.c.bf16 %v483_v6, %v481_v5  ;;  %v485_v11 = vld [vmem:[#allocation7 + $0x48] sm:$0xff]  ;;  %2422 = vmatprep.subr.bf16.mxu0 %v2421_v3  ;;  %v487_v12 = vld [vmem:[#allocation7 + $0x58] sm:$0xff]  ;;  %2486 = vmatprep.subr.bf16.mxu1 %v2421_v3  ;;  %v2427_v13 = vpack.c.bf16 %v482_v10, %v480_v9  ;;  %v484_v15 = vld [vmem:[#allocation7 + $0x40] sm:$0xff]  ;;  %s4300_s15 = scalar_lea.hbm %s4385_s7, %s2418_s16  ;;  %s2177_s0 = scalar_lea.sflag [#allocation4], %s3830_s12 }
  0xd2   : > { %2424 = vmatpush1.bf16.msra.mxu0 %v2423_v7  ;;  %2488 = vmatpush1.bf16.msra.mxu1 %v2423_v7  ;;  %v2429_v14 = vpack.c.bf16 %v487_v12, %v485_v11  ;;  %v486_v16 = vld [vmem:[#allocation7 + $0x50] sm:$0xff]  ;;  %v489_v17 = vld [vmem:[#allocation7 + $0x68] sm:$0xff]  ;;  %v491_v18 = vld [vmem:[#allocation7 + $0x78] sm:$0xff]  ;;  %s3400_s18 = scalar_lea.vmem %s4295_s17, 4096  ;;  %s3526_s8 = smov [#allocation13]  }
  0xd3   : > { %2426 = vmatprep.subr.bf16.mxu0 %v2425_v8  ;;  %2490 = vmatprep.subr.bf16.mxu1 %v2425_v8  ;;  %v2431_v19 = vpack.c.bf16 %v486_v16, %v484_v15  ;;  %v2433_v20 = vpack.c.bf16 %v491_v18, %v489_v17  ;;  %v488_v21 = vld [vmem:[#allocation7 + $0x60] sm:$0xff]  ;;  %v490_v22 = vld [vmem:[#allocation7 + $0x70] sm:$0xff]  ;;  %v493_v23 = vld [vmem:[#allocation7 + $0x88] sm:$0xff]  ;;  %p3401_p0 = scmp.ne.s32.totalorder %s4295_s17, %s3400_s18 }
  0xd4   : > { %v495_v24 = vld [vmem:[#allocation7 + $0x98] sm:$0xff]  ;;  %v2435_v25 = vpack.c.bf16 %v490_v22, %v488_v21  ;;  %v492_v27 = vld [vmem:[#allocation7 + $0x80] sm:$0xff]  ;;  %v494_v28 = vld [vmem:[#allocation7 + $0x90] sm:$0xff] }
  0xd5   : > { %v2437_v26 = vpack.c.bf16 %v495_v24, %v493_v23  ;;  %v497_v29 = vld [vmem:[#allocation7 + $0xa8] sm:$0xff]  ;;  %v499_v30 = vld [vmem:[#allocation7 + $0xb8] sm:$0xff]  ;;  %v2439_v31 = vpack.c.bf16 %v494_v28, %v492_v27  ;;  %v496_v33 = vld [vmem:[#allocation7 + $0xa0] sm:$0xff]  ;;  %p3402_p4 = pnand %p3401_p0, %p3735_p10 }
  0xd6   : > { %2428 = vmatpush1.bf16.msra.mxu0 %v2427_v13  ;;  %2492 = vmatpush1.bf16.msra.mxu1 %v2427_v13  ;;  %v2441_v32 = vpack.c.bf16 %v499_v30, %v497_v29  ;;  %v498_v34 = vld [vmem:[#allocation7 + $0xb0] sm:$0xff]  ;;  %v501_v35 = vld [vmem:[#allocation7 + $0xc8] sm:$0xff]  ;;  %v503_v36 = vld [vmem:[#allocation7 + $0xd8] sm:$0xff] }
  0xd7   : > { %2430 = vmatprep.subr.bf16.mxu0 %v2429_v14  ;;  %2494 = vmatprep.subr.bf16.mxu1 %v2429_v14  ;;  %v2443_v37 = vpack.c.bf16 %v498_v34, %v496_v33  ;;  %v2445_v38 = vpack.c.bf16 %v503_v36, %v501_v35  ;;  %v500_v39 = vld [vmem:[#allocation7 + $0xc0] sm:$0xff]  ;;  %v502_v40 = vld [vmem:[#allocation7 + $0xd0] sm:$0xff]  ;;  %v505_v42 = vld [vmem:[#allocation7 + $0xe8] sm:$0xff]  ;;  %p3403_p6 = pneg %p3402_p4 }
  0xd8   : > { %v444_v41 = vld [vmem:[%s3845_s29] sm:$0xff]  ;;  %v507_v43 = vld [vmem:[#allocation7 + $0xf8] sm:$0xff]  ;;  %v2447_v44 = vpack.c.bf16 %v502_v40, %v500_v39  ;;  %v506_v47 = vld [vmem:[#allocation7 + $0xf0] sm:$0xff] }
  0xd9   : > { %700 = vmatprep.mubr.f32.mxu0 %v444_v41  ;;  %v2449_v45 = vpack.c.bf16 %v507_v43, %v505_v42  ;;  %v504_v46 = vld [vmem:[#allocation7 + $0xe0] sm:$0xff]  ;;  %v509_v48 = vld [vmem:[#allocation7 + $0x108] sm:$0xff]  ;;  %v511_v49 = vld [vmem:[#allocation7 + $0x118] sm:$0xff] }
  0xda   : > { %2432 = vmatpush1.bf16.msra.mxu0 %v2431_v19  ;;  %2496 = vmatpush1.bf16.msra.mxu1 %v2431_v19  ;;  %v2451_v50 = vpack.c.bf16 %v506_v47, %v504_v46  ;;  %v2453_v51 = vpack.c.bf16 %v511_v49, %v509_v48  ;;  %v508_v52 = vld [vmem:[#allocation7 + $0x100] sm:$0xff]  ;;  %v510_v53 = vld [vmem:[#allocation7 + $0x110] sm:$0xff]  ;;  %v513_v54 = vld [vmem:[#allocation7 + $0x128] sm:$0xff] }
  0xdb   : > { %2434 = vmatprep.subr.bf16.mxu0 %v2433_v20  ;;  %2498 = vmatprep.subr.bf16.mxu1 %v2433_v20  ;;  %v515_v55 = vld [vmem:[#allocation7 + $0x138] sm:$0xff]  ;;  %v2455_v56 = vpack.c.bf16 %v510_v53, %v508_v52  ;;  %v512_v58 = vld [vmem:[#allocation7 + $0x120] sm:$0xff]  ;;  %v514_v59 = vld [vmem:[#allocation7 + $0x130] sm:$0xff] }
  0xdc   : > { %v2457_v57 = vpack.c.bf16 %v515_v55, %v513_v54  ;;  %v517_v60 = vld [vmem:[#allocation7 + $0x148] sm:$0xff]  ;;  %v519_v61 = vld [vmem:[#allocation7 + $0x158] sm:$0xff]  ;;  %v2459_v62 = vpack.c.bf16 %v514_v59, %v512_v58  ;;  %v516_v0 = vld [vmem:[#allocation7 + $0x140] sm:$0xff] }
  0xdd   : > { %v2461_v63 = vpack.c.bf16 %v519_v61, %v517_v60  ;;  %v518_v1 = vld [vmem:[#allocation7 + $0x150] sm:$0xff]  ;;  %v521_v2 = vld [vmem:[#allocation7 + $0x168] sm:$0xff]  ;;  %v523_v3 = vld [vmem:[#allocation7 + $0x178] sm:$0xff] }
  0xde   : > { %2436 = vmatpush1.bf16.msra.mxu0 %v2435_v25  ;;  %2500 = vmatpush1.bf16.msra.mxu1 %v2435_v25  ;;  %v2463_v4 = vpack.c.bf16 %v518_v1, %v516_v0  ;;  %v2465_v5 = vpack.c.bf16 %v523_v3, %v521_v2  ;;  %v520_v6 = vld [vmem:[#allocation7 + $0x160] sm:$0xff]  ;;  %v522_v7 = vld [vmem:[#allocation7 + $0x170] sm:$0xff]  ;;  %v525_v8 = vld [vmem:[#allocation7 + $0x188] sm:$0xff] }
  0xdf   : > { %2438 = vmatprep.subr.bf16.mxu0 %v2437_v26  ;;  %2502 = vmatprep.subr.bf16.mxu1 %v2437_v26  ;;  %v527_v9 = vld [vmem:[#allocation7 + $0x198] sm:$0xff]  ;;  %v2467_v10 = vpack.c.bf16 %v522_v7, %v520_v6  ;;  %v524_v12 = vld [vmem:[#allocation7 + $0x180] sm:$0xff]  ;;  %v526_v13 = vld [vmem:[#allocation7 + $0x190] sm:$0xff] }
  0xe0   : > { %v2469_v11 = vpack.c.bf16 %v527_v9, %v525_v8  ;;  %v529_v14 = vld [vmem:[#allocation7 + $0x1a8] sm:$0xff]  ;;  %v531_v15 = vld [vmem:[#allocation7 + $0x1b8] sm:$0xff]  ;;  %v2471_v16 = vpack.c.bf16 %v526_v13, %v524_v12  ;;  %v528_v18 = vld [vmem:[#allocation7 + $0x1a0] sm:$0xff] }
  0xe1   : > { %v2473_v17 = vpack.c.bf16 %v531_v15, %v529_v14  ;;  %v530_v19 = vld [vmem:[#allocation7 + $0x1b0] sm:$0xff]  ;;  %v533_v20 = vld [vmem:[#allocation7 + $0x1c8] sm:$0xff]  ;;  %v535_v21 = vld [vmem:[#allocation7 + $0x1d8] sm:$0xff] }
  0xe2   : > { %2440 = vmatpush1.bf16.msra.mxu0 %v2439_v31  ;;  %2504 = vmatpush1.bf16.msra.mxu1 %v2439_v31  ;;  %v2475_v22 = vpack.c.bf16 %v530_v19, %v528_v18  ;;  %v2477_v23 = vpack.c.bf16 %v535_v21, %v533_v20  ;;  %v532_v24 = vld [vmem:[#allocation7 + $0x1c0] sm:$0xff]  ;;  %v534_v25 = vld [vmem:[#allocation7 + $0x1d0] sm:$0xff]  ;;  %v537_v26 = vld [vmem:[#allocation7 + $0x1e8] sm:$0xff] }
  0xe3   : > { %2442 = vmatprep.subr.bf16.mxu0 %v2441_v32  ;;  %2506 = vmatprep.subr.bf16.mxu1 %v2441_v32  ;;  %v539_v27 = vld [vmem:[#allocation7 + $0x1f8] sm:$0xff]  ;;  %v2479_v28 = vpack.c.bf16 %v534_v25, %v532_v24  ;;  %v536_v30 = vld [vmem:[#allocation7 + $0x1e0] sm:$0xff]  ;;  %v538_v31 = vld [vmem:[#allocation7 + $0x1f0] sm:$0xff] }
  0xe4   : > { %v2481_v29 = vpack.c.bf16 %v539_v27, %v537_v26  ;;  %v2483_v32 = vpack.c.bf16 %v538_v31, %v536_v30  ;;  %v412_v33 = vld [vmem:[%s3837_s21] sm:$0xff]  ;;  %v445_v34 = vld [vmem:[%s3845_s29 + $0x8] sm:$0xff]  ;;  %v446_v36 = vld [vmem:[%s3845_s29 + $0x10] sm:$0xff] }
  0xe5   : > { %v413_v35 = vld [vmem:[%s3837_s21 + $0x8] sm:$0xff]  ;;  %v415_v39 = vld [vmem:[%s3837_s21 + $0x18] sm:$0xff]  ;;  %v448_v40 = vld [vmem:[%s3845_s29 + $0x20] sm:$0xff] }
  0xe6   : > { %2444 = vmatpush1.bf16.msra.mxu0 %v2443_v37  ;;  %2508 = vmatpush1.bf16.msra.mxu1 %v2443_v37  ;;  %v414_v37 = vld [vmem:[%s3837_s21 + $0x10] sm:$0xff]  ;;  %v416_v41 = vld [vmem:[%s3837_s21 + $0x20] sm:$0xff]  ;;  %v449_v42 = vld [vmem:[%s3845_s29 + $0x28] sm:$0xff] }
  0xe7   : > { %2446 = vmatprep.subr.bf16.mxu0 %v2445_v38  ;;  %2510 = vmatprep.subr.bf16.mxu1 %v2445_v38  ;;  %v447_v38 = vld [vmem:[%s3845_s29 + $0x18] sm:$0xff]  ;;  %v417_v43 = vld [vmem:[%s3837_s21 + $0x28] sm:$0xff]  ;;  %v452_v48 = vld [vmem:[%s3845_s29 + $0x40] sm:$0xff] }
  0xe8   : > { %v451_v46 = vld [vmem:[%s3845_s29 + $0x38] sm:$0xff]  ;;  %v420_v49 = vld [vmem:[%s3837_s21 + $0x40] sm:$0xff]  ;;  %v454_v52 = vld [vmem:[%s3845_s29 + $0x50] sm:$0xff] }
  0xe9   : > { %v419_v47 = vld [vmem:[%s3837_s21 + $0x38] sm:$0xff]  ;;  %v422_v53 = vld [vmem:[%s3837_s21 + $0x50] sm:$0xff]  ;;  %v457_v58 = vld [vmem:[%s3845_s29 + $0x68] sm:$0xff] }
  0xea   : > { %2448 = vmatpush1.bf16.msra.mxu0 %v2447_v44  ;;  %2512 = vmatpush1.bf16.msra.mxu1 %v2447_v44  ;;  %v450_v44 = vld [vmem:[%s3845_s29 + $0x30] sm:$0xff]  ;;  %v455_v54 = vld [vmem:[%s3845_s29 + $0x58] sm:$0xff]  ;;  %v425_v59 = vld [vmem:[%s3837_s21 + $0x68] sm:$0xff] }
  0xeb   : > { %2450 = vmatprep.subr.bf16.mxu0 %v2449_v45  ;;  %2514 = vmatprep.subr.bf16.mxu1 %v2449_v45  ;;  %v418_v45 = vld [vmem:[%s3837_s21 + $0x30] sm:$0xff]  ;;  %v423_v55 = vld [vmem:[%s3837_s21 + $0x58] sm:$0xff]  ;;  %v460_v0 = vld [vmem:[%s3845_s29 + $0x80] sm:$0xff] }
  0xec   : > { %v458_v60 = vld [vmem:[%s3845_s29 + $0x70] sm:$0xff]  ;;  %v428_v1 = vld [vmem:[%s3837_s21 + $0x80] sm:$0xff]  ;;  %v461_v2 = vld [vmem:[%s3845_s29 + $0x88] sm:$0xff] }
  0xed   : > { %v426_v61 = vld [vmem:[%s3837_s21 + $0x70] sm:$0xff]  ;;  %v429_v3 = vld [vmem:[%s3837_s21 + $0x88] sm:$0xff]  ;;  %v463_v6 = vld [vmem:[%s3845_s29 + $0x98] sm:$0xff] }
  0xee   : > { %2452 = vmatpush1.bf16.msra.mxu0 %v2451_v50  ;;  %2516 = vmatpush1.bf16.msra.mxu1 %v2451_v50  ;;  %v453_v50 = vld [vmem:[%s3845_s29 + $0x48] sm:$0xff]  ;;  %v431_v7 = vld [vmem:[%s3837_s21 + $0x98] sm:$0xff]  ;;  %v464_v8 = vld [vmem:[%s3845_s29 + $0xa0] sm:$0xff] }
  0xef   : > { %2454 = vmatprep.subr.bf16.mxu0 %v2453_v51  ;;  %2518 = vmatprep.subr.bf16.mxu1 %v2453_v51  ;;  %v421_v51 = vld [vmem:[%s3837_s21 + $0x48] sm:$0xff]  ;;  %v432_v9 = vld [vmem:[%s3837_s21 + $0xa0] sm:$0xff]  ;;  %v466_v12 = vld [vmem:[%s3845_s29 + $0xb0] sm:$0xff] }
  0xf0   : > { %v434_v13 = vld [vmem:[%s3837_s21 + $0xb0] sm:$0xff]  ;;  %v467_v14 = vld [vmem:[%s3845_s29 + $0xb8] sm:$0xff]  ;;  %v469_v18 = vld [vmem:[%s3845_s29 + $0xc8] sm:$0xff] }
  0xf1   : > { %v435_v15 = vld [vmem:[%s3837_s21 + $0xb8] sm:$0xff]  ;;  %v437_v19 = vld [vmem:[%s3837_s21 + $0xc8] sm:$0xff]  ;;  %v470_v20 = vld [vmem:[%s3845_s29 + $0xd0] sm:$0xff] }
  0xf2   : > { %2456 = vmatpush1.bf16.msra.mxu0 %v2455_v56  ;;  %2520 = vmatpush1.bf16.msra.mxu1 %v2455_v56  ;;  %v456_v56 = vld [vmem:[%s3845_s29 + $0x60] sm:$0xff]  ;;  %v438_v21 = vld [vmem:[%s3837_s21 + $0xd0] sm:$0xff]  ;;  %v473_v26 = vld [vmem:[%s3845_s29 + $0xe8] sm:$0xff] }
  0xf3   : > { %2458 = vmatprep.subr.bf16.mxu0 %v2457_v57  ;;  %2522 = vmatprep.subr.bf16.mxu1 %v2457_v57  ;;  %v424_v57 = vld [vmem:[%s3837_s21 + $0x60] sm:$0xff]  ;;  %v441_v27 = vld [vmem:[%s3837_s21 + $0xe8] sm:$0xff]  ;;  %v475_v30 = vld [vmem:[%s3845_s29 + $0xf8] sm:$0xff] }
  0xf4   : > { %v472_v24 = vld [vmem:[%s3845_s29 + $0xe0] sm:$0xff]  ;;  %v443_v31 = vld [vmem:[%s3837_s21 + $0xf8] sm:$0xff] }
  0xf5   : > { %v440_v25 = vld [vmem:[%s3837_s21 + $0xe0] sm:$0xff] }
  0xf6   : > { %2460 = vmatpush1.bf16.msra.mxu0 %v2459_v62  ;;  %2524 = vmatpush1.bf16.msra.mxu1 %v2459_v62  ;;  %v459_v62 = vld [vmem:[%s3845_s29 + $0x78] sm:$0xff] }
  0xf7   : > { %2462 = vmatprep.subr.bf16.mxu0 %v2461_v63  ;;  %2526 = vmatprep.subr.bf16.mxu1 %v2461_v63  ;;  %v427_v63 = vld [vmem:[%s3837_s21 + $0x78] sm:$0xff] }
  0xfa   : > { %2464 = vmatpush1.bf16.msra.mxu0 %v2463_v4  ;;  %2528 = vmatpush1.bf16.msra.mxu1 %v2463_v4  ;;  %v462_v4 = vld [vmem:[%s3845_s29 + $0x90] sm:$0xff] }
  0xfb   : > { %2466 = vmatprep.subr.bf16.mxu0 %v2465_v5  ;;  %2530 = vmatprep.subr.bf16.mxu1 %v2465_v5  ;;  %v430_v5 = vld [vmem:[%s3837_s21 + $0x90] sm:$0xff] }
  0xfe   : > { %2468 = vmatpush1.bf16.msra.mxu0 %v2467_v10  ;;  %2532 = vmatpush1.bf16.msra.mxu1 %v2467_v10  ;;  %v465_v10 = vld [vmem:[%s3845_s29 + $0xa8] sm:$0xff] }
  0xff   : > { %2470 = vmatprep.subr.bf16.mxu0 %v2469_v11  ;;  %2534 = vmatprep.subr.bf16.mxu1 %v2469_v11  ;;  %v433_v11 = vld [vmem:[%s3837_s21 + $0xa8] sm:$0xff] }
 0x102   : > { %2472 = vmatpush1.bf16.msra.mxu0 %v2471_v16  ;;  %2536 = vmatpush1.bf16.msra.mxu1 %v2471_v16  ;;  %v468_v16 = vld [vmem:[%s3845_s29 + $0xc0] sm:$0xff] }
 0x103   : > { %2474 = vmatprep.subr.bf16.mxu0 %v2473_v17  ;;  %2538 = vmatprep.subr.bf16.mxu1 %v2473_v17  ;;  %v436_v17 = vld [vmem:[%s3837_s21 + $0xc0] sm:$0xff] }
 0x106   : > { %2476 = vmatpush1.bf16.msra.mxu0 %v2475_v22  ;;  %2540 = vmatpush1.bf16.msra.mxu1 %v2475_v22  ;;  %v471_v22 = vld [vmem:[%s3845_s29 + $0xd8] sm:$0xff] }
 0x107   : > { %2478 = vmatprep.subr.bf16.mxu0 %v2477_v23  ;;  %2542 = vmatprep.subr.bf16.mxu1 %v2477_v23  ;;  %v439_v23 = vld [vmem:[%s3837_s21 + $0xd8] sm:$0xff] }
 0x10a   : > { %2480 = vmatpush1.bf16.msra.mxu0 %v2479_v28  ;;  %2544 = vmatpush1.bf16.msra.mxu1 %v2479_v28  ;;  %v474_v28 = vld [vmem:[%s3845_s29 + $0xf0] sm:$0xff] }
 0x10b   : > { %2482 = vmatprep.subr.bf16.mxu0 %v2481_v29  ;;  %2546 = vmatprep.subr.bf16.mxu1 %v2481_v29  ;;  %v442_v29 = vld [vmem:[%s3837_s21 + $0xf0] sm:$0xff]  ;;  %s3404_s21 = sshll.u32 %s3526_s8, 4  ;;  %s3405_s21 = int_to_ptr.vmem [resolvable:$false] %s3404_s21 }
 0x10c   : > { %s3406_s9 = scalar_lea.vmem %s3405_s21, 8192  ;;  %p3407_p3 = scmp.lt.s32.totalorder %s4295_s17, %s3405_s21 }
 0x10d   : > { %p3408_p5 = scmp.lt.s32.totalorder %s3406_s9, %s3400_s18 }
 0x10e   : > { %2484 = vmatpush1.bf16.msra.mxu0 %v2483_v32  ;;  %2548 = vmatpush1.bf16.msra.mxu1 %v2483_v32 }
 0x10f   : > { %p3409_p9 = por %p3408_p5, %p3407_p3 }
 0x111   : > { %701 = vmatmul.mubr.f32.vlgmr.msra.gmra.mrb[0].mxu0 %v412_v33  ;;  %p3410_p8 = pnand %p3409_p9, %p3403_p6 }
 0x112   : > { %706 = vmatprep.mubr.f32.mxu0 %v445_v34 }
 0x115   : > { %707 = vmatmul.mubr.f32.gmra.mrb[2].mxu0 %v413_v35 }
 0x116   : > { %712 = vmatprep.mubr.f32.mxu0 %v446_v36 }
 0x119   : > { %713 = vmatmul.mubr.f32.gmra.mrb[4].mxu0 %v414_v37 }
 0x11a   : > { %718 = vmatprep.mubr.f32.mxu0 %v447_v38 }
 0x11d   : > { %719 = vmatmul.mubr.f32.gmra.mrb[6].mxu0 %v415_v39 }
 0x11e   : > { %724 = vmatprep.mubr.f32.mxu0 %v448_v40 }
 0x121   : > { %725 = vmatmul.mubr.f32.gmra.mrb[8].mxu0 %v416_v41 }
 0x122   : > { %730 = vmatprep.mubr.f32.mxu0 %v449_v42 }
 0x125   : > { %731 = vmatmul.mubr.f32.gmra.mrb[10].mxu0 %v417_v43 }
 0x126   : > { %736 = vmatprep.mubr.f32.mxu0 %v450_v44 }
 0x129   : > { %737 = vmatmul.mubr.f32.gmra.mrb[12].mxu0 %v418_v45 }
 0x12a   : > { %742 = vmatprep.mubr.f32.mxu0 %v451_v46 }
 0x12d   : > { %743 = vmatmul.mubr.f32.gmra.mrb[14].mxu0 %v419_v47 }
 0x12e   : > { %748 = vmatprep.mubr.f32.mxu0 %v452_v48 }
 0x131   : > { %749 = vmatmul.mubr.f32.gmra.mrb[16].mxu0 %v420_v49 }
 0x132   : > { %754 = vmatprep.mubr.f32.mxu0 %v453_v50 }
 0x135   : > { %755 = vmatmul.mubr.f32.gmra.mrb[18].mxu0 %v421_v51 }
 0x136   : > { %760 = vmatprep.mubr.f32.mxu0 %v454_v52 }
 0x139   : > { %761 = vmatmul.mubr.f32.gmra.mrb[20].mxu0 %v422_v53 }
 0x13a   : > { %766 = vmatprep.mubr.f32.mxu0 %v455_v54 }
 0x13d   : > { %767 = vmatmul.mubr.f32.gmra.mrb[22].mxu0 %v423_v55 }
 0x13e   : > { %772 = vmatprep.mubr.f32.mxu0 %v456_v56 }
 0x141   : > { %773 = vmatmul.mubr.f32.gmra.mrb[24].mxu0 %v424_v57 }
 0x142   : > { %778 = vmatprep.mubr.f32.mxu0 %v457_v58 }
 0x145   : > { %779 = vmatmul.mubr.f32.gmra.mrb[26].mxu0 %v425_v59 }
 0x146   : > { %784 = vmatprep.mubr.f32.mxu0 %v458_v60 }
 0x149   : > { %785 = vmatmul.mubr.f32.gmra.mrb[28].mxu0 %v426_v61 }
 0x14a   : > { %790 = vmatprep.mubr.f32.mxu0 %v459_v62 }
 0x14d   : > { %791 = vmatmul.mubr.f32.gmra.mrb[30].mxu0 %v427_v63 }
 0x14e   : > { %796 = vmatprep.mubr.f32.mxu0 %v460_v0 }
 0x151   : > { %797 = vmatmul.mubr.f32.gmra.mrb[32].mxu0 %v428_v1 }
 0x152   : > { %802 = vmatprep.mubr.f32.mxu0 %v461_v2 }
 0x155   : > { %803 = vmatmul.mubr.f32.gmra.mrb[34].mxu0 %v429_v3 }
 0x156   : > { %808 = vmatprep.mubr.f32.mxu0 %v462_v4 }
 0x159   : > { %809 = vmatmul.mubr.f32.gmra.mrb[36].mxu0 %v430_v5 }
 0x15a   : > { %814 = vmatprep.mubr.f32.mxu0 %v463_v6 }
 0x15d   : > { %815 = vmatmul.mubr.f32.gmra.mrb[38].mxu0 %v431_v7 }
 0x15e   : > { %820 = vmatprep.mubr.f32.mxu0 %v464_v8 }
 0x161   : > { %821 = vmatmul.mubr.f32.gmra.mrb[40].mxu0 %v432_v9 }
 0x162   : > { %826 = vmatprep.mubr.f32.mxu0 %v465_v10 }
 0x165   : > { %827 = vmatmul.mubr.f32.gmra.mrb[42].mxu0 %v433_v11 }
 0x166   : > { %832 = vmatprep.mubr.f32.mxu0 %v466_v12 }
 0x169   : > { %833 = vmatmul.mubr.f32.gmra.mrb[44].mxu0 %v434_v13 }
 0x16a   : > { %838 = vmatprep.mubr.f32.mxu0 %v467_v14 }
 0x16d   : > { %839 = vmatmul.mubr.f32.gmra.mrb[46].mxu0 %v435_v15 }
 0x16e   : > { %844 = vmatprep.mubr.f32.mxu0 %v468_v16 }
 0x171   : > { %845 = vmatmul.mubr.f32.gmra.mrb[48].mxu0 %v436_v17 }
 0x172   : > { %850 = vmatprep.mubr.f32.mxu0 %v469_v18 }
 0x175   : > { %851 = vmatmul.mubr.f32.gmra.mrb[50].mxu0 %v437_v19 }
 0x176   : > { %856 = vmatprep.mubr.f32.mxu0 %v470_v20 }
 0x179   : > { %857 = vmatmul.mubr.f32.gmra.mrb[52].mxu0 %v438_v21 }
 0x17a   : > { %862 = vmatprep.mubr.f32.mxu0 %v471_v22 }
 0x17d   : > { %863 = vmatmul.mubr.f32.gmra.mrb[54].mxu0 %v439_v23 }
 0x17e   : > { %868 = vmatprep.mubr.f32.mxu0 %v472_v24 }
 0x181   : > { %869 = vmatmul.mubr.f32.gmra.mrb[56].mxu0 %v440_v25 }
 0x182   : > { %874 = vmatprep.mubr.f32.mxu0 %v473_v26 }
 0x185   : > { %875 = vmatmul.mubr.f32.gmra.mrb[58].mxu0 %v441_v27 }
 0x186   : > { %880 = vmatprep.mubr.f32.mxu0 %v474_v28 }
 0x189   : > { %881 = vmatmul.mubr.f32.gmra.mrb[60].mxu0 %v442_v29 }
 0x18a   : > { %886 = vmatprep.mubr.f32.mxu0 %v475_v30 }
 0x18d   : > { %887 = vmatmul.mubr.f32.gmra.mrb[62].mxu0 %v443_v31 }
 0x1e4   : > { %v702_v32 = vpop.f32.mrb[0].mxu0 }
 0x1e5   : > { %v704_v33 = vpop.f32.mrb[1].mxu0 }
 0x1e6   : > { %v2780_v34 = vpack.i.bf16 %v702_v32, %v704_v33 }
 0x1e8   : > { %2781 = vxpose.xlu0.b32.start [1/16] %v2780_v34, 128  ;;  %v708_v35 = vpop.f32.mrb[2].mxu0 }
 0x1e9   : > { %v710_v36 = vpop.f32.mrb[3].mxu0 }
 0x1ea   : > { %v2782_v37 = vpack.i.bf16 %v708_v35, %v710_v36 }
 0x1ec   : > { %2783 = vxpose.xlu0.b32.cont [2/16] %v2782_v37, 128  ;;  %v714_v38 = vpop.f32.mrb[4].mxu0 }
 0x1ed   : > { %v716_v39 = vpop.f32.mrb[5].mxu0 }
 0x1ee   : > { %v2784_v40 = vpack.i.bf16 %v714_v38, %v716_v39 }
 0x1f0   : > { %2785 = vxpose.xlu0.b32.cont [3/16] %v2784_v40, 128  ;;  %v720_v41 = vpop.f32.mrb[6].mxu0 }
 0x1f1   : > { %v722_v42 = vpop.f32.mrb[7].mxu0 }
 0x1f2   : > { %v2786_v43 = vpack.i.bf16 %v720_v41, %v722_v42  ;;  %v541_v42 = vld [vmem:[#allocation8 + $0x8] sm:$0xff] }
 0x1f4   : > { %2787 = vxpose.xlu0.b32.cont [4/16] %v2786_v43, 128  ;;  %v726_v44 = vpop.f32.mrb[8].mxu0  ;;  %v543_v43 = vld [vmem:[#allocation8 + $0x18] sm:$0xff] }
 0x1f5   : > { %v728_v45 = vpop.f32.mrb[9].mxu0 }
 0x1f6   : > { %v2788_v46 = vpack.i.bf16 %v726_v44, %v728_v45  ;;  %v540_v44 = vld [vmem:[#allocation8] sm:$0xff] }
 0x1f8   : > { %2789 = vxpose.xlu0.b32.cont [5/16] %v2788_v46, 128  ;;  %v732_v47 = vpop.f32.mrb[10].mxu0  ;;  %v2549_v46 = vpack.c.bf16 %v543_v43, %v541_v42  ;;  %v564_v42 = vld [vmem:[#allocation8 + $0xc0] sm:$0xff]  ;;  %v566_v43 = vld [vmem:[#allocation8 + $0xd0] sm:$0xff] }
 0x1f9   : > { %v734_v48 = vpop.f32.mrb[11].mxu0 }
 0x1fa   : > { %v2790_v49 = vpack.i.bf16 %v732_v47, %v734_v48  ;;  %v542_v47 = vld [vmem:[#allocation8 + $0x10] sm:$0xff]  ;;  %2550 = vmatprep.subr.bf16.mxu0 %v2549_v46  ;;  %2614 = vmatprep.subr.bf16.mxu1 %v2549_v46 }
 0x1fb   : > { %v3927_v48 = vpack.c.bf16 %v542_v47, %v540_v44  ;;  %v569_v44 = vld [vmem:[#allocation8 + $0xe8] sm:$0xff]  ;;  %v3961_v47 = vpack.c.bf16 %v566_v43, %v564_v42  ;;  %v592_v42 = vld [vmem:[#allocation8 + $0x1a0] sm:$0xff]  ;;  %v594_v43 = vld [vmem:[#allocation8 + $0x1b0] sm:$0xff] }
 0x1fc   : > { %2791 = vxpose.xlu0.b32.cont [6/16] %v2790_v49, 128  ;;  %v738_v50 = vpop.f32.mrb[12].mxu0 }
 0x1fd   : > { %v740_v51 = vpop.f32.mrb[13].mxu0  ;;  %2552 = vmatpush1.bf16.msra.mxu0 %v3927_v48 }
 0x1fe   : > { %v2792_v52 = vpack.i.bf16 %v738_v50, %v740_v51 }
 0x200   : > { %2793 = vxpose.xlu0.b32.cont [7/16] %v2792_v52, 128  ;;  %v744_v53 = vpop.f32.mrb[14].mxu0 }
 0x201   : > { %v746_v54 = vpop.f32.mrb[15].mxu0 }
 0x202   : > { %v2794_v55 = vpack.i.bf16 %v744_v53, %v746_v54  ;;  %v545_v54 = vld [vmem:[#allocation8 + $0x28] sm:$0xff] }
 0x204   : > { %2795 = vxpose.xlu0.b32.cont [8/16] %v2794_v55, 128  ;;  %v750_v56 = vpop.f32.mrb[16].mxu0  ;;  %v547_v55 = vld [vmem:[#allocation8 + $0x38] sm:$0xff] }
 0x205   : > { %v752_v57 = vpop.f32.mrb[17].mxu0 }
 0x206   : > { %v2796_v58 = vpack.i.bf16 %v750_v56, %v752_v57  ;;  %v544_v56 = vld [vmem:[#allocation8 + $0x20] sm:$0xff] }
 0x208   : > { %2797 = vxpose.xlu0.b32.cont [9/16] %v2796_v58, 128  ;;  %v756_v59 = vpop.f32.mrb[18].mxu0  ;;  %v3930_v58 = vpack.c.bf16 %v547_v55, %v545_v54  ;;  %v573_v54 = vld [vmem:[#allocation8 + $0x108] sm:$0xff]  ;;  %v575_v55 = vld [vmem:[#allocation8 + $0x118] sm:$0xff] }
 0x209   : > { %v758_v60 = vpop.f32.mrb[19].mxu0 }
 0x20a   : > { %v2798_v61 = vpack.i.bf16 %v756_v59, %v758_v60  ;;  %v546_v59 = vld [vmem:[#allocation8 + $0x30] sm:$0xff]  ;;  %2554 = vmatprep.subr.bf16.mxu0 %v3930_v58 }
 0x20b   : > { %v3932_v60 = vpack.c.bf16 %v546_v59, %v544_v56 }
 0x20c   : > { %2799 = vxpose.xlu0.b32.cont [10/16] %v2798_v61, 128  ;;  %v762_v62 = vpop.f32.mrb[20].mxu0 }
 0x20d   : > { %v764_v63 = vpop.f32.mrb[21].mxu0  ;;  %2556 = vmatpush1.bf16.msra.mxu0 %v3932_v60 }
 0x20e   : > { %v2800_v0 = vpack.i.bf16 %v762_v62, %v764_v63 }
 0x210   : > { %2801 = vxpose.xlu0.b32.cont [11/16] %v2800_v0, 128  ;;  %v768_v1 = vpop.f32.mrb[22].mxu0 }
 0x211   : > { %v770_v2 = vpop.f32.mrb[23].mxu0 }
 0x212   : > { %v2802_v3 = vpack.i.bf16 %v768_v1, %v770_v2  ;;  %v549_v2 = vld [vmem:[#allocation8 + $0x48] sm:$0xff] }
 0x214   : > { %2803 = vxpose.xlu0.b32.cont [12/16] %v2802_v3, 128  ;;  %v774_v4 = vpop.f32.mrb[24].mxu0  ;;  %v551_v3 = vld [vmem:[#allocation8 + $0x58] sm:$0xff] }
 0x215   : > { %v776_v5 = vpop.f32.mrb[25].mxu0 }
 0x216   : > { %v2804_v6 = vpack.i.bf16 %v774_v4, %v776_v5  ;;  %v548_v4 = vld [vmem:[#allocation8 + $0x40] sm:$0xff] }
 0x218   : > { %2805 = vxpose.xlu0.b32.cont [13/16] %v2804_v6, 128  ;;  %v780_v7 = vpop.f32.mrb[26].mxu0  ;;  %v3936_v6 = vpack.c.bf16 %v551_v3, %v549_v2 }
 0x219   : > { %v782_v8 = vpop.f32.mrb[27].mxu0 }
 0x21a   : > { %v2806_v9 = vpack.i.bf16 %v780_v7, %v782_v8  ;;  %v550_v7 = vld [vmem:[#allocation8 + $0x50] sm:$0xff]  ;;  %2558 = vmatprep.subr.bf16.mxu0 %v3936_v6 }
 0x21b   : > { %v3938_v8 = vpack.c.bf16 %v550_v7, %v548_v4  ;;  %v578_v7 = vld [vmem:[#allocation8 + $0x130] sm:$0xff] }
 0x21c   : > { %2807 = vxpose.xlu0.b32.cont [14/16] %v2806_v9, 128  ;;  %v786_v10 = vpop.f32.mrb[28].mxu0 }
 0x21d   : > { %v788_v11 = vpop.f32.mrb[29].mxu0  ;;  %2560 = vmatpush1.bf16.msra.mxu0 %v3938_v8 }
 0x21e   : > { %v2808_v12 = vpack.i.bf16 %v786_v10, %v788_v11 }
 0x220   : > { %2809 = vxpose.xlu0.b32.cont [15/16] %v2808_v12, 128  ;;  %v792_v13 = vpop.f32.mrb[30].mxu0 }
 0x221   : > { %v794_v14 = vpop.f32.mrb[31].mxu0 }
 0x222   : > { %v2810_v15 = vpack.i.bf16 %v792_v13, %v794_v14  ;;  %v553_v14 = vld [vmem:[#allocation8 + $0x68] sm:$0xff] }
 0x224   : > { %2811 = vxpose.xlu0.b32.end [16/16] %v2810_v15, 128  ;;  %v798_v16 = vpop.f32.mrb[32].mxu0  ;;  %v555_v15 = vld [vmem:[#allocation8 + $0x78] sm:$0xff] }
 0x225   : > { %v800_v17 = vpop.f32.mrb[33].mxu0 }
 0x226   : > { %v2892_v18 = vpack.i.bf16 %v798_v16, %v800_v17  ;;  %v552_v16 = vld [vmem:[#allocation8 + $0x60] sm:$0xff] }
 0x228   : > { %2893 = vxpose.xlu1.b32.start [1/16] %v2892_v18, 128  ;;  %v804_v19 = vpop.f32.mrb[34].mxu0  ;;  %v3942_v18 = vpack.c.bf16 %v555_v15, %v553_v14  ;;  %v580_v14 = vld [vmem:[#allocation8 + $0x140] sm:$0xff]  ;;  %v582_v15 = vld [vmem:[#allocation8 + $0x150] sm:$0xff] }
 0x229   : > { %v806_v20 = vpop.f32.mrb[35].mxu0 }
 0x22a   : > { %v2894_v21 = vpack.i.bf16 %v804_v19, %v806_v20  ;;  %v554_v19 = vld [vmem:[#allocation8 + $0x70] sm:$0xff]  ;;  %2562 = vmatprep.subr.bf16.mxu0 %v3942_v18 }
 0x22b   : > { %v3944_v20 = vpack.c.bf16 %v554_v19, %v552_v16  ;;  %v585_v16 = vld [vmem:[#allocation8 + $0x168] sm:$0xff]  ;;  %v3993_v19 = vpack.c.bf16 %v582_v15, %v580_v14 }
 0x22c   : > { %2895 = vxpose.xlu1.b32.cont [2/16] %v2894_v21, 128  ;;  %v810_v22 = vpop.f32.mrb[36].mxu0 }
 0x22d   : > { %v812_v23 = vpop.f32.mrb[37].mxu0  ;;  %2564 = vmatpush1.bf16.msra.mxu0 %v3944_v20 }
 0x22e   : > { %v2896_v24 = vpack.i.bf16 %v810_v22, %v812_v23 }
 0x230   : > { %2897 = vxpose.xlu1.b32.cont [3/16] %v2896_v24, 128  ;;  %v816_v25 = vpop.f32.mrb[38].mxu0  ;;  %v557_v24 = vld [vmem:[#allocation8 + $0x88] sm:$0xff] }
 0x231   : > { %v818_v26 = vpop.f32.mrb[39].mxu0 }
 0x232   : > { %v2898_v27 = vpack.i.bf16 %v816_v25, %v818_v26  ;;  %v559_v25 = vld [vmem:[#allocation8 + $0x98] sm:$0xff]  ;;  %v556_v26 = vld [vmem:[#allocation8 + $0x80] sm:$0xff] }
 0x234   : > { %2899 = vxpose.xlu1.b32.cont [4/16] %v2898_v27, 128  ;;  %v822_v28 = vpop.f32.mrb[40].mxu0  ;;  %v3948_v27 = vpack.c.bf16 %v559_v25, %v557_v24  ;;  %v586_v24 = vld [vmem:[#allocation8 + $0x170] sm:$0xff]  ;;  %v589_v25 = vld [vmem:[#allocation8 + $0x188] sm:$0xff] }
 0x235   : > { %v824_v29 = vpop.f32.mrb[41].mxu0 }
 0x236   : > { %v2900_v30 = vpack.i.bf16 %v822_v28, %v824_v29  ;;  %v558_v28 = vld [vmem:[#allocation8 + $0x90] sm:$0xff]  ;;  %2566 = vmatprep.subr.bf16.mxu0 %v3948_v27 }
 0x237   : > { %v3950_v29 = vpack.c.bf16 %v558_v28, %v556_v26  ;;  %v591_v26 = vld [vmem:[#allocation8 + $0x198] sm:$0xff] }
 0x238   : > { %2901 = vxpose.xlu1.b32.cont [5/16] %v2900_v30, 128  ;;  %v828_v31 = vpop.f32.mrb[42].mxu0 }
 0x239   : > { %v830_v32 = vpop.f32.mrb[43].mxu0  ;;  %2568 = vmatpush1.bf16.msra.mxu0 %v3950_v29 }
 0x23a   : > { %v2902_v33 = vpack.i.bf16 %v828_v31, %v830_v32  ;;  %v561_v31 = vld [vmem:[#allocation8 + $0xa8] sm:$0xff]  ;;  %v563_v32 = vld [vmem:[#allocation8 + $0xb8] sm:$0xff] }
 0x23c   : > { %2903 = vxpose.xlu1.b32.cont [6/16] %v2902_v33, 128  ;;  %v834_v34 = vpop.f32.mrb[44].mxu0  ;;  %v560_v33 = vld [vmem:[#allocation8 + $0xa0] sm:$0xff] }
 0x23d   : > { %v836_v35 = vpop.f32.mrb[45].mxu0 }
 0x23e   : > { %v2904_v36 = vpack.i.bf16 %v834_v34, %v836_v35 }
 0x240   : > { %2905 = vxpose.xlu1.b32.cont [7/16] %v2904_v36, 128  ;;  %v840_v37 = vpop.f32.mrb[46].mxu0  ;;  %v562_v36 = vld [vmem:[#allocation8 + $0xb0] sm:$0xff] }
 0x241   : > { %v842_v38 = vpop.f32.mrb[47].mxu0 }
 0x242   : > { %v2906_v39 = vpack.i.bf16 %v840_v37, %v842_v38  ;;  %v565_v37 = vld [vmem:[#allocation8 + $0xc8] sm:$0xff]  ;;  %v567_v38 = vld [vmem:[#allocation8 + $0xd8] sm:$0xff] }
 0x244   : > { %2907 = vxpose.xlu1.b32.cont [8/16] %v2906_v39, 128  ;;  %v846_v40 = vpop.f32.mrb[48].mxu0  ;;  %v3954_v39 = vpack.c.bf16 %v563_v32, %v561_v31  ;;  %v588_v32 = vld [vmem:[#allocation8 + $0x180] sm:$0xff] }
 0x245   : > { %v848_v41 = vpop.f32.mrb[49].mxu0 }
 0x246   : > { %v2908_v45 = vpack.i.bf16 %v846_v40, %v848_v41  ;;  %v3956_v40 = vpack.c.bf16 %v562_v36, %v560_v33  ;;  %v3958_v41 = vpack.c.bf16 %v567_v38, %v565_v37  ;;  %2570 = vmatprep.subr.bf16.mxu0 %v3954_v39  ;;  %v590_v33 = vld [vmem:[#allocation8 + $0x190] sm:$0xff] }
 0x247   : > { %v4009_v37 = vpack.c.bf16 %v590_v33, %v588_v32 }
 0x248   : > { %2909 = vxpose.xlu1.b32.cont [9/16] %v2908_v45, 128  ;;  %v852_v49 = vpop.f32.mrb[50].mxu0  ;;  %v571_v45 = vld [vmem:[#allocation8 + $0xf8] sm:$0xff]  ;;  %2572 = vmatpush1.bf16.msra.mxu0 %v3956_v40 }
 0x249   : > { %v854_v50 = vpop.f32.mrb[51].mxu0  ;;  %2574 = vmatprep.subr.bf16.mxu0 %v3958_v41 }
 0x24a   : > { %v2910_v51 = vpack.i.bf16 %v852_v49, %v854_v50 }
 0x24c   : > { %2911 = vxpose.xlu1.b32.cont [10/16] %v2910_v51, 128  ;;  %v858_v52 = vpop.f32.mrb[52].mxu0  ;;  %v568_v51 = vld [vmem:[#allocation8 + $0xe0] sm:$0xff]  ;;  %2576 = vmatpush1.bf16.msra.mxu0 %v3961_v47 }
 0x24d   : > { %v860_v53 = vpop.f32.mrb[53].mxu0 }
 0x24e   : > { %v2912_v57 = vpack.i.bf16 %v858_v52, %v860_v53  ;;  %v570_v52 = vld [vmem:[#allocation8 + $0xf0] sm:$0xff]  ;;  %v3966_v53 = vpack.c.bf16 %v571_v45, %v569_v44  ;;  %v599_v44 = vld [vmem:[#allocation8 + $0x1d8] sm:$0xff] }
 0x250   : > { %2913 = vxpose.xlu1.b32.cont [11/16] %v2912_v57, 128  ;;  %v864_v61 = vpop.f32.mrb[54].mxu0  ;;  %v3969_v57 = vpack.c.bf16 %v570_v52, %v568_v51  ;;  %2578 = vmatprep.subr.bf16.mxu0 %v3966_v53  ;;  %v596_v51 = vld [vmem:[#allocation8 + $0x1c0] sm:$0xff]  ;;  %v598_v52 = vld [vmem:[#allocation8 + $0x1d0] sm:$0xff] }
 0x251   : > { %v866_v62 = vpop.f32.mrb[55].mxu0 }
 0x252   : > { %v2914_v63 = vpack.i.bf16 %v864_v61, %v866_v62  ;;  %v572_v62 = vld [vmem:[#allocation8 + $0x100] sm:$0xff]  ;;  %2580 = vmatpush1.bf16.msra.mxu0 %v3969_v57 }
 0x254   : > { %2915 = vxpose.xlu1.b32.cont [12/16] %v2914_v63, 128  ;;  %v870_v0 = vpop.f32.mrb[56].mxu0  ;;  %v574_v63 = vld [vmem:[#allocation8 + $0x110] sm:$0xff] }
 0x255   : > { %v872_v1 = vpop.f32.mrb[57].mxu0  ;;  %v3977_v2 = vpack.c.bf16 %v574_v63, %v572_v62  ;;  %v600_v62 = vld [vmem:[#allocation8 + $0x1e0] sm:$0xff]  ;;  %v602_v63 = vld [vmem:[#allocation8 + $0x1f0] sm:$0xff] }
 0x256   : > { %v2916_v5 = vpack.i.bf16 %v870_v0, %v872_v1  ;;  %v579_v0 = vld [vmem:[#allocation8 + $0x138] sm:$0xff] }
 0x258   : > { %2917 = vxpose.xlu1.b32.cont [13/16] %v2916_v5, 128  ;;  %v876_v9 = vpop.f32.mrb[58].mxu0  ;;  %v576_v5 = vld [vmem:[#allocation8 + $0x120] sm:$0xff] }
 0x259   : > { %v878_v10 = vpop.f32.mrb[59].mxu0 }
 0x25a   : > { %v2918_v11 = vpack.i.bf16 %v876_v9, %v878_v10  ;;  %v583_v9 = vld [vmem:[#allocation8 + $0x158] sm:$0xff] }
 0x25c   : > { %2919 = vxpose.xlu1.b32.cont [14/16] %v2918_v11, 128  ;;  %v882_v12 = vpop.f32.mrb[60].mxu0  ;;  %v3985_v11 = vpack.c.bf16 %v578_v7, %v576_v5 }
 0x25d   : > { %v884_v13 = vpop.f32.mrb[61].mxu0 }
 0x25e   : > { %v2920_v17 = vpack.i.bf16 %v882_v12, %v884_v13 }
 0x260   : > { %2921 = vxpose.xlu1.b32.cont [15/16] %v2920_v17, 128  ;;  %v888_v21 = vpop.f32.mrb[62].mxu0  ;;  %v587_v17 = vld [vmem:[#allocation8 + $0x178] sm:$0xff] }
 0x261   : > { %v890_v22 = vpop.f32.mrb[63].mxu0 }
 0x262   : > { %v2922_v23 = vpack.i.bf16 %v888_v21, %v890_v22 }
 0x264   : > { %2923 = vxpose.xlu1.b32.end [16/16] %v2922_v23, 128  ;;  %v584_v23 = vld [vmem:[#allocation8 + $0x160] sm:$0xff] }
 0x265   : > { %v4001_v28 = vpack.c.bf16 %v586_v24, %v584_v23 }
 0x268   : > { %v2812_v30 = vpop.trf.xlu0 }
 0x269   : > { %v2813_v34 = vunpack.i.l.bf16 %v2812_v30  ;;  %v2816_v35 = vunpack.i.h.bf16 %v2812_v30 }
 0x26b   : > { %1085 = vmatprep.mubr.f32.mxu1 %v2813_v34  ;;  %v593_v34 = vld [vmem:[#allocation8 + $0x1a8] sm:$0xff] }
 0x26c   : > { %v2817_v46 = vpop.trf.xlu0  ;;  %1086 = vmatmul.mubr.f32.vlgmr.msra.gmra.mrb[0].mxu1 %v2816_v35  ;;  %v595_v35 = vld [vmem:[#allocation8 + $0x1b8] sm:$0xff] }
 0x26d   : > { %v2818_v49 = vunpack.i.l.bf16 %v2817_v46  ;;  %v2821_v50 = vunpack.i.h.bf16 %v2817_v46  ;;  %2616 = vmatpush1.bf16.msra.mxu1 %v3927_v48  ;;  %v3974_v48 = vpack.c.bf16 %v575_v55, %v573_v54  ;;  %v2603_v46 = vpack.c.bf16 %v594_v43, %v592_v42  ;;  %v603_v54 = vld [vmem:[#allocation8 + $0x1f8] sm:$0xff] }
 0x26e   : > { %2618 = vmatprep.subr.bf16.mxu1 %v3930_v58  ;;  %v577_v58 = vld [vmem:[#allocation8 + $0x128] sm:$0xff] }
 0x26f   : > { %1091 = vmatprep.mubr.f32.mxu1 %v2818_v49  ;;  %2582 = vmatprep.subr.bf16.mxu0 %v3974_v48 }
 0x270   : > { %v2822_v56 = vpop.trf.xlu0  ;;  %1092 = vmatmul.mubr.f32.gmra.mrb[2].mxu1 %v2821_v50  ;;  %2584 = vmatpush1.bf16.msra.mxu0 %v3977_v2 }
 0x271   : > { %v2823_v59 = vunpack.i.l.bf16 %v2822_v56  ;;  %v2826_v61 = vunpack.i.h.bf16 %v2822_v56  ;;  %2620 = vmatpush1.bf16.msra.mxu1 %v3932_v60  ;;  %v3982_v60 = vpack.c.bf16 %v579_v0, %v577_v58  ;;  %v2607_v56 = vpack.c.bf16 %v598_v52, %v596_v51 }
 0x272   : > { %2622 = vmatprep.subr.bf16.mxu1 %v3936_v6  ;;  %v581_v6 = vld [vmem:[#allocation8 + $0x148] sm:$0xff] }
 0x273   : > { %1097 = vmatprep.mubr.f32.mxu1 %v2823_v59  ;;  %2586 = vmatprep.subr.bf16.mxu0 %v3982_v60 }
 0x274   : > { %v2827_v1 = vpop.trf.xlu0  ;;  %1098 = vmatmul.mubr.f32.gmra.mrb[4].mxu1 %v2826_v61  ;;  %2588 = vmatpush1.bf16.msra.mxu0 %v3985_v11 }
 0x275   : > { %v2828_v3 = vunpack.i.l.bf16 %v2827_v1  ;;  %v2831_v4 = vunpack.i.h.bf16 %v2827_v1  ;;  %2624 = vmatpush1.bf16.msra.mxu1 %v3938_v8  ;;  %v3990_v8 = vpack.c.bf16 %v583_v9, %v581_v6 }
 0x276   : > { %2626 = vmatprep.subr.bf16.mxu1 %v3942_v18 }
 0x277   : > { %1103 = vmatprep.mubr.f32.mxu1 %v2828_v3  ;;  %2590 = vmatprep.subr.bf16.mxu0 %v3990_v8 }
 0x278   : > { %v2832_v10 = vpop.trf.xlu0  ;;  %1104 = vmatmul.mubr.f32.gmra.mrb[6].mxu1 %v2831_v4  ;;  %2592 = vmatpush1.bf16.msra.mxu0 %v3993_v19 }
 0x279   : > { %v2833_v12 = vunpack.i.l.bf16 %v2832_v10  ;;  %v2836_v13 = vunpack.i.h.bf16 %v2832_v10  ;;  %2628 = vmatpush1.bf16.msra.mxu1 %v3944_v20  ;;  %v3998_v20 = vpack.c.bf16 %v587_v17, %v585_v16 }
 0x27a   : > { %2630 = vmatprep.subr.bf16.mxu1 %v3948_v27 }
 0x27b   : > { %1109 = vmatprep.mubr.f32.mxu1 %v2833_v12  ;;  %2594 = vmatprep.subr.bf16.mxu0 %v3998_v20 }
 0x27c   : > { %v2837_v18 = vpop.trf.xlu0  ;;  %1110 = vmatmul.mubr.f32.gmra.mrb[8].mxu1 %v2836_v13  ;;  %2596 = vmatpush1.bf16.msra.mxu0 %v4001_v28 }
 0x27d   : > { %v2838_v21 = vunpack.i.l.bf16 %v2837_v18  ;;  %v2841_v22 = vunpack.i.h.bf16 %v2837_v18  ;;  %2632 = vmatpush1.bf16.msra.mxu1 %v3950_v29  ;;  %v4006_v29 = vpack.c.bf16 %v591_v26, %v589_v25 }
 0x27e   : > { %2634 = vmatprep.subr.bf16.mxu1 %v3954_v39 }
 0x27f   : > { %1115 = vmatprep.mubr.f32.mxu1 %v2838_v21  ;;  %2598 = vmatprep.subr.bf16.mxu0 %v4006_v29 }
 0x280   : > { %v2842_v27 = vpop.trf.xlu0  ;;  %1116 = vmatmul.mubr.f32.gmra.mrb[10].mxu1 %v2841_v22  ;;  %2600 = vmatpush1.bf16.msra.mxu0 %v4009_v37 }
 0x281   : > { %v2843_v30 = vunpack.i.l.bf16 %v2842_v27  ;;  %v2846_v31 = vunpack.i.h.bf16 %v2842_v27  ;;  %2636 = vmatpush1.bf16.msra.mxu1 %v3956_v40  ;;  %v2601_v40 = vpack.c.bf16 %v595_v35, %v593_v34 }
 0x282   : > { %2638 = vmatprep.subr.bf16.mxu1 %v3958_v41  ;;  %v597_v41 = vld [vmem:[#allocation8 + $0x1c8] sm:$0xff] }
 0x283   : > { %1121 = vmatprep.mubr.f32.mxu1 %v2843_v30  ;;  %2602 = vmatprep.subr.bf16.mxu0 %v2601_v40 }
 0x284   : > { %v2847_v36 = vpop.trf.xlu0  ;;  %1122 = vmatmul.mubr.f32.gmra.mrb[12].mxu1 %v2846_v31  ;;  %2604 = vmatpush1.bf16.msra.mxu0 %v2603_v46 }
 0x285   : > { %v2848_v38 = vunpack.i.l.bf16 %v2847_v36  ;;  %v2851_v39 = vunpack.i.h.bf16 %v2847_v36  ;;  %2640 = vmatpush1.bf16.msra.mxu1 %v3961_v47  ;;  %v2605_v47 = vpack.c.bf16 %v599_v44, %v597_v41 }
 0x286   : > { %2642 = vmatprep.subr.bf16.mxu1 %v3966_v53  ;;  %v601_v53 = vld [vmem:[#allocation8 + $0x1e8] sm:$0xff] }
 0x287   : > { %1127 = vmatprep.mubr.f32.mxu1 %v2848_v38  ;;  %2606 = vmatprep.subr.bf16.mxu0 %v2605_v47  ;;  %v2609_v58 = vpack.c.bf16 %v603_v54, %v601_v53 }
 0x288   : > { %v2852_v45 = vpop.trf.xlu0  ;;  %1128 = vmatmul.mubr.f32.gmra.mrb[14].mxu1 %v2851_v39  ;;  %2608 = vmatpush1.bf16.msra.mxu0 %v2607_v56 }
 0x289   : > { %v2853_v49 = vunpack.i.l.bf16 %v2852_v45  ;;  %v2856_v50 = vunpack.i.h.bf16 %v2852_v45  ;;  %2644 = vmatpush1.bf16.msra.mxu1 %v3969_v57  ;;  %2610 = vmatprep.subr.bf16.mxu0 %v2609_v58 }
 0x28a   : > { %2646 = vmatprep.subr.bf16.mxu1 %v3974_v48  ;;  %v2611_v48 = vpack.c.bf16 %v602_v63, %v600_v62 }
 0x28b   : > { %1133 = vmatprep.mubr.f32.mxu1 %v2853_v49 }
 0x28c   : > { %v2857_v55 = vpop.trf.xlu0  ;;  %1134 = vmatmul.mubr.f32.gmra.mrb[16].mxu1 %v2856_v50  ;;  %2612 = vmatpush1.bf16.msra.mxu0 %v2611_v48 }
 0x28d   : > { %v2858_v59 = vunpack.i.l.bf16 %v2857_v55  ;;  %v2861_v61 = vunpack.i.h.bf16 %v2857_v55  ;;  %2648 = vmatpush1.bf16.msra.mxu1 %v3977_v2 }
 0x28e   : > { %2650 = vmatprep.subr.bf16.mxu1 %v3982_v60 }
 0x28f   : > { %1139 = vmatprep.mubr.f32.mxu1 %v2858_v59 }
 0x290   : > { %v2862_v57 = vpop.trf.xlu0  ;;  %1140 = vmatmul.mubr.f32.gmra.mrb[18].mxu1 %v2861_v61 }
 0x291   : > { %v2863_v0 = vunpack.i.l.bf16 %v2862_v57  ;;  %v2866_v1 = vunpack.i.h.bf16 %v2862_v57  ;;  %2652 = vmatpush1.bf16.msra.mxu1 %v3985_v11 }
 0x292   : > { %2654 = vmatprep.subr.bf16.mxu1 %v3990_v8 }
 0x293   : > { %1145 = vmatprep.mubr.f32.mxu1 %v2863_v0 }
 0x294   : > { %v2867_v3 = vpop.trf.xlu0  ;;  %1146 = vmatmul.mubr.f32.gmra.mrb[20].mxu1 %v2866_v1  ;;  %v4027_v1 = vld [vmem:[#allocation10] sm:$0xff] }
 0x295   : > { %v2868_v2 = vunpack.i.l.bf16 %v2867_v3  ;;  %v2871_v4 = vunpack.i.h.bf16 %v2867_v3  ;;  %2656 = vmatpush1.bf16.msra.mxu1 %v3993_v19  ;;  %v4029_v3 = vld [vmem:[#allocation11] sm:$0xff] }
 0x296   : > { %2658 = vmatprep.subr.bf16.mxu1 %v3998_v20 }
 0x297   : > { %1151 = vmatprep.mubr.f32.mxu1 %v2868_v2 }
 0x298   : > { %v2872_v5 = vpop.trf.xlu0  ;;  %1152 = vmatmul.mubr.f32.gmra.mrb[22].mxu1 %v2871_v4 }
 0x299   : > { %v2873_v7 = vunpack.i.l.bf16 %v2872_v5  ;;  %v2876_v60 = vunpack.i.h.bf16 %v2872_v5  ;;  %2660 = vmatpush1.bf16.msra.mxu1 %v4001_v28 }
 0x29a   : > { %2662 = vmatprep.subr.bf16.mxu1 %v4006_v29 }
 0x29b   : > { %1157 = vmatprep.mubr.f32.mxu1 %v2873_v7 }
 0x29c   : > { %v2877_v6 = vpop.trf.xlu0  ;;  %1158 = vmatmul.mubr.f32.gmra.mrb[24].mxu1 %v2876_v60 }
 0x29d   : > { %v2878_v9 = vunpack.i.l.bf16 %v2877_v6  ;;  %v2881_v10 = vunpack.i.h.bf16 %v2877_v6  ;;  %2664 = vmatpush1.bf16.msra.mxu1 %v4009_v37 }
 0x29e   : > { %2666 = vmatprep.subr.bf16.mxu1 %v2601_v40 }
 0x29f   : > { %1163 = vmatprep.mubr.f32.mxu1 %v2878_v9  ;;  %v4035_v9 = vld [vmem:[#allocation10 + $0x8] sm:$0xff] }
 0x2a0   : > { %v2882_v11 = vpop.trf.xlu0  ;;  %1164 = vmatmul.mubr.f32.gmra.mrb[26].mxu1 %v2881_v10  ;;  %v4037_v10 = vld [vmem:[#allocation11 + $0x8] sm:$0xff] }
 0x2a1   : > { %v2883_v12 = vunpack.i.l.bf16 %v2882_v11  ;;  %v2886_v13 = vunpack.i.h.bf16 %v2882_v11  ;;  %2668 = vmatpush1.bf16.msra.mxu1 %v2603_v46 }
 0x2a2   : > { %2670 = vmatprep.subr.bf16.mxu1 %v2605_v47 }
 0x2a3   : > { %1169 = vmatprep.mubr.f32.mxu1 %v2883_v12 }
 0x2a4   : > { %v2887_v14 = vpop.trf.xlu0  ;;  %1170 = vmatmul.mubr.f32.gmra.mrb[28].mxu1 %v2886_v13 }
 0x2a5   : > { %v2888_v15 = vunpack.i.l.bf16 %v2887_v14  ;;  %v2891_v8 = vunpack.i.h.bf16 %v2887_v14  ;;  %2672 = vmatpush1.bf16.msra.mxu1 %v2607_v56 }
 0x2a6   : > { %2674 = vmatprep.subr.bf16.mxu1 %v2609_v58 }
 0x2a7   : > { %1175 = vmatprep.mubr.f32.mxu1 %v2888_v15 }
 0x2a8   : > { %1176 = vmatmul.mubr.f32.gmra.mrb[30].mxu1 %v2891_v8  ;;  %v2924_v16 = vpop.trf.xlu1 }
 0x2a9   : > { %v2925_v17 = vunpack.i.l.bf16 %v2924_v16  ;;  %v2928_v18 = vunpack.i.h.bf16 %v2924_v16  ;;  %2676 = vmatpush1.bf16.msra.mxu1 %v2611_v48 }
 0x2ab   : > { %1181 = vmatprep.mubr.f32.mxu1 %v2925_v17 }
 0x2ac   : > { %v2929_v19 = vpop.trf.xlu1  ;;  %1182 = vmatmul.mubr.f32.gmra.mrb[32].mxu1 %v2928_v18  ;;  %v4043_v18 = vld [vmem:[#allocation10 + $0x10] sm:$0xff] }
 0x2ad   : > { %v2930_v21 = vunpack.i.l.bf16 %v2929_v19  ;;  %v2933_v22 = vunpack.i.h.bf16 %v2929_v19  ;;  %v4045_v19 = vld [vmem:[#allocation11 + $0x10] sm:$0xff] }
 0x2af   : > { %1187 = vmatprep.mubr.f32.mxu1 %v2930_v21 }
 0x2b0   : > { %v2934_v23 = vpop.trf.xlu1  ;;  %1188 = vmatmul.mubr.f32.gmra.mrb[34].mxu1 %v2933_v22 }
 0x2b1   : > { %v2935_v24 = vunpack.i.l.bf16 %v2934_v23  ;;  %v2938_v20 = vunpack.i.h.bf16 %v2934_v23 }
 0x2b3   : > { %1193 = vmatprep.mubr.f32.mxu1 %v2935_v24 }
 0x2b4   : > { %v2939_v25 = vpop.trf.xlu1  ;;  %1194 = vmatmul.mubr.f32.gmra.mrb[36].mxu1 %v2938_v20 }
 0x2b5   : > { %v2940_v26 = vunpack.i.l.bf16 %v2939_v25  ;;  %v2943_v27 = vunpack.i.h.bf16 %v2939_v25 }
 0x2b7   : > { %1199 = vmatprep.mubr.f32.mxu1 %v2940_v26 }
 0x2b8   : > { %v2944_v28 = vpop.trf.xlu1  ;;  %1200 = vmatmul.mubr.f32.gmra.mrb[38].mxu1 %v2943_v27 }
 0x2b9   : > { %v2945_v30 = vunpack.i.l.bf16 %v2944_v28  ;;  %v2948_v31 = vunpack.i.h.bf16 %v2944_v28  ;;  %v4051_v28 = vld [vmem:[#allocation10 + $0x18] sm:$0xff] }
 0x2bb   : > { %1205 = vmatprep.mubr.f32.mxu1 %v2945_v30  ;;  %v4053_v30 = vld [vmem:[#allocation11 + $0x18] sm:$0xff] }
 0x2bc   : > { %v2949_v32 = vpop.trf.xlu1  ;;  %1206 = vmatmul.mubr.f32.gmra.mrb[40].mxu1 %v2948_v31 }
 0x2bd   : > { %v2950_v33 = vunpack.i.l.bf16 %v2949_v32  ;;  %v2953_v29 = vunpack.i.h.bf16 %v2949_v32 }
 0x2bf   : > { %1211 = vmatprep.mubr.f32.mxu1 %v2950_v33 }
 0x2c0   : > { %v2954_v34 = vpop.trf.xlu1  ;;  %1212 = vmatmul.mubr.f32.gmra.mrb[42].mxu1 %v2953_v29 }
 0x2c1   : > { %v2955_v35 = vunpack.i.l.bf16 %v2954_v34  ;;  %v2958_v36 = vunpack.i.h.bf16 %v2954_v34 }
 0x2c3   : > { %1217 = vmatprep.mubr.f32.mxu1 %v2955_v35 }
 0x2c4   : > { %v2959_v37 = vpop.trf.xlu1  ;;  %1218 = vmatmul.mubr.f32.gmra.mrb[44].mxu1 %v2958_v36 }
 0x2c5   : > { %v2960_v38 = vunpack.i.l.bf16 %v2959_v37  ;;  %v2963_v39 = vunpack.i.h.bf16 %v2959_v37 }
 0x2c7   : > { %1223 = vmatprep.mubr.f32.mxu1 %v2960_v38  ;;  %v4059_v38 = vld [vmem:[#allocation10 + $0x20] sm:$0xff] }
 0x2c8   : > { %v2964_v42 = vpop.trf.xlu1  ;;  %1224 = vmatmul.mubr.f32.gmra.mrb[46].mxu1 %v2963_v39  ;;  %v4061_v39 = vld [vmem:[#allocation11 + $0x20] sm:$0xff] }
 0x2c9   : > { %v2965_v43 = vunpack.i.l.bf16 %v2964_v42  ;;  %v2968_v40 = vunpack.i.h.bf16 %v2964_v42 }
 0x2cb   : > { %1229 = vmatprep.mubr.f32.mxu1 %v2965_v43 }
 0x2cc   : > { %v2969_v41 = vpop.trf.xlu1  ;;  %1230 = vmatmul.mubr.f32.gmra.mrb[48].mxu1 %v2968_v40 }
 0x2cd   : > { %v2970_v44 = vunpack.i.l.bf16 %v2969_v41  ;;  %v2973_v45 = vunpack.i.h.bf16 %v2969_v41 }
 0x2cf   : > { %1235 = vmatprep.mubr.f32.mxu1 %v2970_v44 }
 0x2d0   : > { %v2974_v46 = vpop.trf.xlu1  ;;  %1236 = vmatmul.mubr.f32.gmra.mrb[50].mxu1 %v2973_v45 }
 0x2d1   : > { %v2975_v49 = vunpack.i.l.bf16 %v2974_v46  ;;  %v2978_v50 = vunpack.i.h.bf16 %v2974_v46 }
 0x2d3   : > { %1241 = vmatprep.mubr.f32.mxu1 %v2975_v49 }
 0x2d4   : > { %v2979_v51 = vpop.trf.xlu1  ;;  %1242 = vmatmul.mubr.f32.gmra.mrb[52].mxu1 %v2978_v50  ;;  %v4067_v50 = vld [vmem:[#allocation10 + $0x28] sm:$0xff] }
 0x2d5   : > { %v2980_v52 = vunpack.i.l.bf16 %v2979_v51  ;;  %v2983_v47 = vunpack.i.h.bf16 %v2979_v51  ;;  %v4069_v51 = vld [vmem:[#allocation11 + $0x28] sm:$0xff] }
 0x2d7   : > { %1247 = vmatprep.mubr.f32.mxu1 %v2980_v52 }
 0x2d8   : > { %v2984_v53 = vpop.trf.xlu1  ;;  %1248 = vmatmul.mubr.f32.gmra.mrb[54].mxu1 %v2983_v47 }
 0x2d9   : > { %v2985_v54 = vunpack.i.l.bf16 %v2984_v53  ;;  %v2988_v55 = vunpack.i.h.bf16 %v2984_v53 }
 0x2db   : > { %1253 = vmatprep.mubr.f32.mxu1 %v2985_v54 }
 0x2dc   : > { %v2989_v56 = vpop.trf.xlu1  ;;  %1254 = vmatmul.mubr.f32.gmra.mrb[56].mxu1 %v2988_v55 }
 0x2dd   : > { %v2990_v59 = vunpack.i.l.bf16 %v2989_v56  ;;  %v2993_v61 = vunpack.i.h.bf16 %v2989_v56 }
 0x2df   : > { %1259 = vmatprep.mubr.f32.mxu1 %v2990_v59 }
 0x2e0   : > { %v2994_v62 = vpop.trf.xlu1  ;;  %1260 = vmatmul.mubr.f32.gmra.mrb[58].mxu1 %v2993_v61 }
 0x2e1   : > { %v2995_v63 = vunpack.i.l.bf16 %v2994_v62  ;;  %v2998_v58 = vunpack.i.h.bf16 %v2994_v62  ;;  %v4075_v62 = vld [vmem:[#allocation10 + $0x30] sm:$0xff] }
 0x2e3   : > { %1265 = vmatprep.mubr.f32.mxu1 %v2995_v63  ;;  %v4077_v63 = vld [vmem:[#allocation11 + $0x30] sm:$0xff] }
 0x2e4   : > { %v2999_v57 = vpop.trf.xlu1  ;;  %1266 = vmatmul.mubr.f32.gmra.mrb[60].mxu1 %v2998_v58 }
 0x2e5   : > { %v3000_v48 = vunpack.i.l.bf16 %v2999_v57  ;;  %v3003_v0 = vunpack.i.h.bf16 %v2999_v57 }
 0x2e7   : > { %1271 = vmatprep.mubr.f32.mxu1 %v3000_v48 }
 0x2e8   : > { %1272 = vmatmul.mubr.f32.gmra.mrb[62].mxu1 %v3003_v0 }
 0x33f   : > { %v1087_v2 = vpop.f32.mrb[0].mxu1 }
 0x340   : > { %v1278_v4 = vmul.f32 %v1087_v2, %v4027_v1  ;;  %v1342_v5 = vmul.f32 %v1087_v2, %v4029_v3  ;;  %v1089_v7 = vpop.f32.mrb[1].mxu1 }
 0x341   : > { %v1294_v60 = vmul.f32 %v1089_v7, %v4029_v3  ;;  %v1326_v6 = vmul.f32 %v1089_v7, %v4027_v1 }
 0x343   : > { %v1310_v11 = vsub.f32 %v1278_v4, %v1294_v60  ;;  %v1358_v12 = vadd.f32 %v1342_v5, %v1326_v6  ;;  %v1093_v13 = vpop.f32.mrb[2].mxu1  ;;  %v4083_v60 = vld [vmem:[#allocation10 + $0x38] sm:$0xff] }
 0x344   : > { %v1279_v14 = vmul.f32 %v1093_v13, %v4035_v9  ;;  %v1343_v15 = vmul.f32 %v1093_v13, %v4037_v10  ;;  %v1095_v8 = vpop.f32.mrb[3].mxu1  ;;  %v4085_v6 = vld [vmem:[#allocation11 + $0x38] sm:$0xff] }
 0x345   : > { %v1295_v16 = vmul.f32 %v1095_v8, %v4037_v10  ;;  %v1327_v17 = vmul.f32 %v1095_v8, %v4035_v9  ;;  %1534 = vmatprep.mubr.f32.mxu0 %v1358_v12 }
 0x346   : > { %1535 = vmatmul.mubr.f32.vlgmr.msra.gmra.mrb[64].mxu0 %v1310_v11 }
 0x347   : > { %v1311_v21 = vsub.f32 %v1279_v14, %v1295_v16  ;;  %v1359_v22 = vadd.f32 %v1343_v15, %v1327_v17  ;;  %v1099_v23 = vpop.f32.mrb[4].mxu1 }
 0x348   : > { %v1280_v24 = vmul.f32 %v1099_v23, %v4043_v18  ;;  %v1344_v20 = vmul.f32 %v1099_v23, %v4045_v19  ;;  %v1101_v25 = vpop.f32.mrb[5].mxu1 }
 0x349   : > { %v1296_v26 = vmul.f32 %v1101_v25, %v4045_v19  ;;  %v1328_v27 = vmul.f32 %v1101_v25, %v4043_v18  ;;  %1540 = vmatprep.mubr.f32.mxu0 %v1359_v22  ;;  %v4093_v22 = vld [vmem:[#allocation11 + $0x40] sm:$0xff] }
 0x34a   : > { %1541 = vmatmul.mubr.f32.gmra.mrb[66].mxu0 %v1311_v21  ;;  %v4091_v21 = vld [vmem:[#allocation10 + $0x40] sm:$0xff] }
 0x34b   : > { %v1312_v31 = vsub.f32 %v1280_v24, %v1296_v26  ;;  %v1360_v32 = vadd.f32 %v1344_v20, %v1328_v27  ;;  %v1105_v33 = vpop.f32.mrb[6].mxu1 }
 0x34c   : > { %v1281_v29 = vmul.f32 %v1105_v33, %v4051_v28  ;;  %v1345_v34 = vmul.f32 %v1105_v33, %v4053_v30  ;;  %v1107_v35 = vpop.f32.mrb[7].mxu1  ;;  %v4099_v33 = vld [vmem:[#allocation10 + $0x48] sm:$0xff] }
 0x34d   : > { %v1297_v36 = vmul.f32 %v1107_v35, %v4053_v30  ;;  %v1329_v37 = vmul.f32 %v1107_v35, %v4051_v28  ;;  %1546 = vmatprep.mubr.f32.mxu0 %v1360_v32 }
 0x34e   : > { %1547 = vmatmul.mubr.f32.gmra.mrb[68].mxu0 %v1312_v31 }
 0x34f   : > { %v1313_v42 = vsub.f32 %v1281_v29, %v1297_v36  ;;  %v1361_v43 = vadd.f32 %v1345_v34, %v1329_v37  ;;  %v1111_v40 = vpop.f32.mrb[8].mxu1  ;;  %v4101_v29 = vld [vmem:[#allocation11 + $0x48] sm:$0xff] }
 0x350   : > { %v1282_v41 = vmul.f32 %v1111_v40, %v4059_v38  ;;  %v1346_v44 = vmul.f32 %v1111_v40, %v4061_v39  ;;  %v1113_v45 = vpop.f32.mrb[9].mxu1 }
 0x351   : > { %v1298_v46 = vmul.f32 %v1113_v45, %v4061_v39  ;;  %v1330_v49 = vmul.f32 %v1113_v45, %v4059_v38  ;;  %1552 = vmatprep.mubr.f32.mxu0 %v1361_v43  ;;  %v4109_v45 = vld [vmem:[#allocation11 + $0x50] sm:$0xff] }
 0x352   : > { %1553 = vmatmul.mubr.f32.gmra.mrb[70].mxu0 %v1313_v42 }
 0x353   : > { %v1314_v52 = vsub.f32 %v1282_v41, %v1298_v46  ;;  %v1362_v47 = vadd.f32 %v1346_v44, %v1330_v49  ;;  %v1117_v53 = vpop.f32.mrb[10].mxu1  ;;  %v4107_v44 = vld [vmem:[#allocation10 + $0x50] sm:$0xff] }
 0x354   : > { %v1283_v54 = vmul.f32 %v1117_v53, %v4067_v50  ;;  %v1347_v55 = vmul.f32 %v1117_v53, %v4069_v51  ;;  %v1119_v56 = vpop.f32.mrb[11].mxu1 }
 0x355   : > { %v1299_v59 = vmul.f32 %v1119_v56, %v4069_v51  ;;  %v1331_v61 = vmul.f32 %v1119_v56, %v4067_v50  ;;  %1558 = vmatprep.mubr.f32.mxu0 %v1362_v47 }
 0x356   : > { %1559 = vmatmul.mubr.f32.gmra.mrb[72].mxu0 %v1314_v52 }
 0x357   : > { %v1315_v58 = vsub.f32 %v1283_v54, %v1299_v59  ;;  %v1363_v57 = vadd.f32 %v1347_v55, %v1331_v61  ;;  %v1123_v48 = vpop.f32.mrb[12].mxu1  ;;  %v4115_v59 = vld [vmem:[#allocation10 + $0x58] sm:$0xff] }
 0x358   : > { %v1284_v0 = vmul.f32 %v1123_v48, %v4075_v62  ;;  %v1348_v2 = vmul.f32 %v1123_v48, %v4077_v63  ;;  %v1125_v4 = vpop.f32.mrb[13].mxu1  ;;  %v4117_v61 = vld [vmem:[#allocation11 + $0x58] sm:$0xff] }
 0x359   : > { %v1300_v5 = vmul.f32 %v1125_v4, %v4077_v63  ;;  %v1332_v7 = vmul.f32 %v1125_v4, %v4075_v62  ;;  %1564 = vmatprep.mubr.f32.mxu0 %v1363_v57 }
 0x35a   : > { %1565 = vmatmul.mubr.f32.gmra.mrb[74].mxu0 %v1315_v58 }
 0x35b   : > { %v1316_v11 = vsub.f32 %v1284_v0, %v1300_v5  ;;  %v1364_v12 = vadd.f32 %v1348_v2, %v1332_v7  ;;  %v1129_v13 = vpop.f32.mrb[14].mxu1 }
 0x35c   : > { %v1285_v14 = vmul.f32 %v1129_v13, %v4083_v60  ;;  %v1349_v15 = vmul.f32 %v1129_v13, %v4085_v6  ;;  %v1131_v8 = vpop.f32.mrb[15].mxu1 }
 0x35d   : > { %v1301_v16 = vmul.f32 %v1131_v8, %v4085_v6  ;;  %v1333_v17 = vmul.f32 %v1131_v8, %v4083_v60  ;;  %1570 = vmatprep.mubr.f32.mxu0 %v1364_v12  ;;  %v4125_v12 = vld [vmem:[#allocation11 + $0x60] sm:$0xff] }
 0x35e   : > { %1571 = vmatmul.mubr.f32.gmra.mrb[76].mxu0 %v1316_v11  ;;  %v4123_v11 = vld [vmem:[#allocation10 + $0x60] sm:$0xff] }
 0x35f   : > { %v1317_v23 = vsub.f32 %v1285_v14, %v1301_v16  ;;  %v1365_v24 = vadd.f32 %v1349_v15, %v1333_v17  ;;  %v1135_v20 = vpop.f32.mrb[16].mxu1 }
 0x360   : > { %v1286_v25 = vmul.f32 %v1135_v20, %v4091_v21  ;;  %v1350_v26 = vmul.f32 %v1135_v20, %v4093_v22  ;;  %v1137_v27 = vpop.f32.mrb[17].mxu1  ;;  %v4131_v20 = vld [vmem:[#allocation10 + $0x68] sm:$0xff] }
 0x361   : > { %v1302_v31 = vmul.f32 %v1137_v27, %v4093_v22  ;;  %v1334_v32 = vmul.f32 %v1137_v27, %v4091_v21  ;;  %1576 = vmatprep.mubr.f32.mxu0 %v1365_v24 }
 0x362   : > { %1577 = vmatmul.mubr.f32.gmra.mrb[78].mxu0 %v1317_v23 }
 0x363   : > { %v1318_v34 = vsub.f32 %v1286_v25, %v1302_v31  ;;  %v1366_v35 = vadd.f32 %v1350_v26, %v1334_v32  ;;  %v1141_v36 = vpop.f32.mrb[18].mxu1  ;;  %v4133_v25 = vld [vmem:[#allocation11 + $0x68] sm:$0xff] }
 0x364   : > { %v1287_v37 = vmul.f32 %v1141_v36, %v4099_v33  ;;  %v1351_v42 = vmul.f32 %v1141_v36, %v4101_v29  ;;  %v1143_v43 = vpop.f32.mrb[19].mxu1 }
 0x365   : > { %v1303_v40 = vmul.f32 %v1143_v43, %v4101_v29  ;;  %v1335_v41 = vmul.f32 %v1143_v43, %v4099_v33  ;;  %1582 = vmatprep.mubr.f32.mxu0 %v1366_v35  ;;  %v4141_v43 = vld [vmem:[#allocation11 + $0x70] sm:$0xff] }
 0x366   : > { %1583 = vmatmul.mubr.f32.gmra.mrb[80].mxu0 %v1318_v34 }
 0x367   : > { %v1319_v46 = vsub.f32 %v1287_v37, %v1303_v40  ;;  %v1367_v49 = vadd.f32 %v1351_v42, %v1335_v41  ;;  %v1147_v52 = vpop.f32.mrb[20].mxu1  ;;  %v4139_v42 = vld [vmem:[#allocation10 + $0x70] sm:$0xff] }
 0x368   : > { %v1288_v47 = vmul.f32 %v1147_v52, %v4107_v44  ;;  %v1352_v53 = vmul.f32 %v1147_v52, %v4109_v45  ;;  %v1149_v54 = vpop.f32.mrb[21].mxu1 }
 0x369   : > { %v1304_v55 = vmul.f32 %v1149_v54, %v4109_v45  ;;  %v1336_v56 = vmul.f32 %v1149_v54, %v4107_v44  ;;  %1588 = vmatprep.mubr.f32.mxu0 %v1367_v49 }
 0x36a   : > { %1589 = vmatmul.mubr.f32.gmra.mrb[82].mxu0 %v1319_v46 }
 0x36b   : > { %v1320_v58 = vsub.f32 %v1288_v47, %v1304_v55  ;;  %v1368_v57 = vadd.f32 %v1352_v53, %v1336_v56  ;;  %v1153_v48 = vpop.f32.mrb[22].mxu1  ;;  %v4147_v55 = vld [vmem:[#allocation10 + $0x78] sm:$0xff] }
 0x36c   : > { %v1289_v0 = vmul.f32 %v1153_v48, %v4115_v59  ;;  %v1353_v2 = vmul.f32 %v1153_v48, %v4117_v61  ;;  %v1155_v4 = vpop.f32.mrb[23].mxu1  ;;  %v4149_v56 = vld [vmem:[#allocation11 + $0x78] sm:$0xff] }
 0x36d   : > { %v1305_v5 = vmul.f32 %v1155_v4, %v4117_v61  ;;  %v1337_v7 = vmul.f32 %v1155_v4, %v4115_v59  ;;  %1594 = vmatprep.mubr.f32.mxu0 %v1368_v57 }
 0x36e   : > { %1595 = vmatmul.mubr.f32.gmra.mrb[84].mxu0 %v1320_v58 }
 0x36f   : > { %v1321_v13 = vsub.f32 %v1289_v0, %v1305_v5  ;;  %v1369_v14 = vadd.f32 %v1353_v2, %v1337_v7  ;;  %v1159_v15 = vpop.f32.mrb[24].mxu1 }
 0x370   : > { %v1290_v8 = vmul.f32 %v1159_v15, %v4123_v11  ;;  %v1354_v16 = vmul.f32 %v1159_v15, %v4125_v12  ;;  %v1161_v17 = vpop.f32.mrb[25].mxu1 }
 0x371   : > { %v1306_v23 = vmul.f32 %v1161_v17, %v4125_v12  ;;  %v1338_v24 = vmul.f32 %v1161_v17, %v4123_v11  ;;  %1600 = vmatprep.mubr.f32.mxu0 %v1369_v14 }
 0x372   : > { %1601 = vmatmul.mubr.f32.gmra.mrb[86].mxu0 %v1321_v13 }
 0x373   : > { %v1322_v26 = vsub.f32 %v1290_v8, %v1306_v23  ;;  %v1370_v27 = vadd.f32 %v1354_v16, %v1338_v24  ;;  %v1165_v31 = vpop.f32.mrb[26].mxu1 }
 0x374   : > { %v1291_v32 = vmul.f32 %v1165_v31, %v4131_v20  ;;  %v1355_v34 = vmul.f32 %v1165_v31, %v4133_v25  ;;  %v1167_v35 = vpop.f32.mrb[27].mxu1 }
 0x375   : > { %v1307_v36 = vmul.f32 %v1167_v35, %v4133_v25  ;;  %v1339_v37 = vmul.f32 %v1167_v35, %v4131_v20  ;;  %1606 = vmatprep.mubr.f32.mxu0 %v1370_v27 }
 0x376   : > { %1607 = vmatmul.mubr.f32.gmra.mrb[88].mxu0 %v1322_v26 }
 0x377   : > { %v1323_v40 = vsub.f32 %v1291_v32, %v1307_v36  ;;  %v1371_v41 = vadd.f32 %v1355_v34, %v1339_v37  ;;  %v1171_v46 = vpop.f32.mrb[28].mxu1 }
 0x378   : > { %v1292_v49 = vmul.f32 %v1171_v46, %v4139_v42  ;;  %v1356_v52 = vmul.f32 %v1171_v46, %v4141_v43  ;;  %v1173_v47 = vpop.f32.mrb[29].mxu1 }
 0x379   : > { %v1308_v53 = vmul.f32 %v1173_v47, %v4141_v43  ;;  %v1340_v54 = vmul.f32 %v1173_v47, %v4139_v42  ;;  %1612 = vmatprep.mubr.f32.mxu0 %v1371_v41 }
 0x37a   : > { %1613 = vmatmul.mubr.f32.gmra.mrb[90].mxu0 %v1323_v40 }
 0x37b   : > { %v1324_v58 = vsub.f32 %v1292_v49, %v1308_v53  ;;  %v1372_v57 = vadd.f32 %v1356_v52, %v1340_v54  ;;  %v1177_v48 = vpop.f32.mrb[30].mxu1 }
 0x37c   : > { %v1293_v0 = vmul.f32 %v1177_v48, %v4147_v55  ;;  %v1357_v2 = vmul.f32 %v1177_v48, %v4149_v56  ;;  %v1179_v4 = vpop.f32.mrb[31].mxu1 }
 0x37d   : > { %v1309_v5 = vmul.f32 %v1179_v4, %v4149_v56  ;;  %v1341_v7 = vmul.f32 %v1179_v4, %v4147_v55  ;;  %1618 = vmatprep.mubr.f32.mxu0 %v1372_v57 }
 0x37e   : > { %1619 = vmatmul.mubr.f32.gmra.mrb[92].mxu0 %v1324_v58 }
 0x37f   : > { %v1325_v13 = vsub.f32 %v1293_v0, %v1309_v5  ;;  %v1373_v14 = vadd.f32 %v1357_v2, %v1341_v7  ;;  %v1183_v15 = vpop.f32.mrb[32].mxu1 }
 0x380   : > { %v1374_v8 = vmul.f32 %v1183_v15, %v4027_v1  ;;  %v1438_v16 = vmul.f32 %v1183_v15, %v4029_v3  ;;  %v1185_v17 = vpop.f32.mrb[33].mxu1 }
 0x381   : > { %v1390_v23 = vmul.f32 %v1185_v17, %v4029_v3  ;;  %v1422_v24 = vmul.f32 %v1185_v17, %v4027_v1  ;;  %1624 = vmatprep.mubr.f32.mxu0 %v1373_v14 }
 0x382   : > { %1625 = vmatmul.mubr.f32.gmra.mrb[94].mxu0 %v1325_v13 }
 0x383   : > { %v1406_v26 = vsub.f32 %v1374_v8, %v1390_v23  ;;  %v1454_v27 = vadd.f32 %v1438_v16, %v1422_v24  ;;  %v1189_v31 = vpop.f32.mrb[34].mxu1 }
 0x384   : > { %v1375_v32 = vmul.f32 %v1189_v31, %v4035_v9  ;;  %v1439_v34 = vmul.f32 %v1189_v31, %v4037_v10  ;;  %v1191_v35 = vpop.f32.mrb[35].mxu1 }
 0x385   : > { %v1391_v36 = vmul.f32 %v1191_v35, %v4037_v10  ;;  %v1423_v37 = vmul.f32 %v1191_v35, %v4035_v9  ;;  %1630 = vmatprep.mubr.f32.mxu0 %v1454_v27 }
 0x386   : > { %1631 = vmatmul.mubr.f32.gmra.mrb[96].mxu0 %v1406_v26 }
 0x387   : > { %v1407_v40 = vsub.f32 %v1375_v32, %v1391_v36  ;;  %v1455_v3 = vadd.f32 %v1439_v34, %v1423_v37  ;;  %v1195_v41 = vpop.f32.mrb[36].mxu1 }
 0x388   : > { %v1376_v1 = vmul.f32 %v1195_v41, %v4043_v18  ;;  %v1440_v46 = vmul.f32 %v1195_v41, %v4045_v19  ;;  %v1197_v49 = vpop.f32.mrb[37].mxu1 }
 0x389   : > { %v1392_v52 = vmul.f32 %v1197_v49, %v4045_v19  ;;  %v1424_v47 = vmul.f32 %v1197_v49, %v4043_v18  ;;  %1636 = vmatprep.mubr.f32.mxu0 %v1455_v3 }
 0x38a   : > { %1637 = vmatmul.mubr.f32.gmra.mrb[98].mxu0 %v1407_v40 }
 0x38b   : > { %v1408_v53 = vsub.f32 %v1376_v1, %v1392_v52  ;;  %v1456_v10 = vadd.f32 %v1440_v46, %v1424_v47  ;;  %v1201_v54 = vpop.f32.mrb[38].mxu1 }
 0x38c   : > { %v1377_v9 = vmul.f32 %v1201_v54, %v4051_v28  ;;  %v1441_v58 = vmul.f32 %v1201_v54, %v4053_v30  ;;  %v1203_v57 = vpop.f32.mrb[39].mxu1 }
 0x38d   : > { %v1393_v48 = vmul.f32 %v1203_v57, %v4053_v30  ;;  %v1425_v0 = vmul.f32 %v1203_v57, %v4051_v28  ;;  %1642 = vmatprep.mubr.f32.mxu0 %v1456_v10 }
 0x38e   : > { %1643 = vmatmul.mubr.f32.gmra.mrb[100].mxu0 %v1408_v53 }
 0x38f   : > { %v1409_v2 = vsub.f32 %v1377_v9, %v1393_v48  ;;  %v1457_v19 = vadd.f32 %v1441_v58, %v1425_v0  ;;  %v1207_v4 = vpop.f32.mrb[40].mxu1 }
 0x390   : > { %v1378_v18 = vmul.f32 %v1207_v4, %v4059_v38  ;;  %v1442_v5 = vmul.f32 %v1207_v4, %v4061_v39  ;;  %v1209_v7 = vpop.f32.mrb[41].mxu1 }
 0x391   : > { %v1394_v13 = vmul.f32 %v1209_v7, %v4061_v39  ;;  %v1426_v14 = vmul.f32 %v1209_v7, %v4059_v38  ;;  %1648 = vmatprep.mubr.f32.mxu0 %v1457_v19 }
 0x392   : > { %1649 = vmatmul.mubr.f32.gmra.mrb[102].mxu0 %v1409_v2 }
 0x393   : > { %v1410_v15 = vsub.f32 %v1378_v18, %v1394_v13  ;;  %v1458_v30 = vadd.f32 %v1442_v5, %v1426_v14  ;;  %v1213_v8 = vpop.f32.mrb[42].mxu1 }
 0x394   : > { %v1379_v28 = vmul.f32 %v1213_v8, %v4067_v50  ;;  %v1443_v16 = vmul.f32 %v1213_v8, %v4069_v51  ;;  %v1215_v17 = vpop.f32.mrb[43].mxu1 }
 0x395   : > { %v1395_v23 = vmul.f32 %v1215_v17, %v4069_v51  ;;  %v1427_v24 = vmul.f32 %v1215_v17, %v4067_v50  ;;  %1654 = vmatprep.mubr.f32.mxu0 %v1458_v30 }
 0x396   : > { %1655 = vmatmul.mubr.f32.gmra.mrb[104].mxu0 %v1410_v15 }
 0x397   : > { %v1411_v26 = vsub.f32 %v1379_v28, %v1395_v23  ;;  %v1459_v39 = vadd.f32 %v1443_v16, %v1427_v24  ;;  %v1219_v27 = vpop.f32.mrb[44].mxu1 }
 0x398   : > { %v1380_v38 = vmul.f32 %v1219_v27, %v4075_v62  ;;  %v1444_v31 = vmul.f32 %v1219_v27, %v4077_v63  ;;  %v1221_v32 = vpop.f32.mrb[45].mxu1 }
 0x399   : > { %v1396_v34 = vmul.f32 %v1221_v32, %v4077_v63  ;;  %v1428_v35 = vmul.f32 %v1221_v32, %v4075_v62  ;;  %1660 = vmatprep.mubr.f32.mxu0 %v1459_v39 }
 0x39a   : > { %1661 = vmatmul.mubr.f32.gmra.mrb[106].mxu0 %v1411_v26 }
 0x39b   : > { %v1412_v36 = vsub.f32 %v1380_v38, %v1396_v34  ;;  %v1460_v51 = vadd.f32 %v1444_v31, %v1428_v35  ;;  %v1225_v37 = vpop.f32.mrb[46].mxu1 }
 0x39c   : > { %v1381_v50 = vmul.f32 %v1225_v37, %v4083_v60  ;;  %v1445_v40 = vmul.f32 %v1225_v37, %v4085_v6  ;;  %v1227_v3 = vpop.f32.mrb[47].mxu1 }
 0x39d   : > { %v1397_v41 = vmul.f32 %v1227_v3, %v4085_v6  ;;  %v1429_v1 = vmul.f32 %v1227_v3, %v4083_v60  ;;  %1666 = vmatprep.mubr.f32.mxu0 %v1460_v51 }
 0x39e   : > { %1667 = vmatmul.mubr.f32.gmra.mrb[108].mxu0 %v1412_v36 }
 0x39f   : > { %v1413_v46 = vsub.f32 %v1381_v50, %v1397_v41  ;;  %v1461_v63 = vadd.f32 %v1445_v40, %v1429_v1  ;;  %v1231_v49 = vpop.f32.mrb[48].mxu1 }
 0x3a0   : > { %v1382_v62 = vmul.f32 %v1231_v49, %v4091_v21  ;;  %v1446_v52 = vmul.f32 %v1231_v49, %v4093_v22  ;;  %v1233_v47 = vpop.f32.mrb[49].mxu1 }
 0x3a1   : > { %v1398_v53 = vmul.f32 %v1233_v47, %v4093_v22  ;;  %v1430_v10 = vmul.f32 %v1233_v47, %v4091_v21  ;;  %1672 = vmatprep.mubr.f32.mxu0 %v1461_v63 }
 0x3a2   : > { %1673 = vmatmul.mubr.f32.gmra.mrb[110].mxu0 %v1413_v46 }
 0x3a3   : > { %v1414_v54 = vsub.f32 %v1382_v62, %v1398_v53  ;;  %v1462_v6 = vadd.f32 %v1446_v52, %v1430_v10  ;;  %v1237_v9 = vpop.f32.mrb[50].mxu1 }
 0x3a4   : > { %v1383_v60 = vmul.f32 %v1237_v9, %v4099_v33  ;;  %v1447_v58 = vmul.f32 %v1237_v9, %v4101_v29  ;;  %v1239_v57 = vpop.f32.mrb[51].mxu1 }
 0x3a5   : > { %v1399_v48 = vmul.f32 %v1239_v57, %v4101_v29  ;;  %v1431_v0 = vmul.f32 %v1239_v57, %v4099_v33  ;;  %1678 = vmatprep.mubr.f32.mxu0 %v1462_v6 }
 0x3a6   : > { %1679 = vmatmul.mubr.f32.gmra.mrb[112].mxu0 %v1414_v54 }
 0x3a7   : > { %v1415_v2 = vsub.f32 %v1383_v60, %v1399_v48  ;;  %v1463_v22 = vadd.f32 %v1447_v58, %v1431_v0  ;;  %v1243_v19 = vpop.f32.mrb[52].mxu1 }
 0x3a8   : > { %v1384_v21 = vmul.f32 %v1243_v19, %v4107_v44  ;;  %v1448_v4 = vmul.f32 %v1243_v19, %v4109_v45  ;;  %v1245_v18 = vpop.f32.mrb[53].mxu1 }
 0x3a9   : > { %v1400_v5 = vmul.f32 %v1245_v18, %v4109_v45  ;;  %v1432_v7 = vmul.f32 %v1245_v18, %v4107_v44  ;;  %1684 = vmatprep.mubr.f32.mxu0 %v1463_v22 }
 0x3aa   : > { %1685 = vmatmul.mubr.f32.gmra.mrb[114].mxu0 %v1415_v2 }
 0x3ab   : > { %v1416_v13 = vsub.f32 %v1384_v21, %v1400_v5  ;;  %v1464_v29 = vadd.f32 %v1448_v4, %v1432_v7  ;;  %v1249_v14 = vpop.f32.mrb[54].mxu1 }
 0x3ac   : > { %v1385_v33 = vmul.f32 %v1249_v14, %v4115_v59  ;;  %v1449_v15 = vmul.f32 %v1249_v14, %v4117_v61  ;;  %v1251_v30 = vpop.f32.mrb[55].mxu1 }
 0x3ad   : > { %v1401_v8 = vmul.f32 %v1251_v30, %v4117_v61  ;;  %v1433_v28 = vmul.f32 %v1251_v30, %v4115_v59  ;;  %1690 = vmatprep.mubr.f32.mxu0 %v1464_v29 }
 0x3ae   : > { %1691 = vmatmul.mubr.f32.gmra.mrb[116].mxu0 %v1416_v13 }
 0x3af   : > { %v1417_v16 = vsub.f32 %v1385_v33, %v1401_v8  ;;  %v1465_v45 = vadd.f32 %v1449_v15, %v1433_v28  ;;  %v1255_v17 = vpop.f32.mrb[56].mxu1 }
 0x3b0   : > { %v1386_v44 = vmul.f32 %v1255_v17, %v4123_v11  ;;  %v1450_v23 = vmul.f32 %v1255_v17, %v4125_v12  ;;  %v1257_v24 = vpop.f32.mrb[57].mxu1 }
 0x3b1   : > { %v1402_v26 = vmul.f32 %v1257_v24, %v4125_v12  ;;  %v1434_v39 = vmul.f32 %v1257_v24, %v4123_v11  ;;  %1696 = vmatprep.mubr.f32.mxu0 %v1465_v45 }
 0x3b2   : > { %1697 = vmatmul.mubr.f32.gmra.mrb[118].mxu0 %v1417_v16 }
 0x3b3   : > { %v1418_v27 = vsub.f32 %v1386_v44, %v1402_v26  ;;  %v1466_v61 = vadd.f32 %v1450_v23, %v1434_v39  ;;  %v1261_v38 = vpop.f32.mrb[58].mxu1 }
 0x3b4   : > { %v1387_v59 = vmul.f32 %v1261_v38, %v4131_v20  ;;  %v1451_v31 = vmul.f32 %v1261_v38, %v4133_v25  ;;  %v1263_v32 = vpop.f32.mrb[59].mxu1 }
 0x3b5   : > { %v1403_v34 = vmul.f32 %v1263_v32, %v4133_v25  ;;  %v1435_v35 = vmul.f32 %v1263_v32, %v4131_v20  ;;  %1702 = vmatprep.mubr.f32.mxu0 %v1466_v61 }
 0x3b6   : > { %1703 = vmatmul.mubr.f32.gmra.mrb[120].mxu0 %v1418_v27 }
 0x3b7   : > { %v1419_v36 = vsub.f32 %v1387_v59, %v1403_v34  ;;  %v1467_v12 = vadd.f32 %v1451_v31, %v1435_v35  ;;  %v1267_v51 = vpop.f32.mrb[60].mxu1 }
 0x3b8   : > { %v1388_v11 = vmul.f32 %v1267_v51, %v4139_v42  ;;  %v1452_v37 = vmul.f32 %v1267_v51, %v4141_v43  ;;  %v1269_v50 = vpop.f32.mrb[61].mxu1 }
 0x3b9   : > { %v1404_v40 = vmul.f32 %v1269_v50, %v4141_v43  ;;  %v1436_v3 = vmul.f32 %v1269_v50, %v4139_v42  ;;  %1708 = vmatprep.mubr.f32.mxu0 %v1467_v12 }
 0x3ba   : > { %1709 = vmatmul.mubr.f32.gmra.mrb[122].mxu0 %v1419_v36 }
 0x3bb   : > { %v1420_v41 = vsub.f32 %v1388_v11, %v1404_v40  ;;  %v1468_v25 = vadd.f32 %v1452_v37, %v1436_v3  ;;  %v1273_v1 = vpop.f32.mrb[62].mxu1 }
 0x3bc   : > { %v1389_v20 = vmul.f32 %v1273_v1, %v4147_v55  ;;  %v1453_v46 = vmul.f32 %v1273_v1, %v4149_v56  ;;  %v1275_v63 = vpop.f32.mrb[63].mxu1 }
 0x3bd   : > { %v1405_v49 = vmul.f32 %v1275_v63, %v4149_v56  ;;  %v1437_v62 = vmul.f32 %v1275_v63, %v4147_v55  ;;  %1714 = vmatprep.mubr.f32.mxu0 %v1468_v25 }
 0x3be   : > { %1715 = vmatmul.mubr.f32.gmra.mrb[124].mxu0 %v1420_v41 }
 0x3bf   : > { %v1421_v52 = vsub.f32 %v1389_v20, %v1405_v49  ;;  %v1469_v43 = vadd.f32 %v1453_v46, %v1437_v62 }
 0x3c1   : > { %1720 = vmatprep.mubr.f32.mxu0 %v1469_v43 }
 0x3c2   : > { %1721 = vmatmul.mubr.f32.gmra.mrb[126].mxu0 %v1421_v52 }
 0x419   : > { %v1536_v42 = vpop.f32.mrb[64].mxu0 }
 0x41a   : > { %v1538_v47 = vpop.f32.mrb[65].mxu0 }
 0x41b   : > { %v3004_v53 = vpack.i.bf16 %v1536_v42, %v1538_v47 }
 0x41d   : > { %3005 = vxpose.xlu0.b32.start [1/16] %v3004_v53, 128  ;;  %v1542_v10 = vpop.f32.mrb[66].mxu0 }
 0x41e   : > { %v1544_v54 = vpop.f32.mrb[67].mxu0 }
 0x41f   : > { %v3006_v6 = vpack.i.bf16 %v1542_v10, %v1544_v54 }
 0x421   : > { %3007 = vxpose.xlu0.b32.cont [2/16] %v3006_v6, 128  ;;  %v1548_v9 = vpop.f32.mrb[68].mxu0 }
 0x422   : > { %v1550_v60 = vpop.f32.mrb[69].mxu0 }
 0x423   : > { %v3008_v58 = vpack.i.bf16 %v1548_v9, %v1550_v60 }
 0x425   : > { %3009 = vxpose.xlu0.b32.cont [3/16] %v3008_v58, 128  ;;  %v1554_v56 = vpop.f32.mrb[70].mxu0 }
 0x426   : > { %v1556_v55 = vpop.f32.mrb[71].mxu0 }
 0x427   : > { %v3010_v57 = vpack.i.bf16 %v1554_v56, %v1556_v55 }
 0x429   : > { %3011 = vxpose.xlu0.b32.cont [4/16] %v3010_v57, 128  ;;  %v1560_v48 = vpop.f32.mrb[72].mxu0 }
 0x42a   : > { %v1562_v0 = vpop.f32.mrb[73].mxu0 }
 0x42b   : > { %v3012_v2 = vpack.i.bf16 %v1560_v48, %v1562_v0 }
 0x42d   : > { %3013 = vxpose.xlu0.b32.cont [5/16] %v3012_v2, 128  ;;  %v1566_v22 = vpop.f32.mrb[74].mxu0 }
 0x42e   : > { %v1568_v19 = vpop.f32.mrb[75].mxu0 }
 0x42f   : > { %v3014_v21 = vpack.i.bf16 %v1566_v22, %v1568_v19 }
 0x431   : > { %3015 = vxpose.xlu0.b32.cont [6/16] %v3014_v21, 128  ;;  %v1572_v4 = vpop.f32.mrb[76].mxu0 }
 0x432   : > { %v1574_v18 = vpop.f32.mrb[77].mxu0 }
 0x433   : > { %v3016_v5 = vpack.i.bf16 %v1572_v4, %v1574_v18 }
 0x435   : > { %3017 = vxpose.xlu0.b32.cont [7/16] %v3016_v5, 128  ;;  %v1578_v7 = vpop.f32.mrb[78].mxu0 }
 0x436   : > { %v1580_v13 = vpop.f32.mrb[79].mxu0 }
 0x437   : > { %v3018_v29 = vpack.i.bf16 %v1578_v7, %v1580_v13 }
 0x439   : > { %3019 = vxpose.xlu0.b32.cont [8/16] %v3018_v29, 128  ;;  %v1584_v14 = vpop.f32.mrb[80].mxu0 }
 0x43a   : > { %v1586_v33 = vpop.f32.mrb[81].mxu0 }
 0x43b   : > { %v3020_v15 = vpack.i.bf16 %v1584_v14, %v1586_v33 }
 0x43d   : > { %3021 = vxpose.xlu0.b32.cont [9/16] %v3020_v15, 128  ;;  %v1590_v30 = vpop.f32.mrb[82].mxu0 }
 0x43e   : > { %v1592_v8 = vpop.f32.mrb[83].mxu0 }
 0x43f   : > { %v3022_v28 = vpack.i.bf16 %v1590_v30, %v1592_v8 }
 0x441   : > { %3023 = vxpose.xlu0.b32.cont [10/16] %v3022_v28, 128  ;;  %v1596_v16 = vpop.f32.mrb[84].mxu0 }
 0x442   : > { %v1598_v45 = vpop.f32.mrb[85].mxu0 }
 0x443   : > { %v3024_v17 = vpack.i.bf16 %v1596_v16, %v1598_v45 }
 0x445   : > { %3025 = vxpose.xlu0.b32.cont [11/16] %v3024_v17, 128  ;;  %v1602_v44 = vpop.f32.mrb[86].mxu0 }
 0x446   : > { %v1604_v23 = vpop.f32.mrb[87].mxu0 }
 0x447   : > { %v3026_v24 = vpack.i.bf16 %v1602_v44, %v1604_v23 }
 0x449   : > { %3027 = vxpose.xlu0.b32.cont [12/16] %v3026_v24, 128  ;;  %v1608_v26 = vpop.f32.mrb[88].mxu0 }
 0x44a   : > { %v1610_v39 = vpop.f32.mrb[89].mxu0 }
 0x44b   : > { %v3028_v27 = vpack.i.bf16 %v1608_v26, %v1610_v39 }
 0x44d   : > { %3029 = vxpose.xlu0.b32.cont [13/16] %v3028_v27, 128  ;;  %v1614_v61 = vpop.f32.mrb[90].mxu0 }
 0x44e   : > { %v1616_v38 = vpop.f32.mrb[91].mxu0 }
 0x44f   : > { %v3030_v59 = vpack.i.bf16 %v1614_v61, %v1616_v38 }
 0x451   : > { %3031 = vxpose.xlu0.b32.cont [14/16] %v3030_v59, 128  ;;  %v1620_v31 = vpop.f32.mrb[92].mxu0 }
 0x452   : > { %v1622_v32 = vpop.f32.mrb[93].mxu0 }
 0x453   : > { %v3032_v34 = vpack.i.bf16 %v1620_v31, %v1622_v32 }
 0x455   : > { %3033 = vxpose.xlu0.b32.cont [15/16] %v3032_v34, 128  ;;  %v1626_v35 = vpop.f32.mrb[94].mxu0 }
 0x456   : > { %v1628_v36 = vpop.f32.mrb[95].mxu0 }
 0x457   : > { %v3034_v12 = vpack.i.bf16 %v1626_v35, %v1628_v36 }
 0x459   : > { %3035 = vxpose.xlu0.b32.end [16/16] %v3034_v12, 128  ;;  %v1632_v51 = vpop.f32.mrb[96].mxu0 }
 0x45a   : > { %v1634_v11 = vpop.f32.mrb[97].mxu0 }
 0x45b   : > { %v3116_v37 = vpack.i.bf16 %v1632_v51, %v1634_v11 }
 0x45d   : > { %3117 = vxpose.xlu1.b32.start [1/16] %v3116_v37, 128  ;;  %v1638_v50 = vpop.f32.mrb[98].mxu0 }
 0x45e   : > { %v1640_v40 = vpop.f32.mrb[99].mxu0 }
 0x45f   : > { %v3118_v3 = vpack.i.bf16 %v1638_v50, %v1640_v40 }
 0x461   : > { %3119 = vxpose.xlu1.b32.cont [2/16] %v3118_v3, 128  ;;  %v1644_v41 = vpop.f32.mrb[100].mxu0 }
 0x462   : > { %v1646_v25 = vpop.f32.mrb[101].mxu0 }
 0x463   : > { %v3120_v1 = vpack.i.bf16 %v1644_v41, %v1646_v25 }
 0x465   : > { %3121 = vxpose.xlu1.b32.cont [3/16] %v3120_v1, 128  ;;  %v1650_v20 = vpop.f32.mrb[102].mxu0 }
 0x466   : > { %v1652_v46 = vpop.f32.mrb[103].mxu0 }
 0x467   : > { %v3122_v63 = vpack.i.bf16 %v1650_v20, %v1652_v46 }
 0x469   : > { %3123 = vxpose.xlu1.b32.cont [4/16] %v3122_v63, 128  ;;  %v1656_v49 = vpop.f32.mrb[104].mxu0 }
 0x46a   : > { %v1658_v62 = vpop.f32.mrb[105].mxu0 }
 0x46b   : > { %v3124_v52 = vpack.i.bf16 %v1656_v49, %v1658_v62 }
 0x46d   : > { %3125 = vxpose.xlu1.b32.cont [5/16] %v3124_v52, 128  ;;  %v1662_v43 = vpop.f32.mrb[106].mxu0 }
 0x46e   : > { %v1664_v42 = vpop.f32.mrb[107].mxu0 }
 0x46f   : > { %v3126_v47 = vpack.i.bf16 %v1662_v43, %v1664_v42 }
 0x471   : > { %3127 = vxpose.xlu1.b32.cont [6/16] %v3126_v47, 128  ;;  %v1668_v53 = vpop.f32.mrb[108].mxu0 }
 0x472   : > { %v1670_v10 = vpop.f32.mrb[109].mxu0 }
 0x473   : > { %v3128_v54 = vpack.i.bf16 %v1668_v53, %v1670_v10 }
 0x475   : > { %3129 = vxpose.xlu1.b32.cont [7/16] %v3128_v54, 128  ;;  %v1674_v6 = vpop.f32.mrb[110].mxu0 }
 0x476   : > { %v1676_v9 = vpop.f32.mrb[111].mxu0 }
 0x477   : > { %v3130_v60 = vpack.i.bf16 %v1674_v6, %v1676_v9 }
 0x479   : > { %3131 = vxpose.xlu1.b32.cont [8/16] %v3130_v60, 128  ;;  %v1680_v58 = vpop.f32.mrb[112].mxu0 }
 0x47a   : > { %v1682_v56 = vpop.f32.mrb[113].mxu0 }
 0x47b   : > { %v3132_v55 = vpack.i.bf16 %v1680_v58, %v1682_v56 }
 0x47d   : > { %3133 = vxpose.xlu1.b32.cont [9/16] %v3132_v55, 128  ;;  %v1686_v57 = vpop.f32.mrb[114].mxu0 }
 0x47e   : > { %v1688_v48 = vpop.f32.mrb[115].mxu0 }
 0x47f   : > { %v3134_v0 = vpack.i.bf16 %v1686_v57, %v1688_v48 }
 0x481   : > { %3135 = vxpose.xlu1.b32.cont [10/16] %v3134_v0, 128  ;;  %v1692_v2 = vpop.f32.mrb[116].mxu0 }
 0x482   : > { %v1694_v22 = vpop.f32.mrb[117].mxu0 }
 0x483   : > { %v3136_v19 = vpack.i.bf16 %v1692_v2, %v1694_v22 }
 0x485   : > { %3137 = vxpose.xlu1.b32.cont [11/16] %v3136_v19, 128  ;;  %v1698_v21 = vpop.f32.mrb[118].mxu0 }
 0x486   : > { %v1700_v4 = vpop.f32.mrb[119].mxu0 }
 0x487   : > { %v3138_v18 = vpack.i.bf16 %v1698_v21, %v1700_v4 }
 0x489   : > { %3139 = vxpose.xlu1.b32.cont [12/16] %v3138_v18, 128  ;;  %v1704_v5 = vpop.f32.mrb[120].mxu0 }
 0x48a   : > { %v1706_v7 = vpop.f32.mrb[121].mxu0 }
 0x48b   : > { %v3140_v13 = vpack.i.bf16 %v1704_v5, %v1706_v7 }
 0x48d   : > { %3141 = vxpose.xlu1.b32.cont [13/16] %v3140_v13, 128  ;;  %v1710_v29 = vpop.f32.mrb[122].mxu0 }
 0x48e   : > { %v1712_v14 = vpop.f32.mrb[123].mxu0 }
 0x48f   : > { %v3142_v33 = vpack.i.bf16 %v1710_v29, %v1712_v14 }
 0x491   : > { %3143 = vxpose.xlu1.b32.cont [14/16] %v3142_v33, 128  ;;  %v1716_v15 = vpop.f32.mrb[124].mxu0 }
 0x492   : > { %v1718_v30 = vpop.f32.mrb[125].mxu0 }
 0x493   : > { %v3144_v8 = vpack.i.bf16 %v1716_v15, %v1718_v30 }
 0x495   : > { %3145 = vxpose.xlu1.b32.cont [15/16] %v3144_v8, 128  ;;  %v1722_v28 = vpop.f32.mrb[126].mxu0 }
 0x496   : > { %v1724_v16 = vpop.f32.mrb[127].mxu0 }
 0x497   : > { %v3146_v45 = vpack.i.bf16 %v1722_v28, %v1724_v16 }
 0x499   : > { %3147 = vxpose.xlu1.b32.end [16/16] %v3146_v45, 128 }
 0x49d   : > { %v3036_v17 = vpop.trf.xlu0 }
 0x49e   : > { %v3040_v44 = vunpack.i.h.bf16 %v3036_v17  ;;  %v3037_v23 = vunpack.i.l.bf16 %v3036_v17 }
 0x4a0   : > { %1919 = vmatprep.mubr.f32.mxu1 %v3037_v23 }
 0x4a1   : > { %v3041_v24 = vpop.trf.xlu0  ;;  %1920 = vmatmul.mubr.f32.vlgmr.msra.gmra.mrb[64].mxu1 %v3040_v44 }
 0x4a2   : > { %v3042_v26 = vunpack.i.l.bf16 %v3041_v24  ;;  %v3045_v39 = vunpack.i.h.bf16 %v3041_v24 }
 0x4a4   : > { %1925 = vmatprep.mubr.f32.mxu1 %v3042_v26 }
 0x4a5   : > { %v3046_v27 = vpop.trf.xlu0  ;;  %1926 = vmatmul.mubr.f32.gmra.mrb[66].mxu1 %v3045_v39 }
 0x4a6   : > { %v3047_v61 = vunpack.i.l.bf16 %v3046_v27  ;;  %v3050_v38 = vunpack.i.h.bf16 %v3046_v27 }
 0x4a8   : > { %1931 = vmatprep.mubr.f32.mxu1 %v3047_v61 }
 0x4a9   : > { %v3051_v59 = vpop.trf.xlu0  ;;  %1932 = vmatmul.mubr.f32.gmra.mrb[68].mxu1 %v3050_v38 }
 0x4aa   : > { %v3052_v31 = vunpack.i.l.bf16 %v3051_v59  ;;  %v3055_v32 = vunpack.i.h.bf16 %v3051_v59 }
 0x4ac   : > { %1937 = vmatprep.mubr.f32.mxu1 %v3052_v31 }
 0x4ad   : > { %v3056_v34 = vpop.trf.xlu0  ;;  %1938 = vmatmul.mubr.f32.gmra.mrb[70].mxu1 %v3055_v32 }
 0x4ae   : > { %v3057_v35 = vunpack.i.l.bf16 %v3056_v34  ;;  %v3060_v36 = vunpack.i.h.bf16 %v3056_v34 }
 0x4b0   : > { %1943 = vmatprep.mubr.f32.mxu1 %v3057_v35 }
 0x4b1   : > { %v3061_v12 = vpop.trf.xlu0  ;;  %1944 = vmatmul.mubr.f32.gmra.mrb[72].mxu1 %v3060_v36 }
 0x4b2   : > { %v3062_v51 = vunpack.i.l.bf16 %v3061_v12  ;;  %v3065_v11 = vunpack.i.h.bf16 %v3061_v12 }
 0x4b4   : > { %1949 = vmatprep.mubr.f32.mxu1 %v3062_v51 }
 0x4b5   : > { %v3066_v37 = vpop.trf.xlu0  ;;  %1950 = vmatmul.mubr.f32.gmra.mrb[74].mxu1 %v3065_v11 }
 0x4b6   : > { %v3067_v50 = vunpack.i.l.bf16 %v3066_v37  ;;  %v3070_v40 = vunpack.i.h.bf16 %v3066_v37 }
 0x4b8   : > { %1955 = vmatprep.mubr.f32.mxu1 %v3067_v50 }
 0x4b9   : > { %v3071_v3 = vpop.trf.xlu0  ;;  %1956 = vmatmul.mubr.f32.gmra.mrb[76].mxu1 %v3070_v40 }
 0x4ba   : > { %v3072_v41 = vunpack.i.l.bf16 %v3071_v3  ;;  %v3075_v25 = vunpack.i.h.bf16 %v3071_v3 }
 0x4bc   : > { %1961 = vmatprep.mubr.f32.mxu1 %v3072_v41 }
 0x4bd   : > { %v3076_v1 = vpop.trf.xlu0  ;;  %1962 = vmatmul.mubr.f32.gmra.mrb[78].mxu1 %v3075_v25 }
 0x4be   : > { %v3077_v20 = vunpack.i.l.bf16 %v3076_v1  ;;  %v3080_v46 = vunpack.i.h.bf16 %v3076_v1 }
 0x4c0   : > { %1967 = vmatprep.mubr.f32.mxu1 %v3077_v20 }
 0x4c1   : > { %v3081_v63 = vpop.trf.xlu0  ;;  %1968 = vmatmul.mubr.f32.gmra.mrb[80].mxu1 %v3080_v46 }
 0x4c2   : > { %v3082_v49 = vunpack.i.l.bf16 %v3081_v63  ;;  %v3085_v62 = vunpack.i.h.bf16 %v3081_v63 }
 0x4c4   : > { %1973 = vmatprep.mubr.f32.mxu1 %v3082_v49 }
 0x4c5   : > { %v3086_v52 = vpop.trf.xlu0  ;;  %1974 = vmatmul.mubr.f32.gmra.mrb[82].mxu1 %v3085_v62 }
 0x4c6   : > { %v3087_v43 = vunpack.i.l.bf16 %v3086_v52  ;;  %v3090_v42 = vunpack.i.h.bf16 %v3086_v52 }
 0x4c8   : > { %1979 = vmatprep.mubr.f32.mxu1 %v3087_v43 }
 0x4c9   : > { %v3091_v47 = vpop.trf.xlu0  ;;  %1980 = vmatmul.mubr.f32.gmra.mrb[84].mxu1 %v3090_v42 }
 0x4ca   : > { %v3092_v53 = vunpack.i.l.bf16 %v3091_v47  ;;  %v3095_v10 = vunpack.i.h.bf16 %v3091_v47 }
 0x4cc   : > { %1985 = vmatprep.mubr.f32.mxu1 %v3092_v53 }
 0x4cd   : > { %v3096_v54 = vpop.trf.xlu0  ;;  %1986 = vmatmul.mubr.f32.gmra.mrb[86].mxu1 %v3095_v10 }
 0x4ce   : > { %v3097_v6 = vunpack.i.l.bf16 %v3096_v54  ;;  %v3100_v9 = vunpack.i.h.bf16 %v3096_v54 }
 0x4d0   : > { %1991 = vmatprep.mubr.f32.mxu1 %v3097_v6 }
 0x4d1   : > { %v3101_v60 = vpop.trf.xlu0  ;;  %1992 = vmatmul.mubr.f32.gmra.mrb[88].mxu1 %v3100_v9 }
 0x4d2   : > { %v3102_v58 = vunpack.i.l.bf16 %v3101_v60  ;;  %v3105_v56 = vunpack.i.h.bf16 %v3101_v60 }
 0x4d4   : > { %1997 = vmatprep.mubr.f32.mxu1 %v3102_v58 }
 0x4d5   : > { %v3106_v55 = vpop.trf.xlu0  ;;  %1998 = vmatmul.mubr.f32.gmra.mrb[90].mxu1 %v3105_v56 }
 0x4d6   : > { %v3107_v57 = vunpack.i.l.bf16 %v3106_v55  ;;  %v3110_v48 = vunpack.i.h.bf16 %v3106_v55 }
 0x4d8   : > { %2003 = vmatprep.mubr.f32.mxu1 %v3107_v57 }
 0x4d9   : > { %v3111_v0 = vpop.trf.xlu0  ;;  %2004 = vmatmul.mubr.f32.gmra.mrb[92].mxu1 %v3110_v48 }
 0x4da   : > { %v3115_v2 = vunpack.i.h.bf16 %v3111_v0  ;;  %v3112_v22 = vunpack.i.l.bf16 %v3111_v0 }
 0x4dc   : > { %2009 = vmatprep.mubr.f32.mxu1 %v3112_v22 }
 0x4dd   : > { %2010 = vmatmul.mubr.f32.gmra.mrb[94].mxu1 %v3115_v2  ;;  %v3148_v19 = vpop.trf.xlu1 }
 0x4de   : > { %v3149_v21 = vunpack.i.l.bf16 %v3148_v19  ;;  %v3152_v4 = vunpack.i.h.bf16 %v3148_v19 }
 0x4e0   : > { %2015 = vmatprep.mubr.f32.mxu1 %v3149_v21 }
 0x4e1   : > { %v3153_v18 = vpop.trf.xlu1  ;;  %2016 = vmatmul.mubr.f32.gmra.mrb[96].mxu1 %v3152_v4 }
 0x4e2   : > { %v3154_v5 = vunpack.i.l.bf16 %v3153_v18  ;;  %v3157_v7 = vunpack.i.h.bf16 %v3153_v18 }
 0x4e4   : > { %2021 = vmatprep.mubr.f32.mxu1 %v3154_v5 }
 0x4e5   : > { %v3158_v13 = vpop.trf.xlu1  ;;  %2022 = vmatmul.mubr.f32.gmra.mrb[98].mxu1 %v3157_v7 }
 0x4e6   : > { %v3159_v29 = vunpack.i.l.bf16 %v3158_v13  ;;  %v3162_v14 = vunpack.i.h.bf16 %v3158_v13 }
 0x4e8   : > { %2027 = vmatprep.mubr.f32.mxu1 %v3159_v29 }
 0x4e9   : > { %v3163_v33 = vpop.trf.xlu1  ;;  %2028 = vmatmul.mubr.f32.gmra.mrb[100].mxu1 %v3162_v14 }
 0x4ea   : > { %v3164_v15 = vunpack.i.l.bf16 %v3163_v33  ;;  %v3167_v30 = vunpack.i.h.bf16 %v3163_v33 }
 0x4ec   : > { %2033 = vmatprep.mubr.f32.mxu1 %v3164_v15 }
 0x4ed   : > { %v3168_v8 = vpop.trf.xlu1  ;;  %2034 = vmatmul.mubr.f32.gmra.mrb[102].mxu1 %v3167_v30 }
 0x4ee   : > { %v3169_v28 = vunpack.i.l.bf16 %v3168_v8  ;;  %v3172_v16 = vunpack.i.h.bf16 %v3168_v8 }
 0x4f0   : > { %2039 = vmatprep.mubr.f32.mxu1 %v3169_v28 }
 0x4f1   : > { %v3173_v45 = vpop.trf.xlu1  ;;  %2040 = vmatmul.mubr.f32.gmra.mrb[104].mxu1 %v3172_v16 }
 0x4f2   : > { %v3174_v17 = vunpack.i.l.bf16 %v3173_v45  ;;  %v3177_v44 = vunpack.i.h.bf16 %v3173_v45 }
 0x4f4   : > { %2045 = vmatprep.mubr.f32.mxu1 %v3174_v17 }
 0x4f5   : > { %v3178_v23 = vpop.trf.xlu1  ;;  %2046 = vmatmul.mubr.f32.gmra.mrb[106].mxu1 %v3177_v44 }
 0x4f6   : > { %v3179_v24 = vunpack.i.l.bf16 %v3178_v23  ;;  %v3182_v26 = vunpack.i.h.bf16 %v3178_v23 }
 0x4f8   : > { %2051 = vmatprep.mubr.f32.mxu1 %v3179_v24 }
 0x4f9   : > { %v3183_v39 = vpop.trf.xlu1  ;;  %2052 = vmatmul.mubr.f32.gmra.mrb[108].mxu1 %v3182_v26 }
 0x4fa   : > { %v3184_v27 = vunpack.i.l.bf16 %v3183_v39  ;;  %v3187_v61 = vunpack.i.h.bf16 %v3183_v39 }
 0x4fc   : > { %2057 = vmatprep.mubr.f32.mxu1 %v3184_v27 }
 0x4fd   : > { %v3188_v38 = vpop.trf.xlu1  ;;  %2058 = vmatmul.mubr.f32.gmra.mrb[110].mxu1 %v3187_v61 }
 0x4fe   : > { %v3189_v59 = vunpack.i.l.bf16 %v3188_v38  ;;  %v3192_v31 = vunpack.i.h.bf16 %v3188_v38 }
 0x500   : > { %2063 = vmatprep.mubr.f32.mxu1 %v3189_v59 }
 0x501   : > { %v3193_v32 = vpop.trf.xlu1  ;;  %2064 = vmatmul.mubr.f32.gmra.mrb[112].mxu1 %v3192_v31 }
 0x502   : > { %v3194_v34 = vunpack.i.l.bf16 %v3193_v32  ;;  %v3197_v35 = vunpack.i.h.bf16 %v3193_v32 }
 0x504   : > { %2069 = vmatprep.mubr.f32.mxu1 %v3194_v34 }
 0x505   : > { %v3198_v36 = vpop.trf.xlu1  ;;  %2070 = vmatmul.mubr.f32.gmra.mrb[114].mxu1 %v3197_v35 }
 0x506   : > { %v3199_v12 = vunpack.i.l.bf16 %v3198_v36  ;;  %v3202_v51 = vunpack.i.h.bf16 %v3198_v36 }
 0x508   : > { %2075 = vmatprep.mubr.f32.mxu1 %v3199_v12 }
 0x509   : > { %v3203_v11 = vpop.trf.xlu1  ;;  %2076 = vmatmul.mubr.f32.gmra.mrb[116].mxu1 %v3202_v51 }
 0x50a   : > { %v3204_v37 = vunpack.i.l.bf16 %v3203_v11  ;;  %v3207_v50 = vunpack.i.h.bf16 %v3203_v11 }
 0x50c   : > { %2081 = vmatprep.mubr.f32.mxu1 %v3204_v37 }
 0x50d   : > { %v3208_v40 = vpop.trf.xlu1  ;;  %2082 = vmatmul.mubr.f32.gmra.mrb[118].mxu1 %v3207_v50 }
 0x50e   : > { %v3209_v3 = vunpack.i.l.bf16 %v3208_v40  ;;  %v3212_v41 = vunpack.i.h.bf16 %v3208_v40 }
 0x510   : > { %2087 = vmatprep.mubr.f32.mxu1 %v3209_v3 }
 0x511   : > { %v3213_v25 = vpop.trf.xlu1  ;;  %2088 = vmatmul.mubr.f32.gmra.mrb[120].mxu1 %v3212_v41 }
 0x512   : > { %v3214_v1 = vunpack.i.l.bf16 %v3213_v25  ;;  %v3217_v20 = vunpack.i.h.bf16 %v3213_v25 }
 0x514   : > { %2093 = vmatprep.mubr.f32.mxu1 %v3214_v1 }
 0x515   : > { %v3218_v46 = vpop.trf.xlu1  ;;  %2094 = vmatmul.mubr.f32.gmra.mrb[122].mxu1 %v3217_v20 }
 0x516   : > { %v3219_v63 = vunpack.i.l.bf16 %v3218_v46  ;;  %v3222_v49 = vunpack.i.h.bf16 %v3218_v46 }
 0x518   : > { %2099 = vmatprep.mubr.f32.mxu1 %v3219_v63 }
 0x519   : > { %v3223_v62 = vpop.trf.xlu1  ;;  %2100 = vmatmul.mubr.f32.gmra.mrb[124].mxu1 %v3222_v49 }
 0x51a   : > { %v3227_v52 = vunpack.i.h.bf16 %v3223_v62  ;;  %v3224_v43 = vunpack.i.l.bf16 %v3223_v62 }
 0x51c   : > { %2105 = vmatprep.mubr.f32.mxu1 %v3224_v43 }
 0x51d   : > { %2106 = vmatmul.mubr.f32.gmra.mrb[126].mxu1 %v3227_v52 }
 0x574   : > { %v1921_v42 = vpop.f32.mrb[64].mxu1 }
 0x575   : > { %2112 = vst [vmem:[%s4220_s30] sm:$0xff] %v1921_v42  ;;  %v1923_v47 = vpop.f32.mrb[65].mxu1 }
 0x576   : > { %2144 = vst [vmem:[%s4224_s10] sm:$0xff] %v1923_v47 }
 0x578   : > { %v1927_v53 = vpop.f32.mrb[66].mxu1 }
 0x579   : > { %2113 = vst [vmem:[%s4220_s30 + $0x8] sm:$0xff] %v1927_v53  ;;  %v1929_v10 = vpop.f32.mrb[67].mxu1 }
 0x57a   : > { %2145 = vst [vmem:[%s4224_s10 + $0x8] sm:$0xff] %v1929_v10 }
 0x57c   : > { %v1933_v54 = vpop.f32.mrb[68].mxu1 }
 0x57d   : > { %2114 = vst [vmem:[%s4220_s30 + $0x10] sm:$0xff] %v1933_v54  ;;  %v1935_v6 = vpop.f32.mrb[69].mxu1 }
 0x57e   : > { %2146 = vst [vmem:[%s4224_s10 + $0x10] sm:$0xff] %v1935_v6 }
 0x580   : > { %v1939_v9 = vpop.f32.mrb[70].mxu1 }
 0x581   : > { %2115 = vst [vmem:[%s4220_s30 + $0x18] sm:$0xff] %v1939_v9  ;;  %v1941_v60 = vpop.f32.mrb[71].mxu1 }
 0x582   : > { %2147 = vst [vmem:[%s4224_s10 + $0x18] sm:$0xff] %v1941_v60 }
 0x584   : > { %v1945_v58 = vpop.f32.mrb[72].mxu1 }
 0x585   : > { %2116 = vst [vmem:[%s4220_s30 + $0x20] sm:$0xff] %v1945_v58  ;;  %v1947_v56 = vpop.f32.mrb[73].mxu1 }
 0x586   : > { %2148 = vst [vmem:[%s4224_s10 + $0x20] sm:$0xff] %v1947_v56 }
 0x588   : > { %v1951_v55 = vpop.f32.mrb[74].mxu1 }
 0x589   : > { %2117 = vst [vmem:[%s4220_s30 + $0x28] sm:$0xff] %v1951_v55  ;;  %v1953_v57 = vpop.f32.mrb[75].mxu1 }
 0x58a   : > { %2149 = vst [vmem:[%s4224_s10 + $0x28] sm:$0xff] %v1953_v57 }
 0x58c   : > { %v1957_v48 = vpop.f32.mrb[76].mxu1 }
 0x58d   : > { %2118 = vst [vmem:[%s4220_s30 + $0x30] sm:$0xff] %v1957_v48  ;;  %v1959_v0 = vpop.f32.mrb[77].mxu1 }
 0x58e   : > { %2150 = vst [vmem:[%s4224_s10 + $0x30] sm:$0xff] %v1959_v0 }
 0x590   : > { %v1963_v2 = vpop.f32.mrb[78].mxu1 }
 0x591   : > { %2119 = vst [vmem:[%s4220_s30 + $0x38] sm:$0xff] %v1963_v2  ;;  %v1965_v22 = vpop.f32.mrb[79].mxu1 }
 0x592   : > { %2151 = vst [vmem:[%s4224_s10 + $0x38] sm:$0xff] %v1965_v22 }
 0x594   : > { %v1969_v19 = vpop.f32.mrb[80].mxu1 }
 0x595   : > { %2120 = vst [vmem:[%s4220_s30 + $0x40] sm:$0xff] %v1969_v19  ;;  %v1971_v21 = vpop.f32.mrb[81].mxu1 }
 0x596   : > { %2152 = vst [vmem:[%s4224_s10 + $0x40] sm:$0xff] %v1971_v21 }
 0x598   : > { %v1975_v4 = vpop.f32.mrb[82].mxu1 }
 0x599   : > { %2121 = vst [vmem:[%s4220_s30 + $0x48] sm:$0xff] %v1975_v4  ;;  %v1977_v18 = vpop.f32.mrb[83].mxu1 }
 0x59a   : > { %2153 = vst [vmem:[%s4224_s10 + $0x48] sm:$0xff] %v1977_v18 }
 0x59c   : > { %v1981_v5 = vpop.f32.mrb[84].mxu1 }
 0x59d   : > { %2122 = vst [vmem:[%s4220_s30 + $0x50] sm:$0xff] %v1981_v5  ;;  %v1983_v7 = vpop.f32.mrb[85].mxu1 }
 0x59e   : > { %2154 = vst [vmem:[%s4224_s10 + $0x50] sm:$0xff] %v1983_v7 }
 0x5a0   : > { %v1987_v13 = vpop.f32.mrb[86].mxu1 }
 0x5a1   : > { %2123 = vst [vmem:[%s4220_s30 + $0x58] sm:$0xff] %v1987_v13  ;;  %v1989_v29 = vpop.f32.mrb[87].mxu1 }
 0x5a2   : > { %2155 = vst [vmem:[%s4224_s10 + $0x58] sm:$0xff] %v1989_v29 }
 0x5a4   : > { %v1993_v14 = vpop.f32.mrb[88].mxu1 }
 0x5a5   : > { %2124 = vst [vmem:[%s4220_s30 + $0x60] sm:$0xff] %v1993_v14  ;;  %v1995_v33 = vpop.f32.mrb[89].mxu1 }
 0x5a6   : > { %2156 = vst [vmem:[%s4224_s10 + $0x60] sm:$0xff] %v1995_v33 }
 0x5a8   : > { %v1999_v15 = vpop.f32.mrb[90].mxu1 }
 0x5a9   : > { %2125 = vst [vmem:[%s4220_s30 + $0x68] sm:$0xff] %v1999_v15  ;;  %v2001_v30 = vpop.f32.mrb[91].mxu1 }
 0x5aa   : > { %2157 = vst [vmem:[%s4224_s10 + $0x68] sm:$0xff] %v2001_v30 }
 0x5ac   : > { %v2005_v8 = vpop.f32.mrb[92].mxu1 }
 0x5ad   : > { %2126 = vst [vmem:[%s4220_s30 + $0x70] sm:$0xff] %v2005_v8  ;;  %v2007_v28 = vpop.f32.mrb[93].mxu1 }
 0x5ae   : > { %2158 = vst [vmem:[%s4224_s10 + $0x70] sm:$0xff] %v2007_v28 }
 0x5b0   : > { %v2011_v16 = vpop.f32.mrb[94].mxu1 }
 0x5b1   : > { %2127 = vst [vmem:[%s4220_s30 + $0x78] sm:$0xff] %v2011_v16  ;;  %v2013_v45 = vpop.f32.mrb[95].mxu1 }
 0x5b2   : > { %2159 = vst [vmem:[%s4224_s10 + $0x78] sm:$0xff] %v2013_v45 }
 0x5b4   : > { %v2017_v17 = vpop.f32.mrb[96].mxu1 }
 0x5b5   : > { %2128 = vst [vmem:[%s4220_s30 + $0x80] sm:$0xff] %v2017_v17  ;;  %v2019_v44 = vpop.f32.mrb[97].mxu1 }
 0x5b6   : > { %2160 = vst [vmem:[%s4224_s10 + $0x80] sm:$0xff] %v2019_v44 }
 0x5b8   : > { %v2023_v23 = vpop.f32.mrb[98].mxu1 }
 0x5b9   : > { %2129 = vst [vmem:[%s4220_s30 + $0x88] sm:$0xff] %v2023_v23  ;;  %v2025_v24 = vpop.f32.mrb[99].mxu1 }
 0x5ba   : > { %2161 = vst [vmem:[%s4224_s10 + $0x88] sm:$0xff] %v2025_v24 }
 0x5bc   : > { %v2029_v26 = vpop.f32.mrb[100].mxu1 }
 0x5bd   : > { %2130 = vst [vmem:[%s4220_s30 + $0x90] sm:$0xff] %v2029_v26  ;;  %v2031_v39 = vpop.f32.mrb[101].mxu1 }
 0x5be   : > { %2162 = vst [vmem:[%s4224_s10 + $0x90] sm:$0xff] %v2031_v39 }
 0x5c0   : > { %v2035_v27 = vpop.f32.mrb[102].mxu1 }
 0x5c1   : > { %2131 = vst [vmem:[%s4220_s30 + $0x98] sm:$0xff] %v2035_v27  ;;  %v2037_v61 = vpop.f32.mrb[103].mxu1 }
 0x5c2   : > { %2163 = vst [vmem:[%s4224_s10 + $0x98] sm:$0xff] %v2037_v61 }
 0x5c4   : > { %v2041_v38 = vpop.f32.mrb[104].mxu1 }
 0x5c5   : > { %2132 = vst [vmem:[%s4220_s30 + $0xa0] sm:$0xff] %v2041_v38  ;;  %v2043_v59 = vpop.f32.mrb[105].mxu1 }
 0x5c6   : > { %2164 = vst [vmem:[%s4224_s10 + $0xa0] sm:$0xff] %v2043_v59 }
 0x5c8   : > { %v2047_v31 = vpop.f32.mrb[106].mxu1 }
 0x5c9   : > { %2133 = vst [vmem:[%s4220_s30 + $0xa8] sm:$0xff] %v2047_v31  ;;  %v2049_v32 = vpop.f32.mrb[107].mxu1 }
 0x5ca   : > { %2165 = vst [vmem:[%s4224_s10 + $0xa8] sm:$0xff] %v2049_v32 }
 0x5cc   : > { %v2053_v34 = vpop.f32.mrb[108].mxu1 }
 0x5cd   : > { %2134 = vst [vmem:[%s4220_s30 + $0xb0] sm:$0xff] %v2053_v34  ;;  %v2055_v35 = vpop.f32.mrb[109].mxu1 }
 0x5ce   : > { %2166 = vst [vmem:[%s4224_s10 + $0xb0] sm:$0xff] %v2055_v35 }
 0x5d0   : > { %v2059_v36 = vpop.f32.mrb[110].mxu1 }
 0x5d1   : > { %2135 = vst [vmem:[%s4220_s30 + $0xb8] sm:$0xff] %v2059_v36  ;;  %v2061_v12 = vpop.f32.mrb[111].mxu1 }
 0x5d2   : > { %2167 = vst [vmem:[%s4224_s10 + $0xb8] sm:$0xff] %v2061_v12 }
 0x5d4   : > { %v2065_v51 = vpop.f32.mrb[112].mxu1 }
 0x5d5   : > { %2136 = vst [vmem:[%s4220_s30 + $0xc0] sm:$0xff] %v2065_v51  ;;  %v2067_v11 = vpop.f32.mrb[113].mxu1 }
 0x5d6   : > { %2168 = vst [vmem:[%s4224_s10 + $0xc0] sm:$0xff] %v2067_v11 }
 0x5d8   : > { %v2071_v37 = vpop.f32.mrb[114].mxu1 }
 0x5d9   : > { %2137 = vst [vmem:[%s4220_s30 + $0xc8] sm:$0xff] %v2071_v37  ;;  %v2073_v50 = vpop.f32.mrb[115].mxu1 }
 0x5da   : > { %2169 = vst [vmem:[%s4224_s10 + $0xc8] sm:$0xff] %v2073_v50 }
 0x5dc   : > { %v2077_v40 = vpop.f32.mrb[116].mxu1 }
 0x5dd   : > { %2138 = vst [vmem:[%s4220_s30 + $0xd0] sm:$0xff] %v2077_v40  ;;  %v2079_v3 = vpop.f32.mrb[117].mxu1 }
 0x5de   : > { %2170 = vst [vmem:[%s4224_s10 + $0xd0] sm:$0xff] %v2079_v3 }
 0x5e0   : > { %v2083_v41 = vpop.f32.mrb[118].mxu1 }
 0x5e1   : > { %2139 = vst [vmem:[%s4220_s30 + $0xd8] sm:$0xff] %v2083_v41  ;;  %v2085_v25 = vpop.f32.mrb[119].mxu1 }
 0x5e2   : > { %2171 = vst [vmem:[%s4224_s10 + $0xd8] sm:$0xff] %v2085_v25 }
 0x5e4   : > { %v2089_v1 = vpop.f32.mrb[120].mxu1 }
 0x5e5   : > { %2140 = vst [vmem:[%s4220_s30 + $0xe0] sm:$0xff] %v2089_v1  ;;  %v2091_v20 = vpop.f32.mrb[121].mxu1 }
 0x5e6   : > { %2172 = vst [vmem:[%s4224_s10 + $0xe0] sm:$0xff] %v2091_v20 }
 0x5e8   : > { %v2095_v46 = vpop.f32.mrb[122].mxu1 }
 0x5e9   : > { %2141 = vst [vmem:[%s4220_s30 + $0xe8] sm:$0xff] %v2095_v46  ;;  %v2097_v63 = vpop.f32.mrb[123].mxu1 }
 0x5ea   : > { %2173 = vst [vmem:[%s4224_s10 + $0xe8] sm:$0xff] %v2097_v63 }
 0x5ec   : > { %v2101_v49 = vpop.f32.mrb[124].mxu1 }
 0x5ed   : > { %2142 = vst [vmem:[%s4220_s30 + $0xf0] sm:$0xff] %v2101_v49  ;;  %v2103_v62 = vpop.f32.mrb[125].mxu1 }
 0x5ee   : > { %2174 = vst [vmem:[%s4224_s10 + $0xf0] sm:$0xff] %v2103_v62 }
 0x5f0   : > { %v2107_v52 = vpop.f32.mrb[126].mxu1 }
 0x5f1   : > { %2143 = vst [vmem:[%s4220_s30 + $0xf8] sm:$0xff] %v2107_v52  ;;  %v2109_v43 = vpop.f32.mrb[127].mxu1 }
 0x5f2   : > { %2175 = vst [vmem:[%s4224_s10 + $0xf8] sm:$0xff] %v2109_v43 }
 0x5f3   : > { %3413 = shalt.err (!%p3410_p8)
}
 0x5f4   : > { %s3414_s14 = scalar_lea.hbm %s4291_s23, 4096  ;;  %s3418_s10 = scalar_lea.hbm %s4384_s6, 8192 }
 0x5f5   : > { %p3415_p11 = scmp.ne.s32.totalorder %s4291_s23, %s3414_s14  ;;  %p3419_p2 = scmp.lt.u32.totalorder %s4291_s23, %s4384_s6 }
 0x5f6   : > { %p3420_p1 = scmp.lt.u32.totalorder %s3418_s10, %s3414_s14  ;;  %p3422_p0 = scmp.lt.u32.totalorder %s3414_s14, %s4291_s23 }
 0x5f7   : > { %p3416_p7 = pnand %p3415_p11, %p3735_p10 }
 0x5f8   : > { %p3421_p13 = por %p3420_p1, %p3419_p2 }
 0x5f9   : > { %p3417_p12 = pneg %p3416_p7 }
 0x5fa   : > { %p3423_p4 = por %p3422_p0, %p3421_p13 }
 0x5fc   : > { %p3424_p6 = pnand %p3423_p4, %p3417_p12 }
 0x5fe   : > { %3427 = shalt.err (!%p3424_p6)
}
 0x5ff   : > { %s3527_s3 = smov 128   ;;  %s3528_s11 = smov 8  }
 0x600   : > { %2697 = dma.vmem_to_hbm [thread:$0]  (%p3735_p10), %s4295_s17, 4096, %s4291_s23, %s2177_s0, %s3527_s3, %s3527_s3, %s3528_s11  }
 0x601   : > { %s2182_s28 = scalar_lea.sflag [#allocation15], %s3830_s12  ;;  %s3428_s18 = scalar_lea.vmem %s4302_s13, 4096 }
 0x602   : > { %p3429_p3 = scmp.ne.s32.totalorder %s4302_s13, %s3428_s18  ;;  %s3529_s8 = smov [#allocation14]  }
 0x603   : > { %s3432_s21 = sshll.u32 %s3529_s8, 4  ;;  %s3433_s21 = int_to_ptr.vmem [resolvable:$false] %s3432_s21 }
 0x604   : > { %p3430_p5 = pnand %p3429_p3, %p3735_p10  ;;  %s3434_s9 = scalar_lea.vmem %s3433_s21, 8192 }
 0x605   : > { %p3435_p8 = scmp.lt.s32.totalorder %s4302_s13, %s3433_s21  ;;  %p3436_p11 = scmp.lt.s32.totalorder %s3434_s9, %s3428_s18 }
 0x606   : > { %p3431_p9 = pneg %p3430_p5 }
 0x607   : > { %p3437_p7 = por %p3436_p11, %p3435_p8 }
 0x609   : > { %p3438_p12 = pnand %p3437_p7, %p3431_p9 }
 0x60b   : > { %3441 = shalt.err (!%p3438_p12)
}
 0x60c   : > { %s3442_s17 = scalar_lea.hbm %s4300_s15, 4096  ;;  %s3446_s14 = scalar_lea.hbm %s4385_s7, 8192 }
 0x60d   : > { %p3443_p2 = scmp.ne.s32.totalorder %s4300_s15, %s3442_s17  ;;  %p3447_p0 = scmp.lt.u32.totalorder %s4300_s15, %s4385_s7 }
 0x60e   : > { %p3448_p4 = scmp.lt.u32.totalorder %s3446_s14, %s3442_s17  ;;  %p3450_p3 = scmp.lt.u32.totalorder %s3442_s17, %s4300_s15 }
 0x60f   : > { %p3444_p1 = pnand %p3443_p2, %p3735_p10 }
 0x610   : > { %p3449_p6 = por %p3448_p4, %p3447_p0 }
 0x611   : > { %p3445_p13 = pneg %p3444_p1 }
 0x612   : > { %p3451_p5 = por %p3450_p3, %p3449_p6 }
 0x614   : > { %p3452_p9 = pnand %p3451_p5, %p3445_p13 }
 0x616   : > { %3455 = shalt.err (!%p3452_p9)
}
 0x617   : > { %2698 = dma.vmem_to_hbm [thread:$0]  (%p3735_p10), %s4302_s13, 4096, %s4300_s15, %s2182_s28, %s3527_s3, %s3527_s3, %s3528_s11  }
 0x618 PF: > { %s4419_s10 = sld [smem:[#allocation23_spill]]  ;;  %s2228_s16 = sand.u32 1, %s3502_s24  }
 0x619   : > { %p4421_p11 = scmp.ge.s32.totalorder %s3514_s27, 2  ;;  %s2229_s2 = scalar_lea.sflag [#allocation4], %s2228_s16 }
 0x61e   : > { %p4420_p8 = scmp.ne.s32.totalorder %s4419_s10, 0 }
 0x620   : > { %p2722_p7 = pnand %p4421_p11, %p4420_p8 }
 0x622   : > { %3493 = dma.done.wait (!%p2722_p7), %s2229_s2, 4096  }
 0x623   : > { %3495 = vsyncadd (!%p2722_p7), %s2229_s2, 4294963200  ;;  %s2238_s19 = scalar_lea.sflag [#allocation15], %s2228_s16 }
 0x624   : > { %3497 = dma.done.wait (!%p2722_p7), %s2238_s19, 4096  }
 0x625   : > { %3499 = vsyncadd (!%p2722_p7), %s2238_s19, 4294963200  ;;  %p29_p10 = scmp.ge.s32.totalorder %s3725_s22, 4   ;;  %s4422_s24 = smov %s3506_s25 }
 0x626   : > { %s4423_s25 = smov %s3510_s26  ;;  %s4424_s26 = smov %s3741_s20 }
 0x627   : > { %s4425_s27 = smov %s3725_s22  ;;  %31 = sbr.rel (!%p29_p10) target bundleno = 15 (0xf), region = 135 }
 0x62e   :  { %2243 = vsyncpa [#allocation3], 1 }
 0x62f   :  { %2245 = vsyncpa [#allocation3 + $0x1], 1 }
 0x630   :  { %2246 = vsyncpa [#allocation6], 1 }
 0x631   :  { %2248 = vsyncpa [#allocation6 + $0x1], 1 }
 0x632   :  { %2249 = vsyncpa [#allocation9], 1 }
 0x633   :  { %2250 = vsyncpa [#allocation12], 1 }
 0x634   :  { %2251 = vsyncpa [#allocation4], 1 }
 0x635   :  { %2253 = vsyncpa [#allocation4 + $0x1], 1 }
 0x636   :  { %2254 = vsyncpa [#allocation15], 1 }
 0x637   :  { %2256 = vsyncpa [#allocation15 + $0x1], 1 }

</bundles_post_ra>
